<compile_context>
chip_gen: v7x
topology: tpu7x:2x2x1
jax: 0.10.0
libtpu: 0.0.40
codegen_flags: <defaults>
</compile_context>

<pallas_src>
import functools

import jax
import jax.numpy as jnp
from jax.experimental import pallas as pl
from jax.experimental.pallas import tpu as pltpu

_EPS = 1e-5  # nn.BatchNorm2d default


def _vmem_limit_bytes():
    """Scoped-VMEM limit: generous on 128 MiB-VMEM cores, safe on 64 MiB ones."""
    try:
        kind = jax.devices()[0].device_kind.lower()
        if ("v4" in kind) or ("v5" in kind) or ("v6" in kind):
            return 96 * 1024 * 1024
    except Exception:
        pass
    return 48 * 1024 * 1024  # conservative: fits v7x's 64 MiB/core VMEM


def _pick_tile_rows(H, W, cin, cout_pad, in_itemsize, budget_bytes):
    """Largest divisor TH of H whose per-step VMEM working set fits the budget."""
    def r8(n):
        return -(-n // 8) * 8

    def r128(n):
        return -(-n // 128) * 128

    def step_bytes(th):
        rows = th * W
        slab = th * r8(W + 2) * r128(cin) * in_itemsize       # one kh input slab
        inp = 2 * 3 * slab                                     # 3 views, dbl-buffered
        outp = 2 * th * r8(W) * cout_pad * 4                   # output tile, dbl-buffered
        patches = r8(rows) * r128(9 * cin) * in_itemsize       # im2col operand
        y = 2 * r8(rows) * cout_pad * 4                        # conv result + BN temp
        w = 2 * r8(9 * cin) * cout_pad * in_itemsize           # weights
        return inp + outp + patches + y + w

    best = 1
    for th in range(1, H + 1):
        if H % th == 0 and step_bytes(th) <= budget_bytes:
            best = th
    return best


def _conv_tile(x0_ref, x1_ref, x2_ref, w_ref, *, th, w_dim, cin):
    """3x3 conv on one row-tile as ONE wide-K MXU dot.

    x{0,1,2}_ref: (1, TH, W+2, Cin) slabs for kh = 0/1/2 (H-shifted halo views).
    w_ref:        (9*Cin, Cout_pad) weights, tap-major (kh, kw, cin) rows.
    Returns (TH*W, Cout_pad) f32.
    """
    slabs = (x0_ref[0], x1_ref[0], x2_ref[0])           # each (TH, W+2, Cin)
    cols = []
    for kh in range(3):
        slab = slabs[kh]
        for kw in range(3):
            cols.append(slab[:, kw:kw + w_dim, :])       # (TH, W, Cin), static slice
    patches = jnp.concatenate(cols, axis=-1)             # (TH, W, 9*Cin)
    patches = patches.reshape(th * w_dim, 9 * cin)       # leading-dim merge (layout-free)
    return jnp.dot(patches, w_ref[...], preferred_element_type=jnp.float32)


def _stats_kernel(x0_ref, x1_ref, x2_ref, w_ref, ssum_ref, ssq_ref, *,
                  th, w_dim, cin):
    """Pass 1: conv tile -> per-image partial channel sum / sum-of-squares."""
    y = _conv_tile(x0_ref, x1_ref, x2_ref, w_ref, th=th, w_dim=w_dim, cin=cin)

    @pl.when(pl.program_id(1) == 0)                       # first row-tile of this image
    def _():
        ssum_ref[...] = jnp.zeros_like(ssum_ref)
        ssq_ref[...] = jnp.zeros_like(ssq_ref)

    # TODO(synk): if VALU binds here for tiny Cin, do these reductions on the
    #             MXU instead: jnp.dot(ones((1, TH*W)), y) / jnp.dot(ones, y*y).
    ssum_ref[...] += jnp.sum(y, axis=0, keepdims=True)[None]
    ssq_ref[...] += jnp.sum(y * y, axis=0, keepdims=True)[None]


def _apply_kernel(x0_ref, x1_ref, x2_ref, w_ref, scale_ref, shift_ref,
                  alpha_ref, o_ref, *, th, w_dim, cin, cout):
    """Pass 2: recompute conv tile, fused BN FMA + per-channel PReLU, NHWC store."""
    y = _conv_tile(x0_ref, x1_ref, x2_ref, w_ref, th=th, w_dim=w_dim, cin=cin)
    z = y * scale_ref[...] + shift_ref[...]               # folded BatchNorm
    z = jnp.where(z > 0, z, alpha_ref[...] * z)           # PReLU
    o_ref[...] = z[:, :cout].reshape(1, th, w_dim, cout).astype(o_ref.dtype)


@functools.partial(jax.jit, static_argnames=("compute_dtype",))
def single_conv(x_nchw, w_oihw, gamma, beta, alpha, compute_dtype=jnp.float32):
    """SingleConv forward. x_nchw: (N, Cin, H, W). w_oihw: (Cout, Cin, 3, 3)."""
    N, Cin, H, W = x_nchw.shape
    Cout, _, KH, KW = w_oihw.shape
    assert (KH, KW) == (3, 3), "kernel specialised for 3x3 / stride 1 / pad 1"

    COUT_PAD = ((Cout + 127) // 128) * 128
    in_itemsize = jnp.dtype(compute_dtype).itemsize
    vmem_limit = _vmem_limit_bytes()
    TH = _pick_tile_rows(H, W, Cin, COUT_PAD, in_itemsize, vmem_limit // 2)
    HB = H // TH
    count = N * H * W

    # ---- XLA glue: NCHW -> NHWC, spatial zero-pad, three H-shifted views ----
    x_nhwc = jnp.transpose(x_nchw, (0, 2, 3, 1)).astype(compute_dtype)
    x_pad = jnp.pad(x_nhwc, ((0, 0), (1, 1), (1, 1), (0, 0)))
    x_top, x_mid, x_bot = (x_pad[:, kh:kh + H, :, :] for kh in range(3))

    # weights: OIHW -> (kh, kw, cin, cout) -> (9*Cin, COUT_PAD), tap-major rows
    w_taps = jnp.transpose(w_oihw, (2, 3, 1, 0)).reshape(KH * KW * Cin, Cout)
    w_taps = jnp.pad(w_taps, ((0, 0), (0, COUT_PAD - Cout))).astype(compute_dtype)

    # ---- BlockSpecs ---------------------------------------------------------
    x_spec = pl.BlockSpec((1, TH, W + 2, Cin), lambda n, hb: (n, hb, 0, 0))
    w_spec = pl.BlockSpec((KH * KW * Cin, COUT_PAD), lambda n, hb: (0, 0))
    vec_spec = pl.BlockSpec((1, COUT_PAD), lambda n, hb: (0, 0))
    stat_spec = pl.BlockSpec((1, 1, COUT_PAD), lambda n, hb: (n, 0, 0))
    out_spec = pl.BlockSpec((1, TH, W, Cout), lambda n, hb: (n, hb, 0, 0))

    statics = dict(th=TH, w_dim=W, cin=Cin)

    conv_flops = 2 * N * H * W * 9 * Cin * COUT_PAD
    x_bytes = 3 * N * H * (W + 2) * Cin * in_itemsize
    w_bytes = 9 * Cin * COUT_PAD * in_itemsize
    cost1 = pl.CostEstimate(flops=conv_flops + 3 * N * H * W * COUT_PAD,
                            transcendentals=0,
                            bytes_accessed=x_bytes + w_bytes + 2 * N * COUT_PAD * 4)
    cost2 = pl.CostEstimate(flops=conv_flops + 4 * N * H * W * COUT_PAD,
                            transcendentals=0,
                            bytes_accessed=x_bytes + w_bytes + 3 * COUT_PAD * 4
                            + N * H * W * Cout * 4)

    # ---- pass 1: per-image partial channel sum / sum-of-squares --------------
    psum, psq = pl.pallas_call(
        functools.partial(_stats_kernel, **statics),
        grid_spec=pltpu.PrefetchScalarGridSpec(
            num_scalar_prefetch=0,
            grid=(N, HB),
            in_specs=[x_spec, x_spec, x_spec, w_spec],
            out_specs=[stat_spec, stat_spec]),
        out_shape=(jax.ShapeDtypeStruct((N, 1, COUT_PAD), jnp.float32),
                   jax.ShapeDtypeStruct((N, 1, COUT_PAD), jnp.float32)),
        compiler_params=pltpu.CompilerParams(
            dimension_semantics=("parallel", "arbitrary"),
            vmem_limit_bytes=vmem_limit),
        cost_estimate=cost1,
    )(x_top, x_mid, x_bot, w_taps)

    # ---- XLA glue: reduce partials, fold BatchNorm into (scale, shift) ------
    def pad_c(v):
        return jnp.pad(v.astype(jnp.float32), (0, COUT_PAD - Cout))

    gamma_p, beta_p, alpha_p = pad_c(gamma), pad_c(beta), pad_c(alpha)
    ssum = jnp.sum(psum[:, 0, :], axis=0)                    # (COUT_PAD,)
    ssq = jnp.sum(psq[:, 0, :], axis=0)
    mean = ssum / count
    var = jnp.maximum(ssq / count - mean * mean, 0.0)        # biased variance
    scale = gamma_p * jax.lax.rsqrt(var + _EPS)
    shift = beta_p - mean * scale
    scale2 = scale.reshape(1, COUT_PAD)
    shift2 = shift.reshape(1, COUT_PAD)
    alpha2 = alpha_p.reshape(1, COUT_PAD)

    # ---- pass 2: conv tile + fused BN FMA + PReLU, unpadded NHWC output ------
    out_nhwc = pl.pallas_call(
        functools.partial(_apply_kernel, cout=Cout, **statics),
        grid_spec=pltpu.PrefetchScalarGridSpec(
            num_scalar_prefetch=0,
            grid=(N, HB),
            in_specs=[x_spec, x_spec, x_spec, w_spec,
                      vec_spec, vec_spec, vec_spec],
            out_specs=out_spec),
        out_shape=jax.ShapeDtypeStruct((N, H, W, Cout), jnp.float32),
        compiler_params=pltpu.CompilerParams(
            dimension_semantics=("parallel", "parallel"),
            vmem_limit_bytes=vmem_limit),
        cost_estimate=cost2,
    )(x_top, x_mid, x_bot, w_taps, scale2, shift2, alpha2)

    # NHWC -> NCHW (skip if the consumer can take NHWC directly).
    return jnp.transpose(out_nhwc, (0, 3, 1, 2))


def _reference(x_nchw, w_oihw, gamma, beta, alpha):
    """Pure-JAX reference of Conv2d -> BatchNorm2d(train) -> PReLU."""
    y = jax.lax.conv_general_dilated(
        x_nchw, w_oihw, window_strides=(1, 1), padding=((1, 1), (1, 1)),
        dimension_numbers=("NCHW", "OIHW", "NCHW"))
    mean = y.mean(axis=(0, 2, 3), keepdims=True)
    var = ((y - mean) ** 2).mean(axis=(0, 2, 3), keepdims=True)
    yn = (y - mean) / jnp.sqrt(var + _EPS)
    yn = yn * gamma.reshape(1, -1, 1, 1) + beta.reshape(1, -1, 1, 1)
    return jnp.where(yn > 0, yn, alpha.reshape(1, -1, 1, 1) * yn)


if __name__ == "__main__":
    key = jax.random.PRNGKey(0)
    N, Cin, Cout, H, W = 2, 4, 8, 16, 16

    k_x, k_w = jax.random.split(key)
    x = jax.random.normal(k_x, (N, Cin, H, W), dtype=jnp.float32)
    # Deterministic synthetic parameters at module-__init__ values:
    w = jax.random.normal(k_w, (Cout, Cin, 3, 3), dtype=jnp.float32) * 0.1
    gamma = jnp.ones((Cout,), jnp.float32)    # BatchNorm2d weight
    beta = jnp.zeros((Cout,), jnp.float32)    # BatchNorm2d bias
    alpha = jnp.zeros((Cout,), jnp.float32)   # PReLU(out_chns, init=0.0)

    ref = jax.block_until_ready(_reference(x, w, gamma, beta, alpha))

    # f32 path (matches PyTorch numerics).
    out = jax.block_until_ready(single_conv(x, w, gamma, beta, alpha))
    assert out.shape == (N, Cout, H, W), out.shape
    err = float(jnp.abs(out - ref).max())
    assert jnp.allclose(out, ref, atol=1e-3, rtol=1e-3), err

    # bf16 MXU-feed path (f32 accumulation), looser tolerance.
    out_bf16 = jax.block_until_ready(
        single_conv(x, w, gamma, beta, alpha, compute_dtype=jnp.bfloat16))
    err_bf16 = float(jnp.abs(out_bf16 - ref).max())
    assert jnp.allclose(out_bf16, ref, atol=1e-1, rtol=1e-1), err_bf16

    print("KERNEL_OK")
</pallas_src>

<mosaic_0001>
module attributes {stable_mosaic.version = 11 : i64} {
  func.func @_apply_kernel(%arg0: i32, %arg1: i32, %arg2: memref<1x16x18x4xf32, #tpu.memory_space<vmem>>, %arg3: memref<1x16x18x4xf32, #tpu.memory_space<vmem>>, %arg4: memref<1x16x18x4xf32, #tpu.memory_space<vmem>>, %arg5: memref<36x128xf32, #tpu.memory_space<vmem>>, %arg6: memref<1x128xf32, #tpu.memory_space<vmem>>, %arg7: memref<1x128xf32, #tpu.memory_space<vmem>>, %arg8: memref<1x128xf32, #tpu.memory_space<vmem>>, %arg9: memref<1x16x16x8xf32, #tpu.memory_space<vmem>>) attributes {dimension_semantics = [#tpu.dimension_semantics<parallel>, #tpu.dimension_semantics<parallel>], iteration_bounds = array<i64: 2, 1>, scalar_prefetch = 0 : i64, scratch_operands = 0 : i64, tpu.core_type = #tpu.core_type<tc>, window_params = [{transform_indices = @transform_0, window_bounds = array<i64: 1, 16, 18, 4>}, {transform_indices = @transform_1, window_bounds = array<i64: 1, 16, 18, 4>}, {transform_indices = @transform_2, window_bounds = array<i64: 1, 16, 18, 4>}, {pipeline_mode = #tpu.pipeline_mode<synchronous>, transform_indices = @transform_3, window_bounds = array<i64: 36, 128>}, {pipeline_mode = #tpu.pipeline_mode<synchronous>, transform_indices = @transform_4, window_bounds = array<i64: 1, 128>}, {pipeline_mode = #tpu.pipeline_mode<synchronous>, transform_indices = @transform_5, window_bounds = array<i64: 1, 128>}, {pipeline_mode = #tpu.pipeline_mode<synchronous>, transform_indices = @transform_6, window_bounds = array<i64: 1, 128>}, {transform_indices = @transform_7, window_bounds = array<i64: 1, 16, 16, 8>}]} {
    %c0 = arith.constant 0 : index
    %c0_0 = arith.constant 0 : index
    %c0_1 = arith.constant 0 : index
    %c0_2 = arith.constant 0 : index
    %0 = vector.load %arg2[%c0, %c0_0, %c0_1, %c0_2] : memref<1x16x18x4xf32, #tpu.memory_space<vmem>>, vector<1x16x18x4xf32>
    %1 = vector.shape_cast %0 : vector<1x16x18x4xf32> to vector<16x18x4xf32>
    %c0_3 = arith.constant 0 : index
    %c0_4 = arith.constant 0 : index
    %c0_5 = arith.constant 0 : index
    %c0_6 = arith.constant 0 : index
    %2 = vector.load %arg3[%c0_3, %c0_4, %c0_5, %c0_6] : memref<1x16x18x4xf32, #tpu.memory_space<vmem>>, vector<1x16x18x4xf32>
    %3 = vector.shape_cast %2 : vector<1x16x18x4xf32> to vector<16x18x4xf32>
    %c0_7 = arith.constant 0 : index
    %c0_8 = arith.constant 0 : index
    %c0_9 = arith.constant 0 : index
    %c0_10 = arith.constant 0 : index
    %4 = vector.load %arg4[%c0_7, %c0_8, %c0_9, %c0_10] : memref<1x16x18x4xf32, #tpu.memory_space<vmem>>, vector<1x16x18x4xf32>
    %5 = vector.shape_cast %4 : vector<1x16x18x4xf32> to vector<16x18x4xf32>
    %6 = vector.extract_strided_slice %1 {offsets = [0, 0, 0], sizes = [16, 16, 4], strides = [1, 1, 1]} : vector<16x18x4xf32> to vector<16x16x4xf32>
    %7 = vector.extract_strided_slice %1 {offsets = [0, 1, 0], sizes = [16, 16, 4], strides = [1, 1, 1]} : vector<16x18x4xf32> to vector<16x16x4xf32>
    %8 = vector.extract_strided_slice %1 {offsets = [0, 2, 0], sizes = [16, 16, 4], strides = [1, 1, 1]} : vector<16x18x4xf32> to vector<16x16x4xf32>
    %9 = vector.extract_strided_slice %3 {offsets = [0, 0, 0], sizes = [16, 16, 4], strides = [1, 1, 1]} : vector<16x18x4xf32> to vector<16x16x4xf32>
    %10 = vector.extract_strided_slice %3 {offsets = [0, 1, 0], sizes = [16, 16, 4], strides = [1, 1, 1]} : vector<16x18x4xf32> to vector<16x16x4xf32>
    %11 = vector.extract_strided_slice %3 {offsets = [0, 2, 0], sizes = [16, 16, 4], strides = [1, 1, 1]} : vector<16x18x4xf32> to vector<16x16x4xf32>
    %12 = vector.extract_strided_slice %5 {offsets = [0, 0, 0], sizes = [16, 16, 4], strides = [1, 1, 1]} : vector<16x18x4xf32> to vector<16x16x4xf32>
    %13 = vector.extract_strided_slice %5 {offsets = [0, 1, 0], sizes = [16, 16, 4], strides = [1, 1, 1]} : vector<16x18x4xf32> to vector<16x16x4xf32>
    %14 = vector.extract_strided_slice %5 {offsets = [0, 2, 0], sizes = [16, 16, 4], strides = [1, 1, 1]} : vector<16x18x4xf32> to vector<16x16x4xf32>
    %15 = tpu.concatenate %6, %7, %8, %9, %10, %11, %12, %13, %14 in 2 : vector<16x16x4xf32>, vector<16x16x4xf32>, vector<16x16x4xf32>, vector<16x16x4xf32>, vector<16x16x4xf32>, vector<16x16x4xf32>, vector<16x16x4xf32>, vector<16x16x4xf32>, vector<16x16x4xf32> -> vector<16x16x36xf32>
    %16 = vector.shape_cast %15 : vector<16x16x36xf32> to vector<256x36xf32>
    %c0_11 = arith.constant 0 : index
    %c0_12 = arith.constant 0 : index
    %17 = vector.load %arg5[%c0_11, %c0_12] : memref<36x128xf32, #tpu.memory_space<vmem>>, vector<36x128xf32>
    %cst = arith.constant dense<0.000000e+00> : vector<256x128xf32>
    %18 = tpu.matmul %16, %17, %cst {dimension_numbers = #tpu.dot_dimension_numbers<[1], [0], [0], [1], [0, 0, 1, 1], [], []>} : vector<256x36xf32>, vector<36x128xf32>, vector<256x128xf32> -> vector<256x128xf32>
    %c0_13 = arith.constant 0 : index
    %c0_14 = arith.constant 0 : index
    %19 = vector.load %arg6[%c0_13, %c0_14] : memref<1x128xf32, #tpu.memory_space<vmem>>, vector<1x128xf32>
    %20 = vector.broadcast %19 : vector<1x128xf32> to vector<256x128xf32>
    %21 = arith.mulf %18, %20 : vector<256x128xf32>
    %c0_15 = arith.constant 0 : index
    %c0_16 = arith.constant 0 : index
    %22 = vector.load %arg7[%c0_15, %c0_16] : memref<1x128xf32, #tpu.memory_space<vmem>>, vector<1x128xf32>
    %23 = vector.broadcast %22 : vector<1x128xf32> to vector<256x128xf32>
    %24 = arith.addf %21, %23 : vector<256x128xf32>
    %cst_17 = arith.constant 0.000000e+00 : f32
    %25 = vector.broadcast %cst_17 : f32 to vector<256x128xf32>
    %26 = arith.cmpf ogt, %24, %25 : vector<256x128xf32>
    %c0_18 = arith.constant 0 : index
    %c0_19 = arith.constant 0 : index
    %27 = vector.load %arg8[%c0_18, %c0_19] : memref<1x128xf32, #tpu.memory_space<vmem>>, vector<1x128xf32>
    %28 = vector.broadcast %27 : vector<1x128xf32> to vector<256x128xf32>
    %29 = arith.mulf %28, %24 : vector<256x128xf32>
    %30 = arith.select %26, %24, %29 : vector<256x128xi1>, vector<256x128xf32>
    %31 = vector.extract_strided_slice %30 {offsets = [0, 0], sizes = [256, 8], strides = [1, 1]} : vector<256x128xf32> to vector<256x8xf32>
    %32 = vector.shape_cast %31 : vector<256x8xf32> to vector<1x16x16x8xf32>
    %c0_20 = arith.constant 0 : index
    %c0_21 = arith.constant 0 : index
    %c0_22 = arith.constant 0 : index
    %c0_23 = arith.constant 0 : index
    %33 = vector.load %arg9[%c0_20, %c0_21, %c0_22, %c0_23] : memref<1x16x16x8xf32, #tpu.memory_space<vmem>>, vector<1x16x16x8xf32>
    tpu.vector_store %arg9[%c0_20, %c0_21, %c0_22, %c0_23], %32 {strides = array<i32>} : memref<1x16x16x8xf32, #tpu.memory_space<vmem>>, vector<1x16x16x8xf32>,
    return
  }
  func.func @transform_0(%arg0: i32, %arg1: i32) -> (i32, i32, i32, i32) {
    %c0_i32 = arith.constant 0 : i32
    %c0_i32_0 = arith.constant 0 : i32
    %c0_i32_1 = arith.constant 0 : i32
    return %arg0, %arg1, %c0_i32, %c0_i32_0 : i32, i32, i32, i32
  }
  func.func @transform_1(%arg0: i32, %arg1: i32) -> (i32, i32, i32, i32) {
    %c0_i32 = arith.constant 0 : i32
    %c0_i32_0 = arith.constant 0 : i32
    %c0_i32_1 = arith.constant 0 : i32
    return %arg0, %arg1, %c0_i32, %c0_i32_0 : i32, i32, i32, i32
  }
  func.func @transform_2(%arg0: i32, %arg1: i32) -> (i32, i32, i32, i32) {
    %c0_i32 = arith.constant 0 : i32
    %c0_i32_0 = arith.constant 0 : i32
    %c0_i32_1 = arith.constant 0 : i32
    return %arg0, %arg1, %c0_i32, %c0_i32_0 : i32, i32, i32, i32
  }
  func.func @transform_3(%arg0: i32, %arg1: i32) -> (i32, i32) {
    %c0_i32 = arith.constant 0 : i32
    %c0_i32_0 = arith.constant 0 : i32
    %c0_i32_1 = arith.constant 0 : i32
    return %c0_i32, %c0_i32_0 : i32, i32
  }
  func.func @transform_4(%arg0: i32, %arg1: i32) -> (i32, i32) {
    %c0_i32 = arith.constant 0 : i32
    %c0_i32_0 = arith.constant 0 : i32
    %c0_i32_1 = arith.constant 0 : i32
    return %c0_i32, %c0_i32_0 : i32, i32
  }
  func.func @transform_5(%arg0: i32, %arg1: i32) -> (i32, i32) {
    %c0_i32 = arith.constant 0 : i32
    %c0_i32_0 = arith.constant 0 : i32
    %c0_i32_1 = arith.constant 0 : i32
    return %c0_i32, %c0_i32_0 : i32, i32
  }
  func.func @transform_6(%arg0: i32, %arg1: i32) -> (i32, i32) {
    %c0_i32 = arith.constant 0 : i32
    %c0_i32_0 = arith.constant 0 : i32
    %c0_i32_1 = arith.constant 0 : i32
    return %c0_i32, %c0_i32_0 : i32, i32
  }
  func.func @transform_7(%arg0: i32, %arg1: i32) -> (i32, i32, i32, i32) {
    %c0_i32 = arith.constant 0 : i32
    %c0_i32_0 = arith.constant 0 : i32
    %c0_i32_1 = arith.constant 0 : i32
    return %arg0, %arg1, %c0_i32, %c0_i32_0 : i32, i32, i32, i32
  }
}

module attributes {stable_mosaic.version = 11 : i64} {
  func.func @_stats_kernel(%arg0: i32, %arg1: i32, %arg2: memref<1x16x18x4xf32, #tpu.memory_space<vmem>>, %arg3: memref<1x16x18x4xf32, #tpu.memory_space<vmem>>, %arg4: memref<1x16x18x4xf32, #tpu.memory_space<vmem>>, %arg5: memref<36x128xf32, #tpu.memory_space<vmem>>, %arg6: memref<1x1x128xf32, #tpu.memory_space<vmem>>, %arg7: memref<1x1x128xf32, #tpu.memory_space<vmem>>) attributes {dimension_semantics = [#tpu.dimension_semantics<parallel>, #tpu.dimension_semantics<arbitrary>], iteration_bounds = array<i64: 2, 1>, scalar_prefetch = 0 : i64, scratch_operands = 0 : i64, tpu.core_type = #tpu.core_type<tc>, window_params = [{transform_indices = @transform_0, window_bounds = array<i64: 1, 16, 18, 4>}, {transform_indices = @transform_1, window_bounds = array<i64: 1, 16, 18, 4>}, {transform_indices = @transform_2, window_bounds = array<i64: 1, 16, 18, 4>}, {pipeline_mode = #tpu.pipeline_mode<synchronous>, transform_indices = @transform_3, window_bounds = array<i64: 36, 128>}, {transform_indices = @transform_4, window_bounds = array<i64: 1, 1, 128>}, {transform_indices = @transform_5, window_bounds = array<i64: 1, 1, 128>}]} {
    %c0 = arith.constant 0 : index
    %c0_0 = arith.constant 0 : index
    %c0_1 = arith.constant 0 : index
    %c0_2 = arith.constant 0 : index
    %0 = vector.load %arg2[%c0, %c0_0, %c0_1, %c0_2] : memref<1x16x18x4xf32, #tpu.memory_space<vmem>>, vector<1x16x18x4xf32>
    %1 = vector.shape_cast %0 : vector<1x16x18x4xf32> to vector<16x18x4xf32>
    %c0_3 = arith.constant 0 : index
    %c0_4 = arith.constant 0 : index
    %c0_5 = arith.constant 0 : index
    %c0_6 = arith.constant 0 : index
    %2 = vector.load %arg3[%c0_3, %c0_4, %c0_5, %c0_6] : memref<1x16x18x4xf32, #tpu.memory_space<vmem>>, vector<1x16x18x4xf32>
    %3 = vector.shape_cast %2 : vector<1x16x18x4xf32> to vector<16x18x4xf32>
    %c0_7 = arith.constant 0 : index
    %c0_8 = arith.constant 0 : index
    %c0_9 = arith.constant 0 : index
    %c0_10 = arith.constant 0 : index
    %4 = vector.load %arg4[%c0_7, %c0_8, %c0_9, %c0_10] : memref<1x16x18x4xf32, #tpu.memory_space<vmem>>, vector<1x16x18x4xf32>
    %5 = vector.shape_cast %4 : vector<1x16x18x4xf32> to vector<16x18x4xf32>
    %6 = vector.extract_strided_slice %1 {offsets = [0, 0, 0], sizes = [16, 16, 4], strides = [1, 1, 1]} : vector<16x18x4xf32> to vector<16x16x4xf32>
    %7 = vector.extract_strided_slice %1 {offsets = [0, 1, 0], sizes = [16, 16, 4], strides = [1, 1, 1]} : vector<16x18x4xf32> to vector<16x16x4xf32>
    %8 = vector.extract_strided_slice %1 {offsets = [0, 2, 0], sizes = [16, 16, 4], strides = [1, 1, 1]} : vector<16x18x4xf32> to vector<16x16x4xf32>
    %9 = vector.extract_strided_slice %3 {offsets = [0, 0, 0], sizes = [16, 16, 4], strides = [1, 1, 1]} : vector<16x18x4xf32> to vector<16x16x4xf32>
    %10 = vector.extract_strided_slice %3 {offsets = [0, 1, 0], sizes = [16, 16, 4], strides = [1, 1, 1]} : vector<16x18x4xf32> to vector<16x16x4xf32>
    %11 = vector.extract_strided_slice %3 {offsets = [0, 2, 0], sizes = [16, 16, 4], strides = [1, 1, 1]} : vector<16x18x4xf32> to vector<16x16x4xf32>
    %12 = vector.extract_strided_slice %5 {offsets = [0, 0, 0], sizes = [16, 16, 4], strides = [1, 1, 1]} : vector<16x18x4xf32> to vector<16x16x4xf32>
    %13 = vector.extract_strided_slice %5 {offsets = [0, 1, 0], sizes = [16, 16, 4], strides = [1, 1, 1]} : vector<16x18x4xf32> to vector<16x16x4xf32>
    %14 = vector.extract_strided_slice %5 {offsets = [0, 2, 0], sizes = [16, 16, 4], strides = [1, 1, 1]} : vector<16x18x4xf32> to vector<16x16x4xf32>
    %15 = tpu.concatenate %6, %7, %8, %9, %10, %11, %12, %13, %14 in 2 : vector<16x16x4xf32>, vector<16x16x4xf32>, vector<16x16x4xf32>, vector<16x16x4xf32>, vector<16x16x4xf32>, vector<16x16x4xf32>, vector<16x16x4xf32>, vector<16x16x4xf32>, vector<16x16x4xf32> -> vector<16x16x36xf32>
    %16 = vector.shape_cast %15 : vector<16x16x36xf32> to vector<256x36xf32>
    %c0_11 = arith.constant 0 : index
    %c0_12 = arith.constant 0 : index
    %17 = vector.load %arg5[%c0_11, %c0_12] : memref<36x128xf32, #tpu.memory_space<vmem>>, vector<36x128xf32>
    %cst = arith.constant dense<0.000000e+00> : vector<256x128xf32>
    %18 = tpu.matmul %16, %17, %cst {dimension_numbers = #tpu.dot_dimension_numbers<[1], [0], [0], [1], [0, 0, 1, 1], [], []>} : vector<256x36xf32>, vector<36x128xf32>, vector<256x128xf32> -> vector<256x128xf32>
    %c0_i32 = arith.constant 0 : i32
    %19 = arith.cmpi eq, %arg1, %c0_i32 : i32
    %20 = arith.extui %19 : i1 to i32
    %c0_i32_13 = arith.constant 0 : i32
    %21 = arith.cmpi ne, %20, %c0_i32_13 : i32
    scf.if %21 {
      %cst_28 = arith.constant 0.000000e+00 : f32
      %35 = vector.broadcast %cst_28 : f32 to vector<1x1x128xf32>
      %c0_29 = arith.constant 0 : index
      %c0_30 = arith.constant 0 : index
      %c0_31 = arith.constant 0 : index
      %36 = vector.load %arg6[%c0_29, %c0_30, %c0_31] : memref<1x1x128xf32, #tpu.memory_space<vmem>>, vector<1x1x128xf32>
      tpu.vector_store %arg6[%c0_29, %c0_30, %c0_31], %35 {strides = array<i32>} : memref<1x1x128xf32, #tpu.memory_space<vmem>>, vector<1x1x128xf32>,
      %cst_32 = arith.constant 0.000000e+00 : f32
      %37 = vector.broadcast %cst_32 : f32 to vector<1x1x128xf32>
      %c0_33 = arith.constant 0 : index
      %c0_34 = arith.constant 0 : index
      %c0_35 = arith.constant 0 : index
      %38 = vector.load %arg7[%c0_33, %c0_34, %c0_35] : memref<1x1x128xf32, #tpu.memory_space<vmem>>, vector<1x1x128xf32>
      tpu.vector_store %arg7[%c0_33, %c0_34, %c0_35], %37 {strides = array<i32>} : memref<1x1x128xf32, #tpu.memory_space<vmem>>, vector<1x1x128xf32>,
    } else {
    }
    %c0_14 = arith.constant 0 : index
    %c0_15 = arith.constant 0 : index
    %c0_16 = arith.constant 0 : index
    %22 = vector.load %arg6[%c0_14, %c0_15, %c0_16] : memref<1x1x128xf32, #tpu.memory_space<vmem>>, vector<1x1x128xf32>
    %cst_17 = arith.constant dense<0.000000e+00> : vector<128xf32>
    %23 = vector.multi_reduction <add>, %18, %cst_17 [0] : vector<256x128xf32> to vector<128xf32>
    %24 = vector.shape_cast %23 : vector<128xf32> to vector<1x128xf32>
    %25 = vector.shape_cast %24 : vector<1x128xf32> to vector<1x1x128xf32>
    %26 = arith.addf %22, %25 : vector<1x1x128xf32>
    %c0_18 = arith.constant 0 : index
    %c0_19 = arith.constant 0 : index
    %c0_20 = arith.constant 0 : index
    %27 = vector.load %arg6[%c0_18, %c0_19, %c0_20] : memref<1x1x128xf32, #tpu.memory_space<vmem>>, vector<1x1x128xf32>
    tpu.vector_store %arg6[%c0_18, %c0_19, %c0_20], %26 {strides = array<i32>} : memref<1x1x128xf32, #tpu.memory_space<vmem>>, vector<1x1x128xf32>,
    %c0_21 = arith.constant 0 : index
    %c0_22 = arith.constant 0 : index
    %c0_23 = arith.constant 0 : index
    %28 = vector.load %arg7[%c0_21, %c0_22, %c0_23] : memref<1x1x128xf32, #tpu.memory_space<vmem>>, vector<1x1x128xf32>
    %29 = arith.mulf %18, %18 : vector<256x128xf32>
    %cst_24 = arith.constant dense<0.000000e+00> : vector<128xf32>
    %30 = vector.multi_reduction <add>, %29, %cst_24 [0] : vector<256x128xf32> to vector<128xf32>
    %31 = vector.shape_cast %30 : vector<128xf32> to vector<1x128xf32>
    %32 = vector.shape_cast %31 : vector<1x128xf32> to vector<1x1x128xf32>
    %33 = arith.addf %28, %32 : vector<1x1x128xf32>
    %c0_25 = arith.constant 0 : index
    %c0_26 = arith.constant 0 : index
    %c0_27 = arith.constant 0 : index
    %34 = vector.load %arg7[%c0_25, %c0_26, %c0_27] : memref<1x1x128xf32, #tpu.memory_space<vmem>>, vector<1x1x128xf32>
    tpu.vector_store %arg7[%c0_25, %c0_26, %c0_27], %33 {strides = array<i32>} : memref<1x1x128xf32, #tpu.memory_space<vmem>>, vector<1x1x128xf32>,
    return
  }
  func.func @transform_0(%arg0: i32, %arg1: i32) -> (i32, i32, i32, i32) {
    %c0_i32 = arith.constant 0 : i32
    %c0_i32_0 = arith.constant 0 : i32
    %c0_i32_1 = arith.constant 0 : i32
    return %arg0, %arg1, %c0_i32, %c0_i32_0 : i32, i32, i32, i32
  }
  func.func @transform_1(%arg0: i32, %arg1: i32) -> (i32, i32, i32, i32) {
    %c0_i32 = arith.constant 0 : i32
    %c0_i32_0 = arith.constant 0 : i32
    %c0_i32_1 = arith.constant 0 : i32
    return %arg0, %arg1, %c0_i32, %c0_i32_0 : i32, i32, i32, i32
  }
  func.func @transform_2(%arg0: i32, %arg1: i32) -> (i32, i32, i32, i32) {
    %c0_i32 = arith.constant 0 : i32
    %c0_i32_0 = arith.constant 0 : i32
    %c0_i32_1 = arith.constant 0 : i32
    return %arg0, %arg1, %c0_i32, %c0_i32_0 : i32, i32, i32, i32
  }
  func.func @transform_3(%arg0: i32, %arg1: i32) -> (i32, i32) {
    %c0_i32 = arith.constant 0 : i32
    %c0_i32_0 = arith.constant 0 : i32
    %c0_i32_1 = arith.constant 0 : i32
    return %c0_i32, %c0_i32_0 : i32, i32
  }
  func.func @transform_4(%arg0: i32, %arg1: i32) -> (i32, i32, i32) {
    %c0_i32 = arith.constant 0 : i32
    %c0_i32_0 = arith.constant 0 : i32
    %c0_i32_1 = arith.constant 0 : i32
    return %arg0, %c0_i32, %c0_i32_0 : i32, i32, i32
  }
  func.func @transform_5(%arg0: i32, %arg1: i32) -> (i32, i32, i32) {
    %c0_i32 = arith.constant 0 : i32
    %c0_i32_0 = arith.constant 0 : i32
    %c0_i32_1 = arith.constant 0 : i32
    return %arg0, %c0_i32, %c0_i32_0 : i32, i32, i32
  }
}

</mosaic_0001>

<bundles_post_ra>
// kernel: single_conv.3
= control target key start
LH: loop header
LB: loop body
LE: loop exit
PB: predicated region body
PF: predicated region fallthrough
CT: control target
= control target key end

     0   :  { %s3194_s24 = smov 0   ;;  %s3196_s25 = smov 0   ;;  %s5458_s0 = inlined_call_operand.vmem [shape: f32[2,16,18,4], index: 0, kind: input, shape index: {}]   ;;  %s5459_s1 = inlined_call_operand.vmem [shape: f32[2,16,18,4], index: 1, kind: input, shape index: {}]   ;;  %s5460_s2 = inlined_call_operand.vmem [shape: f32[2,16,18,4], index: 2, kind: input, shape index: {}]   ;;  %s5461_s3 = inlined_call_operand.vmem [shape: f32[36,128], index: 3, kind: input, shape index: {}]   ;;  %s5462_s4 = inlined_call_operand.vmem [shape: f32[1,128], index: 4, kind: input, shape index: {}]   ;;  %s5463_s5 = inlined_call_operand.vmem [shape: f32[1,128], index: 5, kind: input, shape index: {}]   ;;  %s5464_s6 = inlined_call_operand.vmem [shape: f32[1,128], index: 6, kind: input, shape index: {}]   ;;  %s5465_s7 = inlined_call_operand.vmem [shape: f32[2,16,16,8], index: 7, kind: output, shape index: {}]  }
   0x1   :  { %s3198_s26 = smov 0  }
   0x2 LB: > { %s29_s27 = sadd.s32 1, %s3140_s25  ;;  %p2889_p0 = scmp.ge.s32.totalorder %s3144_s26, 1  ;;  %s3144_s26 = sphi %s3198_s26, %s17_s26   ;;  %s3140_s25 = sphi %s3196_s25, %s5572_s25   ;;  %s3136_s24 = sphi %s3194_s24, %s5571_s24  }
   0x3   : > { %p31_p1 = scmp.ge.s32.totalorder %s29_s27, 2  ;;  %p295_p2 = scmp.lt.s32.totalorder %s3144_s26, 3 }
   0x5   : > { %s5574_s27 = smov (%p31_p1, %s29_s27), 0  ;;  %p296_p3 = pnand %p2889_p0, %p295_p2 }
   0x7   : > { %299 = sbr.rel (%p296_p3) target bundleno = 870 (0x366), region = 48 }
   0xe   : > { %p358_p4 = scmp.lt.s32.totalorder %s3136_s24, 1  ;;  %vm593_vm0 = vcmask 1046528   ;;  %s3146_s9 = smov 4   ;;  %vm770_vm1 = vcmask 1045504   ;;  %vm2305_vm2 = vcmask 1043456   ;;  %vm1939_vm3 = vcmask 31744  }
   0xf   : > { %s3147_s10 = smov 8   ;;  %s3148_s14 = smov 12   ;;  %vm1972_vm4 = vcmask 64512   ;;  %vm2005_vm5 = vcmask 97280   ;;  %vm2038_vm6 = vcmask 130048   ;;  %vm2071_vm7 = vcmask 162816  }
  0x10   : > { %s5576_s24 = smov (!%p358_p4, %s3136_s24), 1  ;;  %s3149_s15 = smov 16   ;;  %vm2104_vm8 = vcmask 195584   ;;  %vm2137_vm9 = vcmask 228352   ;;  %vm2170_vm10 = vcmask 261120   ;;  %vm2208_vm11 = vcmask 293888  }
  0x11   : > { %s3215_s28 = smul.u32 384, %s5576_s24  ;;  %s3150_s16 = smov 20  }
  0x12   : > { %s3151_s20 = smov 24   ;;  %s3152_s29 = smov 28  }
  0x13   : > { %s3221_s8 = scalar_lea.vmem %s5458_s0, %s3215_s28  ;;  %s3603_s13 = scalar_lea.vmem %s5459_s1, %s3215_s28 }
  0x14   : > { %v3224_v0 = vld [vmem:[%s3221_s8 + $0x18] sm:$0xff]  ;;  %v3227_v1 = vld [vmem:[%s3221_s8 + $0x20] sm:$0xff]  ;;  %v3235_v5 = vld [vmem:[%s3221_s8 + $0x8] sm:$0xff]  ;;  %s3853_s19 = scalar_lea.vmem %s5460_s2, %s3215_s28  ;;  %s3153_s17 = smov 32  }
  0x15   : > { %v3230_v2 = vld [vmem:[%s3221_s8] sm:$0xff]  ;;  %v599_v3 = vrot.slane %v3224_v0, 1  ;;  %v600_v4 = vrot.slane %v3227_v1, 1  ;;  %v3239_v7 = vld [vmem:[%s3221_s8 + $0x28] sm:$0x3]  ;;  %v595_v8 = vrot.slane %v3235_v5, 1 }
  0x16   : > { %v594_v6 = vrot.slane %v3230_v2, 1  ;;  %v602_v9 = vrot.slane %v3239_v7, 1  ;;  %v3244_v10 = vld [vmem:[%s3221_s8 + $0x10] sm:$0x3]  ;;  %v3247_v11 = vld [vmem:[%s3221_s8 + $0x38] sm:$0xff]  ;;  %v3272_v24 = vld [vmem:[%s3221_s8 + $0x48] sm:$0xff] }
  0x17   : > { %v601_v12 = vsel %vm593_vm0, %v599_v3, %v600_v4  ;;  %v597_v13 = vrot.slane %v3244_v10, 1  ;;  %v3252_v14 = vld [vmem:[%s3221_s8 + $0x40] sm:$0x3]  ;;  %v3255_v15 = vld [vmem:[%s3221_s8 + $0x30] sm:$0xff]  ;;  %v605_v18 = vrot.slane %v3247_v11, 1  ;;  %v609_v29 = vrot.slane %v3272_v24, 1 }
  0x18   : > { %678 = vrot.lane.b32.xlu1 %v601_v12, %s3146_s9  ;;  %v596_v16 = vsel %vm593_vm0, %v594_v6, %v595_v8  ;;  %v603_v17 = vsel %vm593_vm0, %v600_v4, %v602_v9  ;;  %v607_v19 = vrot.slane %v3252_v14, 1  ;;  %v604_v21 = vrot.slane %v3255_v15, 1  ;;  %v3266_v22 = vld [vmem:[%s3221_s8 + $0x50] sm:$0xff]  ;;  %v3269_v23 = vld [vmem:[%s3221_s8 + $0x58] sm:$0x3]  ;;  %v3282_v30 = vld [vmem:[%s3221_s8 + $0x68] sm:$0xff] }
  0x19   : > { %674 = vrot.lane.b32.xlu0 %v596_v16, %s3146_s9  ;;  %v598_v20 = vsel %vm593_vm0, %v595_v8, %v597_v13  ;;  %v610_v26 = vrot.slane %v3266_v22, 1  ;;  %v612_v27 = vrot.slane %v3269_v23, 1  ;;  %v3285_v31 = vld [vmem:[%s3221_s8 + $0x70] sm:$0x3]  ;;  %v3288_v32 = vld [vmem:[%s3221_s8 + $0x60] sm:$0xff]  ;;  %v615_v34 = vrot.slane %v3282_v30, 1 }
  0x1a   : > { %v608_v25 = vsel %vm593_vm0, %v605_v18, %v607_v19  ;;  %v606_v28 = vsel %vm593_vm0, %v604_v21, %v605_v18  ;;  %v617_v35 = vrot.slane %v3285_v31, 1  ;;  %v614_v37 = vrot.slane %v3288_v32, 1  ;;  %v3298_v38 = vld [vmem:[%s3221_s8 + $0x80] sm:$0xff]  ;;  %v3301_v39 = vld [vmem:[%s3221_s8 + $0x88] sm:$0x3]  ;;  %v3304_v40 = vld [vmem:[%s3221_s8 + $0x78] sm:$0xff] }
  0x1b   : > { %v613_v33 = vsel %vm593_vm0, %v610_v26, %v612_v27  ;;  %v611_v36 = vsel %vm593_vm0, %v609_v29, %v610_v26  ;;  %v620_v42 = vrot.slane %v3298_v38, 1  ;;  %v622_v43 = vrot.slane %v3301_v39, 1  ;;  %v3314_v46 = vld [vmem:[%s3221_s8 + $0x98] sm:$0xff]  ;;  %v3317_v47 = vld [vmem:[%s3221_s8 + $0xa0] sm:$0x3]  ;;  %v3320_v48 = vld [vmem:[%s3221_s8 + $0x90] sm:$0xff] }
  0x1c   : > { %680 = vrot.lane.b32.xlu1 %v603_v17, %s3146_s9  ;;  %v618_v41 = vsel %vm593_vm0, %v615_v34, %v617_v35  ;;  %v616_v44 = vsel %vm593_vm0, %v614_v37, %v615_v34  ;;  %v619_v45 = vrot.slane %v3304_v40, 1  ;;  %v625_v50 = vrot.slane %v3314_v46, 1  ;;  %v3330_v54 = vld [vmem:[%s3221_s8 + $0xb0] sm:$0xff]  ;;  %v3333_v55 = vld [vmem:[%s3221_s8 + $0xb8] sm:$0x3]  ;;  %v3336_v56 = vld [vmem:[%s3221_s8 + $0xa8] sm:$0xff] }
  0x1d   : > { %676 = vrot.lane.b32.xlu0 %v598_v20, %s3146_s9  ;;  %v623_v49 = vsel %vm593_vm0, %v620_v42, %v622_v43  ;;  %v627_v51 = vrot.slane %v3317_v47, 1  ;;  %v624_v53 = vrot.slane %v3320_v48, 1  ;;  %v630_v58 = vrot.slane %v3330_v54, 1  ;;  %v3346_v62 = vld [vmem:[%s3221_s8 + $0xc8] sm:$0xff]  ;;  %v3349_v63 = vld [vmem:[%s3221_s8 + $0xd0] sm:$0x3] }
  0x1e   : > { %v621_v52 = vsel %vm593_vm0, %v619_v45, %v620_v42  ;;  %v632_v59 = vrot.slane %v3333_v55, 1  ;;  %v629_v61 = vrot.slane %v3336_v56, 1  ;;  %v3352_v3 = vld [vmem:[%s3221_s8 + $0xc0] sm:$0xff]  ;;  %v635_v6 = vrot.slane %v3346_v62, 1  ;;  %v3365_v16 = vld [vmem:[%s3221_s8 + $0xe8] sm:$0x3] }
  0x1f   : > { %v628_v57 = vsel %vm593_vm0, %v625_v50, %v627_v51  ;;  %v626_v60 = vsel %vm593_vm0, %v624_v53, %v625_v50  ;;  %v637_v8 = vrot.slane %v3349_v63, 1  ;;  %v634_v12 = vrot.slane %v3352_v3, 1  ;;  %v3362_v13 = vld [vmem:[%s3221_s8 + $0xe0] sm:$0xff]  ;;  %v3368_v17 = vld [vmem:[%s3221_s8 + $0xd8] sm:$0xff]  ;;  %v3394_v37 = vld [vmem:[%s3221_s8 + $0x110] sm:$0xff]  ;;  %s2933_s18 = sshll.u32 %s5576_s24, 8 }
  0x20   : > { %684 = vrot.lane.b32.xlu1 %v608_v25, %s3146_s9  ;;  %v633_v4 = vsel %vm593_vm0, %v630_v58, %v632_v59  ;;  %v631_v9 = vsel %vm593_vm0, %v629_v61, %v630_v58  ;;  %v640_v19 = vrot.slane %v3362_v13, 1  ;;  %v642_v20 = vrot.slane %v3365_v16, 1  ;;  %v3378_v26 = vld [vmem:[%s3221_s8 + $0xf8] sm:$0xff]  ;;  %v3381_v27 = vld [vmem:[%s3221_s8 + $0x100] sm:$0x3]  ;;  %v3400_v42 = vld [vmem:[%s3221_s8 + $0x108] sm:$0xff]  ;;  %s5216_s22 = scalar_lea.vmem %s5465_s7, %s2933_s18 }
  0x21   : > { %682 = vrot.lane.b32.xlu0 %v606_v28, %s3146_s9  ;;  %v638_v18 = vsel %vm593_vm0, %v635_v6, %v637_v8  ;;  %v636_v21 = vsel %vm593_vm0, %v634_v12, %v635_v6  ;;  %v639_v25 = vrot.slane %v3368_v17, 1  ;;  %v3384_v28 = vld [vmem:[%s3221_s8 + $0xf0] sm:$0xff]  ;;  %v647_v34 = vrot.slane %v3381_v27, 1  ;;  %v3410_v51 = vld [vmem:[%s3221_s8 + $0x128] sm:$0xff]  ;;  %v3416_v53 = vld [vmem:[%s3221_s8 + $0x120] sm:$0xff] }
  0x22   : > { %v643_v29 = vsel %vm593_vm0, %v640_v19, %v642_v20  ;;  %v649_v50 = vrot.slane %v3400_v42, 1  ;;  %v655_v58 = vrot.slane %v3410_v51, 1  ;;  %v654_v61 = vrot.slane %v3416_v53, 1  ;;  %v3429_v6 = vld [vmem:[%s3221_s8 + $0x148] sm:$0x3]  ;;  %v3432_v8 = vld [vmem:[%s3221_s8 + $0x138] sm:$0xff] }
  0x23   : > { %v641_v35 = vsel %vm593_vm0, %v639_v25, %v640_v19  ;;  %v659_v20 = vrot.slane %v3432_v8, 1  ;;  %v3445_v25 = vld [vmem:[%s3221_s8 + $0x160] sm:$0x3] }
  0x24   : > { %688 = vrot.lane.b32.xlu1 %v613_v33, %s3146_s9  ;;  %v645_v33 = vrot.slane %v3378_v26, 1  ;;  %v656_v19 = vsel %vm593_vm0, %v654_v61, %v655_v58 }
  0x25   : > { %686 = vrot.lane.b32.xlu0 %v611_v36, %s3146_s9  ;;  %v644_v36 = vrot.slane %v3384_v28, 1 }
  0x26   : > { %v648_v43 = vsel %vm593_vm0, %v645_v33, %v647_v34 }
  0x28   : > { %692 = vrot.lane.b32.xlu1 %v618_v41, %s3146_s9  ;;  %v3397_v41 = vld [vmem:[%s3221_s8 + $0x118] sm:$0x3] }
  0x29   : > { %690 = vrot.lane.b32.xlu0 %v616_v44, %s3146_s9  ;;  %v650_v44 = vrot.slane %v3394_v37, 1  ;;  %v652_v45 = vrot.slane %v3397_v41, 1 }
  0x2c   : > { %696 = vrot.lane.b32.xlu1 %v623_v49, %s3146_s9  ;;  %v646_v49 = vsel %vm593_vm0, %v644_v36, %v645_v33 }
  0x2d   : > { %694 = vrot.lane.b32.xlu0 %v621_v52, %s3146_s9  ;;  %v3413_v52 = vld [vmem:[%s3221_s8 + $0x130] sm:$0x3] }
  0x2e   : > { %v657_v59 = vrot.slane %v3413_v52, 1 }
  0x30   : > { %700 = vrot.lane.b32.xlu1 %v628_v57, %s3146_s9  ;;  %v653_v57 = vsel %vm593_vm0, %v650_v44, %v652_v45  ;;  %v3461_v45 = vld [vmem:[%s3221_s8 + $0x178] sm:$0x3] }
  0x31   : > { %698 = vrot.lane.b32.xlu0 %v626_v60, %s3146_s9  ;;  %v651_v60 = vsel %vm593_vm0, %v649_v50, %v650_v44  ;;  %v3458_v44 = vld [vmem:[%s3221_s8 + $0x170] sm:$0xff] }
  0x34   : > { %704 = vrot.lane.b32.xlu1 %v633_v4, %s3146_s9  ;;  %v3426_v4 = vld [vmem:[%s3221_s8 + $0x140] sm:$0xff] }
  0x35   : > { %702 = vrot.lane.b32.xlu0 %v631_v9, %s3146_s9  ;;  %v658_v9 = vsel %vm593_vm0, %v655_v58, %v657_v59  ;;  %v660_v12 = vrot.slane %v3426_v4, 1  ;;  %v672_v58 = vrot.slane %v3461_v45, 1 }
  0x37   : > { %v661_v36 = vsel %vm593_vm0, %v659_v20, %v660_v12 }
  0x38   : > { %708 = vrot.lane.b32.xlu1 %v638_v18, %s3146_s9  ;;  %v662_v18 = vrot.slane %v3429_v6, 1 }
  0x39   : > { %706 = vrot.lane.b32.xlu0 %v636_v21, %s3146_s9  ;;  %v3442_v21 = vld [vmem:[%s3221_s8 + $0x158] sm:$0xff] }
  0x3a   : > { %v663_v33 = vsel %vm593_vm0, %v660_v12, %v662_v18  ;;  %v665_v34 = vrot.slane %v3442_v21, 1  ;;  %v774_v12 = vrot.slane %v3244_v10, 2  ;;  %v782_v10 = vrot.slane %v3247_v11, 2 }
  0x3b   : > { %v786_v11 = vrot.slane %v3272_v24, 2  ;;  %v797_v24 = vrot.slane %v3298_v38, 2  ;;  %v801_v38 = vrot.slane %v3320_v48, 2  ;;  %v812_v48 = vrot.slane %v3346_v62, 2 }
  0x3c   : > { %712 = vrot.lane.b32.xlu1 %v643_v29, %s3146_s9  ;;  %v3448_v29 = vld [vmem:[%s3221_s8 + $0x150] sm:$0xff]  ;;  %v816_v62 = vrot.slane %v3368_v17, 2  ;;  %v827_v17 = vrot.slane %v3394_v37, 2  ;;  %v831_v37 = vrot.slane %v3416_v53, 2  ;;  %v842_v53 = vrot.slane %v3442_v21, 2 }
  0x3d   : > { %710 = vrot.lane.b32.xlu0 %v641_v35, %s3146_s9  ;;  %v667_v35 = vrot.slane %v3445_v25, 1  ;;  %v849_v21 = vrot.slane %v3461_v45, 2 }
  0x3f   : > { %v668_v50 = vsel %vm593_vm0, %v665_v34, %v667_v35 }
  0x40   : > { %716 = vrot.lane.b32.xlu1 %v648_v43, %s3146_s9  ;;  %v664_v43 = vrot.slane %v3448_v29, 1 }
  0x41   : > { %714 = vrot.lane.b32.xlu0 %v646_v49, %s3146_s9  ;;  %v3464_v49 = vld [vmem:[%s3221_s8 + $0x168] sm:$0xff] }
  0x42   : > { %v666_v59 = vsel %vm593_vm0, %v664_v43, %v665_v34  ;;  %v779_v34 = vrot.slane %v3239_v7, 2  ;;  %v787_v7 = vrot.slane %v3266_v22, 2  ;;  %v791_v22 = vrot.slane %v3288_v32, 2 }
  0x43   : > { %v802_v32 = vrot.slane %v3314_v46, 2  ;;  %v806_v46 = vrot.slane %v3336_v56, 2  ;;  %v817_v56 = vrot.slane %v3362_v13, 2  ;;  %v821_v13 = vrot.slane %v3384_v28, 2 }
  0x44   : > { %720 = vrot.lane.b32.xlu1 %v653_v57, %s3146_s9  ;;  %v670_v57 = vrot.slane %v3458_v44, 1  ;;  %v832_v28 = vrot.slane %v3410_v51, 2  ;;  %v836_v51 = vrot.slane %v3432_v8, 2 }
  0x45   : > { %718 = vrot.lane.b32.xlu0 %v651_v60, %s3146_s9  ;;  %v669_v60 = vrot.slane %v3464_v49, 1 }
  0x46   : > { %v673_v61 = vsel %vm593_vm0, %v670_v57, %v672_v58  ;;  %v794_v58 = vrot.slane %v3285_v31, 2 }
  0x47   : > { %v671_v18 = vsel %vm593_vm0, %v669_v60, %v670_v57  ;;  %v799_v60 = vrot.slane %v3301_v39, 2 }
  0x48   : > { %724 = vrot.lane.b32.xlu1 %v658_v9, %s3146_s9  ;;  %v772_v9 = vrot.slane %v3235_v5, 2  ;;  %v776_v5 = vrot.slane %v3224_v0, 2 }
  0x49   : > { %722 = vrot.lane.b32.xlu0 %v656_v19, %s3146_s9  ;;  %v771_v19 = vrot.slane %v3230_v2, 2  ;;  %v800_v31 = vsel %vm770_vm1, %v797_v24, %v799_v60 }
  0x4a   : > { %v775_v20 = vsel %vm770_vm1, %v772_v9, %v774_v12 }
  0x4b   : > { %v773_v35 = vsel %vm770_vm1, %v771_v19, %v772_v9  ;;  %v804_v9 = vrot.slane %v3317_v47, 2  ;;  %v803_v19 = vsel %vm770_vm1, %v801_v38, %v802_v32  ;;  %v3643_v38 = vld [vmem:[%s3603_s13 + $0x30] sm:$0xff] }
  0x4c   : > { %728 = vrot.lane.b32.xlu1 %v663_v33, %s3146_s9  ;;  %v777_v33 = vrot.slane %v3227_v1, 2  ;;  %v781_v1 = vrot.slane %v3255_v15, 2  ;;  %v792_v15 = vrot.slane %v3282_v30, 2  ;;  %v796_v30 = vrot.slane %v3304_v40, 2 }
  0x4d   : > { %726 = vrot.lane.b32.xlu0 %v661_v36, %s3146_s9  ;;  %v784_v36 = vrot.slane %v3252_v14, 2  ;;  %v805_v39 = vsel %vm770_vm1, %v802_v32, %v804_v9  ;;  %v807_v40 = vrot.slane %v3330_v54, 2  ;;  %v811_v54 = vrot.slane %v3352_v3, 2  ;;  %v3638_v9 = vld [vmem:[%s3603_s13 + $0x38] sm:$0xff] }
  0x4e   : > { %v780_v2 = vsel %vm770_vm1, %v777_v33, %v779_v34  ;;  %v778_v43 = vsel %vm770_vm1, %v776_v5, %v777_v33  ;;  %v783_v57 = vsel %vm770_vm1, %v781_v1, %v782_v10  ;;  %v798_v12 = vsel %vm770_vm1, %v796_v30, %v797_v24  ;;  %v3615_v24 = vld [vmem:[%s3603_s13] sm:$0xff] }
  0x4f   : > { %v785_v0 = vsel %vm770_vm1, %v782_v10, %v784_v36  ;;  %v808_v33 = vsel %vm770_vm1, %v806_v46, %v807_v40  ;;  %v819_v34 = vrot.slane %v3365_v16, 2  ;;  %v822_v3 = vrot.slane %v3378_v26, 2 }
  0x50   : > { %732 = vrot.lane.b32.xlu1 %v668_v50, %s3146_s9  ;;  %v789_v50 = vrot.slane %v3269_v23, 2  ;;  %v795_v23 = vsel %vm770_vm1, %v792_v15, %v794_v58  ;;  %v824_v5 = vrot.slane %v3381_v27, 2  ;;  %v829_v10 = vrot.slane %v3397_v41, 2 }
  0x51   : > { %730 = vrot.lane.b32.xlu0 %v666_v59, %s3146_s9  ;;  %v788_v59 = vsel %vm770_vm1, %v786_v11, %v787_v7  ;;  %v823_v36 = vsel %vm770_vm1, %v821_v13, %v822_v3  ;;  %v826_v26 = vrot.slane %v3400_v42, 2  ;;  %v837_v42 = vrot.slane %v3426_v4, 2  ;;  %v470_v13 = vld [vmem:[%s3603_s13 + $0xa8] sm:$0xff] }
  0x52   : > { %v790_v14 = vsel %vm770_vm1, %v787_v7, %v789_v50  ;;  %v825_v16 = vsel %vm770_vm1, %v822_v3, %v824_v5  ;;  %v830_v27 = vsel %vm770_vm1, %v827_v17, %v829_v10  ;;  %v833_v7 = vsel %vm770_vm1, %v831_v37, %v832_v28  ;;  %v471_v5 = vld [vmem:[%s3603_s13 + $0xb0] sm:$0xff]  ;;  %v3732_v37 = vld [vmem:[%s3603_s13 + $0xf8] sm:$0xff] }
  0x53   : > { %v828_v1 = vsel %vm770_vm1, %v826_v26, %v827_v17  ;;  %v844_v50 = vrot.slane %v3445_v25, 2  ;;  %v838_v4 = vsel %vm770_vm1, %v836_v51, %v837_v42  ;;  %v846_v58 = vrot.slane %v3464_v49, 2  ;;  %v3610_v49 = vld [vmem:[%s3603_s13 + $0x8] sm:$0xff] }
  0x54   : > { %736 = vrot.lane.b32.xlu1 %v673_v61, %s3146_s9  ;;  %v793_v61 = vsel %vm770_vm1, %v791_v22, %v792_v15  ;;  %v3704_v17 = vld [vmem:[%s3603_s13 + $0xc8] sm:$0xff] }
  0x55   : > { %734 = vrot.lane.b32.xlu0 %v671_v18, %s3146_s9  ;;  %v809_v18 = vrot.slane %v3333_v55, 2  ;;  %v845_v8 = vsel %vm770_vm1, %v842_v53, %v844_v50  ;;  %v3760_v50 = vld [vmem:[%s3603_s13 + $0x128] sm:$0xff] }
  0x56   : > { %5500 = vst [vmem:[#allocation21_spill] sm:$0xff] %v3760_v50 }
  0x57   : > { %v810_v47 = vsel %vm770_vm1, %v807_v40, %v809_v18  ;;  %v3652_v40 = vld [vmem:[%s3603_s13 + $0x50] sm:$0xff] }
  0x58   : > { %853 = vrot.lane.b32.xlu1 %v775_v20, %s3147_s10  ;;  %v814_v20 = vrot.slane %v3349_v63, 2  ;;  %v820_v63 = vsel %vm770_vm1, %v817_v56, %v819_v34  ;;  %5485 = vst [vmem:[#allocation6_spill] sm:$0xff] %v3652_v40 }
  0x59   : > { %851 = vrot.lane.b32.xlu0 %v773_v35, %s3147_s10  ;;  %v813_v35 = vsel %vm770_vm1, %v811_v54, %v812_v48  ;;  %v465_v54 = vld [vmem:[%s3603_s13 + $0x80] sm:$0xff] }
  0x5a   : > { %v815_v55 = vsel %vm770_vm1, %v812_v48, %v814_v20  ;;  %v3671_v20 = vld [vmem:[%s3603_s13 + $0x60] sm:$0xff] }
  0x5b   : > { %5488 = vst [vmem:[#allocation9_spill] sm:$0xff] %v3671_v20 }
  0x5c   : > { %857 = vrot.lane.b32.xlu1 %v780_v2, %s3147_s10  ;;  %v818_v2 = vsel %vm770_vm1, %v816_v62, %v817_v56  ;;  %v464_v56 = vld [vmem:[%s3603_s13 + $0x78] sm:$0xff] }
  0x5d   : > { %855 = vrot.lane.b32.xlu0 %v778_v43, %s3147_s10  ;;  %v834_v43 = vrot.slane %v3413_v52, 2 }
  0x5f   : > { %v835_v41 = vsel %vm770_vm1, %v832_v28, %v834_v43  ;;  %v3723_v43 = vld [vmem:[%s3603_s13 + $0xd8] sm:$0xff] }
  0x60   : > { %861 = vrot.lane.b32.xlu1 %v785_v0, %s3147_s10  ;;  %v839_v0 = vrot.slane %v3429_v6, 2  ;;  %v841_v6 = vrot.slane %v3448_v29, 2 }
  0x61   : > { %859 = vrot.lane.b32.xlu0 %v783_v57, %s3147_s10 }
  0x62   : > { %v840_v52 = vsel %vm770_vm1, %v837_v42, %v839_v0  ;;  %v843_v15 = vsel %vm770_vm1, %v841_v6, %v842_v53  ;;  %v3737_v42 = vld [vmem:[%s3603_s13 + $0xf0] sm:$0xff]  ;;  %v3765_v6 = vld [vmem:[%s3603_s13 + $0x120] sm:$0xff] }
  0x63   : > { %5502 = vst [vmem:[#allocation23_spill] sm:$0xff] %v3765_v6 }
  0x64   : > { %865 = vrot.lane.b32.xlu1 %v790_v14, %s3147_s10  ;;  %v847_v14 = vrot.slane %v3458_v44, 2 }
  0x65   : > { %863 = vrot.lane.b32.xlu0 %v788_v59, %s3147_s10 }
  0x66   : > { %v850_v59 = vsel %vm770_vm1, %v847_v14, %v849_v21  ;;  %v848_v44 = vsel %vm770_vm1, %v846_v58, %v847_v14  ;;  %v489_v14 = vld [vmem:[%s3603_s13 + $0x140] sm:$0xff] }
  0x68   : > { %869 = vrot.lane.b32.xlu1 %v795_v23, %s3147_s10 }
  0x69   : > { %867 = vrot.lane.b32.xlu0 %v793_v61, %s3147_s10  ;;  %v3624_v61 = vld [vmem:[%s3603_s13 + $0x20] sm:$0xff] }
  0x6c   : > { %873 = vrot.lane.b32.xlu1 %v800_v31, %s3147_s10  ;;  %v3629_v31 = vld [vmem:[%s3603_s13 + $0x18] sm:$0xff] }
  0x6d   : > { %871 = vrot.lane.b32.xlu0 %v798_v12, %s3147_s10 }
  0x70   : > { %877 = vrot.lane.b32.xlu1 %v805_v39, %s3147_s10 }
  0x71   : > { %875 = vrot.lane.b32.xlu0 %v803_v19, %s3147_s10  ;;  %v3657_v19 = vld [vmem:[%s3603_s13 + $0x48] sm:$0xff] }
  0x72   : > { %5486 = vst [vmem:[#allocation7_spill] sm:$0xff] %v3657_v19 }
  0x74   : > { %881 = vrot.lane.b32.xlu1 %v810_v47, %s3147_s10  ;;  %v3666_v47 = vld [vmem:[%s3603_s13 + $0x68] sm:$0xff] }
  0x75   : > { %879 = vrot.lane.b32.xlu0 %v808_v33, %s3147_s10  ;;  %5487 = vst [vmem:[#allocation8_spill] sm:$0xff] %v3666_v47 }
  0x78   : > { %885 = vrot.lane.b32.xlu1 %v815_v55, %s3147_s10 }
  0x79   : > { %883 = vrot.lane.b32.xlu0 %v813_v35, %s3147_s10  ;;  %v468_v35 = vld [vmem:[%s3603_s13 + $0x98] sm:$0xff] }
  0x7c   : > { %889 = vrot.lane.b32.xlu1 %v820_v63, %s3147_s10  ;;  %v467_v63 = vld [vmem:[%s3603_s13 + $0x90] sm:$0xff] }
  0x7d   : > { %887 = vrot.lane.b32.xlu0 %v818_v2, %s3147_s10 }
  0x80   : > { %893 = vrot.lane.b32.xlu1 %v825_v16, %s3147_s10 }
  0x81   : > { %891 = vrot.lane.b32.xlu0 %v823_v36, %s3147_s10  ;;  %v3709_v36 = vld [vmem:[%s3603_s13 + $0xc0] sm:$0xff] }
  0x84   : > { %897 = vrot.lane.b32.xlu1 %v830_v27, %s3147_s10  ;;  %v3718_v27 = vld [vmem:[%s3603_s13 + $0xe0] sm:$0xff] }
  0x85   : > { %895 = vrot.lane.b32.xlu0 %v828_v1, %s3147_s10 }
  0x88   : > { %901 = vrot.lane.b32.xlu1 %v835_v41, %s3147_s10 }
  0x89   : > { %899 = vrot.lane.b32.xlu0 %v833_v7, %s3147_s10  ;;  %v3746_v7 = vld [vmem:[%s3603_s13 + $0x110] sm:$0xff] }
  0x8a   : > { %v3576_v57 = vpop.permute.xlu1 %678  ;;  %5496 = vst [vmem:[#allocation17_spill] sm:$0xff] %v3746_v7 }
  0x8b   : > { %5481 = vst [vmem:[#allocation2_spill] sm:$0xff] %v3576_v57  ;;  %v3580_v11 = vpop.permute.xlu0 %674  ;;  %v1096_v57 = vrot.slane %v3629_v31, 1 }
  0x8c   : > { %5482 = vst [vmem:[#allocation3_spill] sm:$0xff] %v3580_v11  ;;  %905 = vrot.lane.b32.xlu1 %v840_v52, %s3147_s10  ;;  %v3751_v52 = vld [vmem:[%s3603_s13 + $0x108] sm:$0xff] }
  0x8d   : > { %903 = vrot.lane.b32.xlu0 %v838_v4, %s3147_s10  ;;  %5498 = vst [vmem:[#allocation19_spill] sm:$0xff] %v3751_v52 }
  0x8e   : > { %v3587_v25 = vpop.permute.xlu1 %680 }
  0x8f   : > { %5483 = vst [vmem:[#allocation4_spill] sm:$0xff] %v3587_v25  ;;  %v3591_v29 = vpop.permute.xlu0 %676 }
  0x90   : > { %5484 = vst [vmem:[#allocation5_spill] sm:$0xff] %v3591_v29  ;;  %909 = vrot.lane.b32.xlu1 %v845_v8, %s3147_s10  ;;  %v475_v29 = vld [vmem:[%s3603_s13 + $0xd0] sm:$0x3] }
  0x91   : > { %907 = vrot.lane.b32.xlu0 %v843_v15, %s3147_s10  ;;  %v488_v15 = vld [vmem:[%s3603_s13 + $0x138] sm:$0xff] }
  0x92   : > { %v3596_v22 = vpop.permute.xlu1 %684 }
  0x93   : > { %v3605_v45 = vpop.permute.xlu0 %682 }
  0x94   : > { %913 = vrot.lane.b32.xlu1 %v850_v59, %s3147_s10  ;;  %v492_v59 = vld [vmem:[%s3603_s13 + $0x158] sm:$0xff] }
  0x95   : > { %911 = vrot.lane.b32.xlu0 %v848_v44, %s3147_s10 }
  0x96   : > { %v3612_v23 = vpop.permute.xlu1 %688 }
  0x97   : > { %v3617_v60 = vpop.permute.xlu0 %686 }
  0x98   : > { %981 = vrot.lane.b32.xlu1 %v3610_v49, %s3148_s14 }
  0x99   : > { %979 = vrot.lane.b32.xlu0 %v3615_v24, %s3148_s14 }
  0x9a   : > { %v3626_v30 = vpop.permute.xlu1 %692 }
  0x9b   : > { %v3631_v32 = vpop.permute.xlu0 %690 }
  0x9c   : > { %985 = vrot.lane.b32.xlu1 %v3624_v61, %s3148_s14 }
  0x9d   : > { %983 = vrot.lane.b32.xlu0 %v3629_v31, %s3148_s14 }
  0x9e   : > { %v3640_v12 = vpop.permute.xlu1 %696 }
  0x9f   : > { %v3645_v39 = vpop.permute.xlu0 %694 }
  0xa0   : > { %989 = vrot.lane.b32.xlu1 %v3638_v9, %s3148_s14 }
  0xa1   : > { %987 = vrot.lane.b32.xlu0 %v3643_v38, %s3148_s14 }
  0xa2   : > { %v3654_v18 = vpop.permute.xlu1 %700 }
  0xa3   : > { %v3659_v46 = vpop.permute.xlu0 %698 }
  0xa4   : > { %993 = vrot.lane.b32.xlu1 %v3652_v40, %s3148_s14  ;;  %v478_v40 = vld [vmem:[%s3603_s13 + $0xe8] sm:$0x3] }
  0xa5   : > { %991 = vrot.lane.b32.xlu0 %v3657_v19, %s3148_s14 }
  0xa6   : > { %v3668_v48 = vpop.permute.xlu1 %704 }
  0xa7   : > { %v3673_v33 = vpop.permute.xlu0 %702 }
  0xa8   : > { %997 = vrot.lane.b32.xlu1 %v3666_v47, %s3148_s14 }
  0xa9   : > { %995 = vrot.lane.b32.xlu0 %v3671_v20, %s3148_s14  ;;  %v1267_v20 = vrot.slane %v3615_v24, 2 }
  0xaa   : > { %v3680_v55 = vpop.permute.xlu1 %708 }
  0xab   : > { %5489 = vst [vmem:[#allocation10_spill] sm:$0xff] %v3680_v55  ;;  %v3683_v34 = vpop.permute.xlu0 %706 }
  0xac   : > { %5490 = vst [vmem:[#allocation11_spill] sm:$0xff] %v3683_v34  ;;  %1001 = vrot.lane.b32.xlu1 %v465_v54, %s3148_s14  ;;  %v491_v54 = vld [vmem:[%s3603_s13 + $0x150] sm:$0xff]  ;;  %v1131_v34 = vrot.slane %v3709_v36, 1 }
  0xad   : > { %999 = vrot.lane.b32.xlu0 %v464_v56, %s3148_s14  ;;  %v451_v56 = vld [vmem:[%s3603_s13 + $0x10] sm:$0x3] }
  0xae   : > { %v3688_v62 = vpop.permute.xlu1 %712 }
  0xaf   : > { %5491 = vst [vmem:[#allocation12_spill] sm:$0xff] %v3688_v62  ;;  %v3691_v3 = vpop.permute.xlu0 %710  ;;  %v3797_v62 = vld [vmem:[%s3603_s13 + $0x28] sm:$0x3] }
  0xb0   : > { %5492 = vst [vmem:[#allocation13_spill] sm:$0xff] %v3691_v3  ;;  %1005 = vrot.lane.b32.xlu1 %v468_v35, %s3148_s14 }
  0xb1   : > { %1003 = vrot.lane.b32.xlu0 %v467_v63, %s3148_s14  ;;  %v1092_v63 = vrot.slane %v3610_v49, 1 }
  0xb2   : > { %v3696_v2 = vpop.permute.xlu1 %716 }
  0xb3   : > { %v3699_v16 = vpop.permute.xlu0 %714 }
  0xb4   : > { %1009 = vrot.lane.b32.xlu1 %v471_v5, %s3148_s14  ;;  %v495_v5 = vld [vmem:[%s3603_s13 + $0x170] sm:$0xff] }
  0xb5   : > { %1007 = vrot.lane.b32.xlu0 %v470_v13, %s3148_s14  ;;  %v1094_v13 = vrot.slane %v451_v56, 1 }
  0xb6   : > { %v3706_v10 = vpop.permute.xlu1 %720 }
  0xb7   : > { %v3711_v26 = vpop.permute.xlu0 %718 }
  0xb8   : > { %1013 = vrot.lane.b32.xlu1 %v3704_v17, %s3148_s14 }
  0xb9   : > { %1011 = vrot.lane.b32.xlu0 %v3709_v36, %s3148_s14 }
  0xba   : > { %v3720_v28 = vpop.permute.xlu1 %724 }
  0xbb   : > { %v3725_v1 = vpop.permute.xlu0 %722 }
  0xbc   : > { %5493 = vst [vmem:[#allocation14_spill] sm:$0xff] %v3725_v1  ;;  %1017 = vrot.lane.b32.xlu1 %v3718_v27, %s3148_s14 }
  0xbd   : > { %1015 = vrot.lane.b32.xlu0 %v3723_v43, %s3148_s14 }
  0xbe   : > { %v3734_v41 = vpop.permute.xlu1 %728 }
  0xbf   : > { %5494 = vst [vmem:[#allocation15_spill] sm:$0xff] %v3734_v41  ;;  %v3739_v0 = vpop.permute.xlu0 %726 }
  0xc0   : > { %5495 = vst [vmem:[#allocation16_spill] sm:$0xff] %v3739_v0  ;;  %1021 = vrot.lane.b32.xlu1 %v3732_v37, %s3148_s14  ;;  %v523_v0 = vld [vmem:[%s3853_s19 + $0xd0] sm:$0x3] }
  0xc1   : > { %1019 = vrot.lane.b32.xlu0 %v3737_v42, %s3148_s14  ;;  %v1630_v41 = vrot.slane %v523_v0, 1 }
  0xc2   : > { %v3748_v51 = vpop.permute.xlu1 %732 }
  0xc3   : > { %5497 = vst [vmem:[#allocation18_spill] sm:$0xff] %v3748_v51  ;;  %v3753_v53 = vpop.permute.xlu0 %730 }
  0xc4   : > { %5499 = vst [vmem:[#allocation20_spill] sm:$0xff] %v3753_v53  ;;  %1025 = vrot.lane.b32.xlu1 %v3746_v7, %s3148_s14 }
  0xc5   : > { %1023 = vrot.lane.b32.xlu0 %v3751_v52, %s3148_s14 }
  0xc6   : > { %v3762_v4 = vpop.permute.xlu1 %736 }
  0xc7   : > { %5501 = vst [vmem:[#allocation22_spill] sm:$0xff] %v3762_v4  ;;  %v3767_v8 = vpop.permute.xlu0 %734 }
  0xc8   : > { %5503 = vst [vmem:[#allocation24_spill] sm:$0xff] %v3767_v8  ;;  %1029 = vrot.lane.b32.xlu1 %v3760_v50, %s3148_s14  ;;  %v1136_v8 = vrot.slane %v3723_v43, 1 }
  0xc9   : > { %1027 = vrot.lane.b32.xlu0 %v3765_v6, %s3148_s14 }
  0xca   : > { %v3774_v21 = vpop.permute.xlu1 %853 }
  0xcb   : > { %5504 = vst [vmem:[#allocation25_spill] sm:$0xff] %v3774_v21  ;;  %v3777_v58 = vpop.permute.xlu0 %851 }
  0xcc   : > { %5505 = vst [vmem:[#allocation26_spill] sm:$0xff] %v3777_v58  ;;  %1033 = vrot.lane.b32.xlu1 %v489_v14, %s3148_s14  ;;  %v1091_v14 = vrot.slane %v3615_v24, 1 }
  0xcd   : > { %1031 = vrot.lane.b32.xlu0 %v488_v15, %s3148_s14  ;;  %v494_v15 = vld [vmem:[%s3603_s13 + $0x168] sm:$0xff] }
  0xce   : > { %v3782_v44 = vpop.permute.xlu1 %857  ;;  %v1093_v21 = vsel %vm593_vm0, %v1091_v14, %v1092_v63  ;;  %v1308_v14 = vrot.slane %v3704_v17, 2 }
  0xcf   : > { %5506 = vst [vmem:[#allocation27_spill] sm:$0xff] %v3782_v44  ;;  %v3786_v35 = vpop.permute.xlu0 %855 }
  0xd0   : > { %5507 = vst [vmem:[#allocation28_spill] sm:$0xff] %v3786_v35  ;;  %1037 = vrot.lane.b32.xlu1 %v492_v59, %s3148_s14  ;;  %v1097_v59 = vrot.slane %v3624_v61, 1  ;;  %v1099_v35 = vrot.slane %v3797_v62, 1 }
  0xd1   : > { %1035 = vrot.lane.b32.xlu0 %v491_v54, %s3148_s14  ;;  %v1095_v54 = vsel %vm593_vm0, %v1092_v63, %v1094_v13 }
  0xd2   : > { %v3793_v25 = vpop.permute.xlu1 %861  ;;  %v1100_v13 = vsel %vm593_vm0, %v1097_v59, %v1099_v35  ;;  %v1098_v11 = vsel %vm593_vm0, %v1096_v57, %v1097_v59  ;;  %v1268_v35 = vrot.slane %v3610_v49, 2 }
  0xd3   : > { %v3799_v44 = vpop.permute.xlu0 %859 }
  0xd4   : > { %1041 = vrot.lane.b32.xlu1 %v495_v5, %s3148_s14  ;;  %v1132_v5 = vrot.slane %v3704_v17, 1  ;;  %v1269_v49 = vsel %vm770_vm1, %v1267_v20, %v1268_v35  ;;  %v3860_v20 = vld [vmem:[%s3853_s19 + $0xc0] sm:$0xff] }
  0xd5   : > { %1039 = vrot.lane.b32.xlu0 %v494_v15, %s3148_s14  ;;  %v1134_v15 = vrot.slane %v475_v29, 1 }
  0xd6   : > { %v3807_v3 = vpop.permute.xlu1 %865  ;;  %v1133_v57 = vsel %vm593_vm0, %v1131_v34, %v1132_v5 }
  0xd7   : > { %v3811_v55 = vpop.permute.xlu0 %863 }
  0xd8   : > { %1173 = vrot.lane.b32.xlu1 %v1095_v54, %s3149_s15  ;;  %v1307_v54 = vrot.slane %v3709_v36, 2 }
  0xd9   : > { %1171 = vrot.lane.b32.xlu0 %v1093_v21, %s3149_s15  ;;  %v1135_v21 = vsel %vm593_vm0, %v1132_v5, %v1134_v15 }
  0xda   : > { %v3818_v58 = vpop.permute.xlu1 %869  ;;  %v1309_v17 = vsel %vm770_vm1, %v1307_v54, %v1308_v14  ;;  %v3866_v54 = vld [vmem:[%s3853_s19 + $0xc8] sm:$0xff] }
  0xdb   : > { %v3821_v63 = vpop.permute.xlu0 %867 }
  0xdc   : > { %1177 = vrot.lane.b32.xlu1 %v1100_v13, %s3149_s15  ;;  %v1270_v13 = vrot.slane %v451_v56, 2 }
  0xdd   : > { %1175 = vrot.lane.b32.xlu0 %v1098_v11, %s3149_s15  ;;  %v1310_v11 = vrot.slane %v475_v29, 2 }
  0xde   : > { %v3830_v47 = vpop.permute.xlu1 %873  ;;  %v1271_v15 = vsel %vm770_vm1, %v1268_v35, %v1270_v13  ;;  %v3871_v35 = vld [vmem:[%s3853_s19 + $0x8] sm:$0xff] }
  0xdf   : > { %v3833_v59 = vpop.permute.xlu0 %871  ;;  %v1311_v34 = vsel %vm770_vm1, %v1308_v14, %v1310_v11  ;;  %v497_v14 = vld [vmem:[%s3853_s19] sm:$0xff]  ;;  %v1588_v13 = vrot.slane %v3871_v35, 1 }
  0xe0   : > { %1205 = vrot.lane.b32.xlu1 %v1135_v21, %s3149_s15  ;;  %v1587_v11 = vrot.slane %v497_v14, 1 }
  0xe1   : > { %1203 = vrot.lane.b32.xlu0 %v1133_v57, %s3149_s15  ;;  %v1627_v57 = vrot.slane %v3860_v20, 1 }
  0xe2   : > { %v3838_v36 = vpop.permute.xlu1 %877  ;;  %v1589_v53 = vsel %vm593_vm0, %v1587_v11, %v1588_v13  ;;  %v1764_v11 = vrot.slane %v3871_v35, 2 }
  0xe3   : > { %v3841_v24 = vpop.permute.xlu0 %875 }
  0xe4   : > { %1379 = vrot.lane.b32.xlu1 %v1309_v17, %s3150_s16  ;;  %v1628_v17 = vrot.slane %v3866_v54, 1 }
  0xe5   : > { %1347 = vrot.lane.b32.xlu0 %v1269_v49, %s3150_s16 }
  0xe6   : > { %v3846_v5 = vpop.permute.xlu1 %881 }
  0xe7   : > { %v3855_v29 = vpop.permute.xlu0 %879 }
  0xe8   : > { %1381 = vrot.lane.b32.xlu1 %v1311_v34, %s3150_s16  ;;  %v3882_v34 = vld [vmem:[%s3853_s19 + $0x10] sm:$0x3] }
  0xe9   : > { %1349 = vrot.lane.b32.xlu0 %v1271_v15, %s3150_s16  ;;  %v1590_v6 = vrot.slane %v3882_v34, 1 }
  0xea   : > { %v3862_v56 = vpop.permute.xlu1 %885 }
  0xeb   : > { %5508 = vst [vmem:[#allocation29_spill] sm:$0xff] %v3862_v56  ;;  %v3868_v21 = vpop.permute.xlu0 %883  ;;  %v2203_v56 = vld [vmem:[%s5461_s3] sm:$0xff]  ;;  %v1591_v19 = vsel %vm593_vm0, %v1588_v13, %v1590_v6  ;;  %v1139_v6 = vrot.slane %v478_v40, 1 }
  0xec   : > { %5509 = vst [vmem:[#allocation30_spill] sm:$0xff] %v3868_v21  ;;  %1507 = vrot.lane.b32.xlu1 %v3860_v20, %s3151_s20  ;;  %v2204_v21 = vld [vmem:[%s5461_s3 + $0x8] sm:$0xff] }
  0xed   : > { %1475 = vrot.lane.b32.xlu0 %v497_v14, %s3151_s20  ;;  %v3029_v50 = vpack.c.bf16 %v2204_v21, %v2203_v56  ;;  %v2205_v56 = vld [vmem:[%s5461_s3 + $0x10] sm:$0xff]  ;;  %v2206_v21 = vld [vmem:[%s5461_s3 + $0x18] sm:$0xff] }
  0xee   : > { %v3878_v49 = vpop.permute.xlu1 %889  ;;  %v3033_v52 = vpack.c.bf16 %v2206_v21, %v2205_v56  ;;  %v1312_v56 = vrot.slane %v3723_v43, 2  ;;  %v1806_v43 = vrot.slane %v523_v0, 2 }
  0xef   : > { %5510 = vst [vmem:[#allocation31_spill] sm:$0xff] %v3878_v49  ;;  %v3884_v15 = vpop.permute.xlu0 %887  ;;  %v1629_v49 = vsel %vm593_vm0, %v1627_v57, %v1628_v17  ;;  %3030 = vmatprep.subr.bf16.mxu0 %v3029_v50  ;;  %3037 = vmatprep.subr.bf16.mxu1 %v3029_v50  ;;  %v1763_v57 = vrot.slane %v497_v14, 2  ;;  %v1804_v14 = vrot.slane %v3866_v54, 2 }
  0xf0   : > { %5511 = vst [vmem:[#allocation32_spill] sm:$0xff] %v3884_v15  ;;  %1509 = vrot.lane.b32.xlu1 %v3866_v54, %s3151_s20  ;;  %v1137_v15 = vrot.slane %v3718_v27, 1  ;;  %3032 = vmatpush3.bf16.msra.mxu0 %v3029_v50  ;;  %v1273_v54 = vrot.slane %v3624_v61, 2  ;;  %v1766_v61 = vrot.slane %v3882_v34, 2 }
  0xf1   : > { %1477 = vrot.lane.b32.xlu0 %v3871_v35, %s3151_s20  ;;  %3040 = vmatpush3.bf16.msra.mxu1 %v3029_v50  ;;  %v2207_v50 = vld [vmem:[%s5461_s3 + $0x20] sm:$0xf] }
  0xf2   : > { %v3900_v4 = vpop.permute.xlu1 %893  ;;  %3034 = vmatprep.subr.bf16.mxu0 %v3033_v52  ;;  %3038 = vmatprep.subr.bf16.mxu1 %v3033_v52  ;;  %v1767_v0 = vsel %vm770_vm1, %v1764_v11, %v1766_v61  ;;  %v3077_v61 = vld [vmem:[%s3221_s8 + $0x30] sm:$0xff] }
  0xf3   : > { %v3903_v51 = vpop.permute.xlu0 %891 }
  0xf4   : > { %1699 = vrot.lane.b32.xlu1 %v1629_v49, %s3152_s29  ;;  %v1138_v49 = vsel %vm593_vm0, %v1136_v8, %v1137_v15  ;;  %3036 = vmatpush3.bf16.msra.mxu0 %v3033_v52  ;;  %v1803_v8 = vrot.slane %v3860_v20, 2  ;;  %v1140_v20 = vsel %vm593_vm0, %v1137_v15, %v1139_v6  ;;  %v1315_v6 = vrot.slane %v478_v40, 2 }
  0xf5   : > { %1667 = vrot.lane.b32.xlu0 %v1589_v53, %s3152_s29  ;;  %v1765_v53 = vsel %vm770_vm1, %v1763_v57, %v1764_v11  ;;  %3041 = vmatpush3.bf16.msra.mxu1 %v3033_v52  ;;  %v1313_v52 = vrot.slane %v3718_v27, 2 }
  0xf6   : > { %v3916_v7 = vpop.permute.xlu1 %897  ;;  %2979 = vmatprep.subr.msk.mxu0 %vm2305_vm2, %v2207_v50  ;;  %3039 = vmatprep.subr.msk.mxu1 %vm2305_vm2, %v2207_v50  ;;  %v1805_v21 = vsel %vm770_vm1, %v1803_v8, %v1804_v14  ;;  %v1275_v8 = vrot.slane %v3797_v62, 2  ;;  %v3976_v62 = vld [vmem:[%s3853_s19 + $0xd8] sm:$0xff] }
  0xf7   : > { %v3920_v1 = vpop.permute.xlu0 %895  ;;  %v1314_v27 = vsel %vm770_vm1, %v1312_v56, %v1313_v52 }
  0xf8   : > { %1669 = vrot.lane.b32.xlu1 %v1591_v19, %s3152_s29  ;;  %v1631_v19 = vsel %vm593_vm0, %v1628_v17, %v1630_v41  ;;  %2980 = vmatpush3.msk.msra.mxu0 %vm2305_vm2, %v2207_v50  ;;  %v1272_v41 = vrot.slane %v3629_v31, 2  ;;  %v1276_v40 = vsel %vm770_vm1, %v1273_v54, %v1275_v8 }
  0xf9   : > { %1207 = vrot.lane.b32.xlu0 %v1138_v49, %s3149_s15  ;;  %3042 = vmatpush3.msk.msra.mxu1 %vm2305_vm2, %v2207_v50 }
  0xfa   : > { %v3930_v35 = vpop.permute.xlu1 %901  ;;  %v1274_v15 = vsel %vm770_vm1, %v1272_v41, %v1273_v54  ;;  %v3984_v41 = vld [vmem:[%s3853_s19 + $0xe0] sm:$0xff]  ;;  %v3076_v54 = vld [vmem:[%s3221_s8 + $0x38] sm:$0xff] }
  0xfb   : > { %v3933_v13 = vpop.permute.xlu0 %899 }
  0xfc   : > { %1843 = vrot.lane.b32.xlu1 %v1765_v53, %s3153_s17  ;;  %v1807_v53 = vsel %vm770_vm1, %v1804_v14, %v1806_v43  ;;  %v1632_v43 = vrot.slane %v3976_v62, 1 }
  0xfd   : > { %1701 = vrot.lane.b32.xlu0 %v1631_v19, %s3152_s29  ;;  %v1316_v19 = vsel %vm770_vm1, %v1313_v52, %v1315_v6 }
  0xfe   : > { %v3942_v17 = vpop.permute.xlu1 %905 }
  0xff   : > { %v3945_v57 = vpop.permute.xlu0 %903 }
 0x100   : > { %1209 = vrot.lane.b32.xlu1 %v1140_v20, %s3149_s15  ;;  %v3981_v20 = vld [vmem:[%s3853_s19 + $0x18] sm:$0xff] }
 0x101   : > { %1875 = vrot.lane.b32.xlu0 %v1805_v21, %s3153_s17  ;;  %v3989_v21 = vld [vmem:[%s3853_s19 + $0x20] sm:$0xff] }
 0x102   : > { %v3950_v49 = vpop.permute.xlu1 %909  ;;  %v1593_v8 = vrot.slane %v3989_v21, 1 }
 0x103   : > { %v3954_v31 = vpop.permute.xlu0 %907 }
 0x104   : > { %1383 = vrot.lane.b32.xlu1 %v1314_v27, %s3150_s16  ;;  %v1945_v27 = vsel %vm1939_vm3, %v3076_v54, %v3596_v22 }
 0x105   : > { %1351 = vrot.lane.b32.xlu0 %v1274_v15, %s3150_s16  ;;  %v1633_v15 = vrot.slane %v3984_v41, 1  ;;  %v1978_v6 = vsel %vm1972_vm4, %v1945_v27, %v3793_v25  ;;  %v3078_v25 = vld [vmem:[%s3221_s8 + $0x50] sm:$0xff] }
 0x106   : > { %v3959_v50 = vpop.permute.xlu1 %913  ;;  %v1947_v27 = vsel %vm1939_vm3, %v3078_v25, %v3612_v23 }
 0x107   : > { %v3963_v34 = vpop.permute.xlu0 %911  ;;  %v1980_v23 = vsel %vm1972_vm4, %v1947_v27, %v3807_v3  ;;  %v3080_v3 = vld [vmem:[%s3221_s8 + $0x68] sm:$0xff] }
 0x108   : > { %1877 = vrot.lane.b32.xlu1 %v1807_v53, %s3153_s17  ;;  %v1944_v53 = vsel %vm1939_vm3, %v3077_v61, %v3605_v45  ;;  %v1141_v61 = vrot.slane %v3737_v42, 1 }
 0x109   : > { %1845 = vrot.lane.b32.xlu0 %v1767_v0, %s3153_s17  ;;  %v1592_v0 = vrot.slane %v3981_v20, 1 }
 0x10a   : > { %v3968_v14 = vpop.permute.xlu1 %981 }
 0x10b   : > { %v3971_v56 = vpop.permute.xlu0 %979  ;;  %v1594_v25 = vsel %vm593_vm0, %v1592_v0, %v1593_v8  ;;  %v1949_v0 = vsel %vm1939_vm3, %v3080_v3, %v3626_v30  ;;  %v5516_v30 = vrot.slane %v3638_v9, 1 }
 0x10c   : > { %1385 = vrot.lane.b32.xlu1 %v1316_v19, %s3150_s16  ;;  %v1977_v19 = vsel %vm1972_vm4, %v1944_v53, %v3799_v44  ;;  %v1634_v53 = vsel %vm593_vm0, %v1632_v43, %v1633_v15 }
 0x10d   : > { %1353 = vrot.lane.b32.xlu0 %v1276_v40, %s3150_s16 }
 0x10e   : > { %v3978_v11 = vpop.permute.xlu1 %985 }
 0x10f   : > { %5512 = vst [vmem:[#allocation33_spill] sm:$0xff] %v3978_v11  ;;  %v3986_v52 = vpop.permute.xlu0 %983  ;;  %v4034_v11 = vld [vmem:[%s3853_s19 + $0xe8] sm:$0x3] }
 0x110   : > { %1511 = vrot.lane.b32.xlu1 %v3976_v62, %s3151_s20 }
 0x111   : > { %1479 = vrot.lane.b32.xlu0 %v3981_v20, %s3151_s20 }
 0x112   : > { %v990_v22 = vpop.permute.xlu1 %989 }
 0x113   : > { %v4010_v40 = vsel %vm2005_vm5, %v1978_v6, %v990_v22  ;;  %v988_v54 = vpop.permute.xlu0 %987  ;;  %v3079_v6 = vld [vmem:[%s3221_s8 + $0x48] sm:$0xff] }
 0x114   : > { %5513 = vst [vmem:[#allocation34_spill] sm:$0xff] %v4010_v40  ;;  %v4014_v45 = vsel %vm2005_vm5, %v1977_v19, %v988_v54  ;;  %1513 = vrot.lane.b32.xlu1 %v3984_v41, %s3151_s20  ;;  %v1946_v22 = vsel %vm1939_vm3, %v3079_v6, %v3617_v60  ;;  %v1101_v19 = vrot.slane %v3643_v38, 1  ;;  %v1635_v6 = vrot.slane %v4034_v11, 1 }
 0x115   : > { %5514 = vst [vmem:[#allocation35_spill] sm:$0xff] %v4014_v45  ;;  %1481 = vrot.lane.b32.xlu0 %v3989_v21, %s3151_s20  ;;  %v1979_v44 = vsel %vm1972_vm4, %v1946_v22, %v3811_v55  ;;  %v4042_v45 = vld [vmem:[%s3853_s19 + $0x28] sm:$0x3]  ;;  %v5515_v55 = vrot.slane %v3732_v37, 1  ;;  %v3081_v22 = vld [vmem:[%s3221_s8 + $0x60] sm:$0xff] }
 0x116   : > { %v994_v54 = vpop.permute.xlu1 %993 }
 0x117   : > { %v4039_v43 = vsel %vm2005_vm5, %v1980_v23, %v994_v54  ;;  %v992_v40 = vpop.permute.xlu0 %991  ;;  %v1143_v27 = vsel %vm593_vm0, %v1141_v61, %v5515_v55  ;;  %v1103_v23 = vsel %vm593_vm0, %v1101_v19, %v5516_v30  ;;  %v1595_v54 = vrot.slane %v4042_v45, 1 }
 0x118   : > { %v4045_v60 = vsel %vm2005_vm5, %v1979_v44, %v992_v40  ;;  %1703 = vrot.lane.b32.xlu1 %v1634_v53, %s3152_s29  ;;  %v1948_v40 = vsel %vm1939_vm3, %v3081_v22, %v3631_v32  ;;  %v1982_v44 = vsel %vm1972_vm4, %v1949_v0, %v3818_v58  ;;  %v1808_v32 = vrot.slane %v3976_v62, 2  ;;  %v3082_v0 = vld [vmem:[%s3221_s8 + $0x80] sm:$0xff]  ;;  %v3083_v62 = vld [vmem:[%s3221_s8 + $0x78] sm:$0xff] }
 0x119   : > { %1671 = vrot.lane.b32.xlu0 %v1594_v25, %s3152_s29  ;;  %v1981_v61 = vsel %vm1972_vm4, %v1948_v40, %v3821_v63  ;;  %v1951_v19 = vsel %vm1939_vm3, %v3082_v0, %v3640_v12  ;;  %v1768_v55 = vrot.slane %v3981_v20, 2  ;;  %v1809_v63 = vrot.slane %v3984_v41, 2 }
 0x11a   : > { %v998_v53 = vpop.permute.xlu1 %997  ;;  %v1636_v22 = vsel %vm593_vm0, %v1633_v15, %v1635_v6  ;;  %v1950_v40 = vsel %vm1939_vm3, %v3083_v62, %v3645_v39  ;;  %v1596_v20 = vsel %vm593_vm0, %v1593_v8, %v1595_v54  ;;  %v4096_v6 = vld [vmem:[%s3603_s13 + $0x40] sm:$0x3]  ;;  %v1278_v62 = vrot.slane %v3638_v9, 2 }
 0x11b   : > { %v4068_v25 = vsel %vm2005_vm5, %v1982_v44, %v998_v53  ;;  %v996_v3 = vpop.permute.xlu0 %995  ;;  %v1769_v44 = vrot.slane %v3989_v21, 2  ;;  %v481_v53 = vld [vmem:[%s3603_s13 + $0x100] sm:$0x3]  ;;  %v1983_v41 = vsel %vm1972_vm4, %v1950_v40, %v3833_v59  ;;  %v1810_v59 = vsel %vm770_vm1, %v1808_v32, %v1809_v63 }
 0x11c   : > { %v4072_v58 = vsel %vm2005_vm5, %v1981_v61, %v996_v3  ;;  %1211 = vrot.lane.b32.xlu1 %v1143_v27, %s3149_s15  ;;  %v1984_v27 = vsel %vm1972_vm4, %v1951_v19, %v3830_v47  ;;  %v3084_v47 = vld [vmem:[%s3221_s8 + $0x98] sm:$0xff]  ;;  %v1144_v8 = vrot.slane %v481_v53, 1  ;;  %v1104_v19 = vrot.slane %v4096_v6, 1 }
 0x11d   : > { %1179 = vrot.lane.b32.xlu0 %v1103_v23, %s3149_s15  ;;  %v1953_v21 = vsel %vm1939_vm3, %v3084_v47, %v3654_v18  ;;  %v3085_v23 = vld [vmem:[%s3221_s8 + $0x90] sm:$0xff]  ;;  %v1770_v0 = vsel %vm770_vm1, %v1768_v55, %v1769_v44  ;;  %v1318_v40 = vrot.slane %v3732_v37, 2 }
 0x11e   : > { %v1002_v12 = vpop.permute.xlu1 %1001  ;;  %v1952_v54 = vsel %vm1939_vm3, %v3085_v23, %v3659_v46  ;;  %v1986_v61 = vsel %vm1972_vm4, %v1953_v21, %v3838_v36  ;;  %v3086_v36 = vld [vmem:[%s3221_s8 + $0xb0] sm:$0xff]  ;;  %v5520_v21 = vrot.slane %v3638_v9, 1  ;;  %v1811_v9 = vrot.slane %v4034_v11, 2 }
 0x11f   : > { %v4093_v30 = vsel %vm2005_vm5, %v1984_v27, %v1002_v12  ;;  %v1000_v15 = vpop.permute.xlu0 %999  ;;  %v1985_v18 = vsel %vm1972_vm4, %v1952_v54, %v3841_v24  ;;  %v1955_v55 = vsel %vm1939_vm3, %v3086_v36, %v3668_v48  ;;  %v1317_v27 = vrot.slane %v3737_v42, 2 }
 0x120   : > { %v4099_v39 = vsel %vm2005_vm5, %v1983_v41, %v1000_v15  ;;  %1705 = vrot.lane.b32.xlu1 %v1636_v22, %s3152_s29  ;;  %v5519_v24 = vrot.slane %v3732_v37, 1  ;;  %v3087_v41 = vld [vmem:[%s3221_s8 + $0xa8] sm:$0xff]  ;;  %v1988_v47 = vsel %vm1972_vm4, %v1955_v55, %v3846_v5  ;;  %v1105_v42 = vsel %vm593_vm0, %v5520_v21, %v1104_v19 }
 0x121   : > { %1673 = vrot.lane.b32.xlu0 %v1596_v20, %s3152_s29  ;;  %v1277_v20 = vrot.slane %v3643_v38, 2  ;;  %v1954_v15 = vsel %vm1939_vm3, %v3087_v41, %v3673_v33  ;;  %v1319_v33 = vsel %vm770_vm1, %v1317_v27, %v1318_v40  ;;  %v1771_v23 = vrot.slane %v4042_v45, 2  ;;  %v3088_v45 = vld [vmem:[%s3221_s8 + $0xf8] sm:$0xff] }
 0x122   : > { %v1006_v3 = vpop.permute.xlu1 %1005  ;;  %v1145_v12 = vsel %vm593_vm0, %v5519_v24, %v1144_v8  ;;  %v1280_v19 = vrot.slane %v4096_v6, 2 }
 0x123   : > { %v4117_v22 = vsel %vm2005_vm5, %v1986_v61, %v1006_v3  ;;  %v1004_v32 = vpop.permute.xlu0 %1003  ;;  %v1812_v61 = vsel %vm770_vm1, %v1809_v63, %v1811_v9  ;;  %v1320_v3 = vrot.slane %v481_v53, 2  ;;  %v1772_v11 = vsel %vm770_vm1, %v1769_v44, %v1771_v23  ;;  %v3089_v53 = vld [vmem:[%s3221_s8 + $0xf0] sm:$0xff]  ;;  %v5523_v9 = vld [vmem:[#allocation14_spill] sm:$0xff] }
 0x124   : > { %5517 = vst [vmem:[#allocation36_spill] sm:$0xff] %v4117_v22  ;;  %v4121_v46 = vsel %vm2005_vm5, %v1985_v18, %v1004_v32  ;;  %1879 = vrot.lane.b32.xlu1 %v1810_v59, %s3153_s17  ;;  %v1987_v59 = vsel %vm1972_vm4, %v1954_v15, %v3855_v29  ;;  %v1279_v29 = vsel %vm770_vm1, %v1277_v20, %v1278_v62  ;;  %v4203_v15 = vld [vmem:[%s3853_s19 + $0x30] sm:$0xff] }
 0x125   : > { %5518 = vst [vmem:[#allocation37_spill] sm:$0xff] %v4121_v46  ;;  %1847 = vrot.lane.b32.xlu0 %v1770_v0, %s3153_s17  ;;  %v1961_v32 = vsel %vm1939_vm3, %v3088_v45, %v3696_v2  ;;  %v1321_v63 = vsel %vm770_vm1, %v1318_v40, %v1320_v3  ;;  %v1960_v44 = vsel %vm1939_vm3, %v3089_v53, %v3699_v16  ;;  %v3090_v16 = vld [vmem:[%s3221_s8 + $0x110] sm:$0xff] }
 0x126   : > { %v1010_v48 = vpop.permute.xlu1 %1009  ;;  %v1994_v6 = vsel %vm1972_vm4, %v1961_v32, %v3900_v4  ;;  %v1281_v55 = vsel %vm770_vm1, %v1278_v62, %v1280_v19  ;;  %v1993_v2 = vsel %vm1972_vm4, %v1960_v44, %v3903_v51  ;;  %v1963_v4 = vsel %vm1939_vm3, %v3090_v16, %v3706_v10  ;;  %v4195_v62 = vld [vmem:[%s3853_s19 + $0xf0] sm:$0xff]  ;;  %v3091_v51 = vld [vmem:[%s3221_s8 + $0x108] sm:$0xff]  ;;  %v5524_v32 = vld [vmem:[#allocation6_spill] sm:$0xff] }
 0x127   : > { %v4145_v37 = vsel %vm2005_vm5, %v1988_v47, %v1010_v48  ;;  %v1008_v8 = vpop.permute.xlu0 %1007  ;;  %v1996_v20 = vsel %vm1972_vm4, %v1963_v4, %v3916_v7  ;;  %v4206_v47 = vld [vmem:[%s3853_s19 + $0xf8] sm:$0xff]  ;;  %v3092_v7 = vld [vmem:[%s3221_s8 + $0x128] sm:$0xff] }
 0x128   : > { %5521 = vst [vmem:[#allocation38_spill] sm:$0xff] %v4145_v37  ;;  %v4148_v38 = vsel %vm2005_vm5, %v1987_v59, %v1008_v8  ;;  %1213 = vrot.lane.b32.xlu1 %v1145_v12, %s3149_s15  ;;  %v1962_v12 = vsel %vm1939_vm3, %v3091_v51, %v3711_v26  ;;  %v1965_v59 = vsel %vm1939_vm3, %v3092_v7, %v3720_v28  ;;  %v1637_v8 = vrot.slane %v4195_v62, 1  ;;  %v5525_v44 = vld [vmem:[#allocation15_spill] sm:$0xff]  ;;  %v3095_v51 = vld [vmem:[%s3221_s8 + $0x138] sm:$0xff]  ;;  %v4262_v7 = vld [vmem:[%s3853_s19 + $0x100] sm:$0x3] }
 0x129   : > { %5522 = vst [vmem:[#allocation39_spill] sm:$0xff] %v4148_v38  ;;  %1181 = vrot.lane.b32.xlu0 %v1105_v42, %s3149_s15  ;;  %v1995_v10 = vsel %vm1972_vm4, %v1962_v12, %v3920_v1  ;;  %v4214_v42 = vld [vmem:[%s3853_s19 + $0x38] sm:$0xff]  ;;  %v1638_v1 = vrot.slane %v4206_v47, 1  ;;  %v1998_v23 = vsel %vm1972_vm4, %v1965_v59, %v3930_v35  ;;  %v3094_v35 = vld [vmem:[%s3221_s8 + $0x140] sm:$0xff]  ;;  %v5528_v16 = vld [vmem:[#allocation7_spill] sm:$0xff] }
 0x12a   : > { %v4154_v5 = vpop.permute.xlu1 %1013  ;;  %v1598_v28 = vrot.slane %v4214_v42, 1  ;;  %v1106_v4 = vrot.slane %v5528_v16, 1  ;;  %v5529_v12 = vld [vmem:[#allocation16_spill] sm:$0xff]  ;;  %v4417_v37 = vld [vmem:[%s3853_s19 + $0x58] sm:$0x3] }
 0x12b   : > { %v4158_v54 = vpop.permute.xlu0 %1011 }
 0x12c   : > { %1387 = vrot.lane.b32.xlu1 %v1319_v33, %s3150_s16  ;;  %v3093_v33 = vld [vmem:[%s3221_s8 + $0x120] sm:$0xff] }
 0x12d   : > { %1355 = vrot.lane.b32.xlu0 %v1279_v29, %s3150_s16  ;;  %v1964_v29 = vsel %vm1939_vm3, %v3093_v33, %v5523_v9  ;;  %v4270_v9 = vld [vmem:[%s3853_s19 + $0x40] sm:$0x3] }
 0x12e   : > { %v4163_v0 = vpop.permute.xlu1 %1017 }
 0x12f   : > { %v4167_v18 = vpop.permute.xlu0 %1015 }
 0x130   : > { %1881 = vrot.lane.b32.xlu1 %v1812_v61, %s3153_s17  ;;  %v1597_v61 = vrot.slane %v4203_v15, 1 }
 0x131   : > { %1849 = vrot.lane.b32.xlu0 %v1772_v11, %s3153_s17  ;;  %v1997_v11 = vsel %vm1972_vm4, %v1964_v29, %v3933_v13 }
 0x132   : > { %v1022_v36 = vpop.permute.xlu1 %1021 }
 0x133   : > { %v4184_v27 = vsel %vm2005_vm5, %v1994_v6, %v1022_v36  ;;  %v1020_v24 = vpop.permute.xlu0 %1019  ;;  %v1967_v6 = vsel %vm1939_vm3, %v3094_v35, %v5525_v44  ;;  %v5526_v36 = vld [vmem:[#allocation17_spill] sm:$0xff] }
 0x134   : > { %v4187_v40 = vsel %vm2005_vm5, %v1993_v2, %v1020_v24  ;;  %1389 = vrot.lane.b32.xlu1 %v1321_v63, %s3150_s16  ;;  %v1107_v63 = vrot.slane %v5524_v32, 1  ;;  %v1147_v13 = vrot.slane %v5526_v36, 1  ;;  %v1639_v24 = vsel %vm593_vm0, %v1637_v8, %v1638_v1 }
 0x135   : > { %1357 = vrot.lane.b32.xlu0 %v1281_v55, %s3150_s16  ;;  %v5527_v55 = vld [vmem:[#allocation19_spill] sm:$0xff] }
 0x136   : > { %v1026_v41 = vpop.permute.xlu1 %1025  ;;  %v1146_v2 = vrot.slane %v5527_v55, 1 }
 0x137   : > { %v4211_v48 = vsel %vm2005_vm5, %v1996_v20, %v1026_v41  ;;  %v1024_v21 = vpop.permute.xlu0 %1023  ;;  %v1966_v20 = vsel %vm1939_vm3, %v3095_v51, %v5529_v12  ;;  %v2000_v41 = vsel %vm1972_vm4, %v1967_v6, %v3942_v17  ;;  %v3096_v17 = vld [vmem:[%s3221_s8 + $0x158] sm:$0xff]  ;;  %v1600_v51 = vrot.slane %v4270_v9, 1 }
 0x138   : > { %v4217_v26 = vsel %vm2005_vm5, %v1995_v10, %v1024_v21  ;;  %1515 = vrot.lane.b32.xlu1 %v4195_v62, %s3151_s20  ;;  %v1599_v21 = vsel %vm593_vm0, %v1597_v61, %v1598_v28  ;;  %v1999_v59 = vsel %vm1972_vm4, %v1966_v20, %v3945_v57  ;;  %v1148_v57 = vsel %vm593_vm0, %v1146_v2, %v1147_v13 }
 0x139   : > { %1483 = vrot.lane.b32.xlu0 %v4203_v15, %s3151_s20 }
 0x13a   : > { %v1030_v3 = vpop.permute.xlu1 %1029 }
 0x13b   : > { %v4238_v19 = vsel %vm2005_vm5, %v1998_v23, %v1030_v3  ;;  %v1028_v45 = vpop.permute.xlu0 %1027  ;;  %v5530_v23 = vld [vmem:[#allocation18_spill] sm:$0xff]  ;;  %v1640_v3 = vrot.slane %v4262_v7, 1 }
 0x13c   : > { %v4242_v53 = vsel %vm2005_vm5, %v1997_v11, %v1028_v45  ;;  %1517 = vrot.lane.b32.xlu1 %v4206_v47, %s3151_s20  ;;  %v1969_v61 = vsel %vm1939_vm3, %v3096_v17, %v5530_v23  ;;  %v3097_v11 = vld [vmem:[%s3221_s8 + $0x150] sm:$0xff]  ;;  %v3099_v17 = vld [vmem:[%s3221_s8 + $0x168] sm:$0xff] }
 0x13d   : > { %1485 = vrot.lane.b32.xlu0 %v4214_v42, %s3151_s20  ;;  %v5531_v45 = vld [vmem:[#allocation20_spill] sm:$0xff]  ;;  %v2002_v44 = vsel %vm1972_vm4, %v1969_v61, %v3950_v49 }
 0x13e   : > { %v1034_v10 = vpop.permute.xlu1 %1033  ;;  %v1968_v35 = vsel %vm1939_vm3, %v3097_v11, %v5531_v45  ;;  %v1601_v45 = vsel %vm593_vm0, %v1598_v28, %v1600_v51  ;;  %v1323_v51 = vrot.slane %v5526_v36, 2 }
 0x13f   : > { %v4267_v8 = vsel %vm2005_vm5, %v2000_v41, %v1034_v10  ;;  %v1032_v33 = vpop.permute.xlu0 %1031  ;;  %v2001_v2 = vsel %vm1972_vm4, %v1968_v35, %v3954_v31  ;;  %v1813_v41 = vrot.slane %v4195_v62, 2  ;;  %v3098_v10 = vld [vmem:[%s3221_s8 + $0x170] sm:$0xff]  ;;  %v1814_v31 = vrot.slane %v4206_v47, 2  ;;  %v484_v35 = vld [vmem:[%s3603_s13 + $0x118] sm:$0x3] }
 0x140   : > { %v4273_v29 = vsel %vm2005_vm5, %v1999_v59, %v1032_v33  ;;  %1707 = vrot.lane.b32.xlu1 %v1639_v24, %s3152_s29  ;;  %v1108_v24 = vsel %vm593_vm0, %v1106_v4, %v1107_v63  ;;  %v1773_v59 = vrot.slane %v4203_v15, 2  ;;  %v1641_v33 = vsel %vm593_vm0, %v1638_v1, %v1640_v3  ;;  %v5534_v62 = vld [vmem:[#allocation24_spill] sm:$0xff]  ;;  %v460_v3 = vld [vmem:[%s3603_s13 + $0x58] sm:$0x3] }
 0x141   : > { %1675 = vrot.lane.b32.xlu0 %v1599_v21, %s3152_s29  ;;  %v5533_v21 = vld [vmem:[#allocation22_spill] sm:$0xff]  ;;  %v1970_v23 = vsel %vm1939_vm3, %v3099_v17, %v5534_v62 }
 0x142   : > { %v1038_v6 = vpop.permute.xlu1 %1037  ;;  %v1971_v4 = vsel %vm1939_vm3, %v3098_v10, %v5533_v21  ;;  %v2003_v15 = vsel %vm1972_vm4, %v1970_v23, %v3963_v34  ;;  %v1109_v34 = vrot.slane %v460_v3, 1  ;;  %v1282_v10 = vrot.slane %v5528_v16, 2 }
 0x143   : > { %v4296_v12 = vsel %vm2005_vm5, %v2002_v44, %v1038_v6  ;;  %v1036_v20 = vpop.permute.xlu0 %1035  ;;  %v2004_v61 = vsel %vm1972_vm4, %v1971_v4, %v3959_v50  ;;  %v1815_v50 = vsel %vm770_vm1, %v1813_v41, %v1814_v31  ;;  %v1283_v41 = vrot.slane %v5524_v32, 2 }
 0x144   : > { %5532 = vst [vmem:[#allocation14_spill] sm:$0xff] %v4296_v12  ;;  %v4300_v49 = vsel %vm2005_vm5, %v2001_v2, %v1036_v20  ;;  %1215 = vrot.lane.b32.xlu1 %v1148_v57, %s3149_s15  ;;  %v1774_v57 = vrot.slane %v4214_v42, 2  ;;  %v1149_v42 = vrot.slane %v484_v35, 1  ;;  %v1322_v2 = vrot.slane %v5527_v55, 2 }
 0x145   : > { %1183 = vrot.lane.b32.xlu0 %v1108_v24, %s3149_s15  ;;  %v1110_v4 = vsel %vm593_vm0, %v1107_v63, %v1109_v34  ;;  %v1284_v16 = vsel %vm770_vm1, %v1282_v10, %v1283_v41  ;;  %v1325_v63 = vrot.slane %v484_v35, 2  ;;  %v1285_v23 = vrot.slane %v460_v3, 2  ;;  %v3100_v10 = vld [vmem:[%s3221_s8] sm:$0xff] }
 0x146   : > { %v1042_v11 = vpop.permute.xlu1 %1041  ;;  %v1775_v6 = vsel %vm770_vm1, %v1773_v59, %v1774_v57  ;;  %v1150_v20 = vsel %vm593_vm0, %v1147_v13, %v1149_v42  ;;  %v1324_v36 = vsel %vm770_vm1, %v1322_v2, %v1323_v51  ;;  %v1816_v13 = vrot.slane %v4262_v7, 2 }
 0x147   : > { %v4321_v47 = vsel %vm2005_vm5, %v2004_v61, %v1042_v11  ;;  %v1040_v1 = vpop.permute.xlu0 %1039 }
 0x148   : > { %5535 = vst [vmem:[#allocation6_spill] sm:$0xff] %v4321_v47  ;;  %v4325_v44 = vsel %vm2005_vm5, %v2003_v15, %v1040_v1  ;;  %1709 = vrot.lane.b32.xlu1 %v1641_v33, %s3152_s29  ;;  %v1776_v33 = vrot.slane %v4270_v9, 2  ;;  %v1817_v32 = vsel %vm770_vm1, %v1814_v31, %v1816_v13  ;;  %v1326_v9 = vsel %vm770_vm1, %v1323_v51, %v1325_v63  ;;  %v4383_v15 = vld [vmem:[%s3853_s19 + $0x48] sm:$0xff]  ;;  %v4386_v1 = vld [vmem:[%s3853_s19 + $0x110] sm:$0xff] }
 0x149   : > { %5536 = vst [vmem:[#allocation15_spill] sm:$0xff] %v4325_v44  ;;  %1677 = vrot.lane.b32.xlu0 %v1601_v45, %s3152_s29  ;;  %v1286_v31 = vsel %vm770_vm1, %v1283_v41, %v1285_v23  ;;  %v1602_v34 = vrot.slane %v4383_v15, 1  ;;  %v5537_v41 = vld [vmem:[#allocation21_spill] sm:$0xff]  ;;  %v5541_v47 = vld [vmem:[#allocation3_spill] sm:$0xff]  ;;  %v1778_v46 = vrot.slane %v4383_v15, 2 }
 0x14a   : > { %v4330_v28 = vpop.permute.xlu1 %1173  ;;  %v1777_v7 = vsel %vm770_vm1, %v1774_v57, %v1776_v33  ;;  %v4378_v57 = vld [vmem:[%s3853_s19 + $0x108] sm:$0xff]  ;;  %v1940_v38 = vsel %vm1939_vm3, %v3100_v10, %v5541_v47 }
 0x14b   : > { %v4333_v24 = vpop.permute.xlu0 %1171  ;;  %v1642_v42 = vrot.slane %v4378_v57, 1 }
 0x14c   : > { %1883 = vrot.lane.b32.xlu1 %v1815_v50, %s3153_s17  ;;  %v4389_v50 = vld [vmem:[%s3853_s19 + $0x50] sm:$0xff] }
 0x14d   : > { %1851 = vrot.lane.b32.xlu0 %v1775_v6, %s3153_s17  ;;  %v1643_v6 = vrot.slane %v4386_v1, 1  ;;  %v1603_v2 = vrot.slane %v4389_v50, 1 }
 0x14e   : > { %v4344_v21 = vpop.permute.xlu1 %1177 }
 0x14f   : > { %v4349_v59 = vpop.permute.xlu0 %1175  ;;  %v1644_v13 = vsel %vm593_vm0, %v1642_v42, %v1643_v6  ;;  %v1604_v23 = vsel %vm593_vm0, %v1602_v34, %v1603_v2  ;;  %v5542_v42 = vld [vmem:[#allocation26_spill] sm:$0xff]  ;;  %v5543_v34 = vrot.slane %v5537_v41, 1 }
 0x150   : > { %1217 = vrot.lane.b32.xlu1 %v1150_v20, %s3149_s15  ;;  %v1973_v33 = vsel %vm1972_vm4, %v1940_v38, %v5542_v42  ;;  %v1605_v38 = vrot.slane %v4417_v37, 1  ;;  %v3101_v42 = vld [vmem:[%s3221_s8 + $0xc0] sm:$0xff] }
 0x151   : > { %1185 = vrot.lane.b32.xlu0 %v1110_v4, %s3149_s15  ;;  %v5538_v4 = vld [vmem:[#allocation23_spill] sm:$0xff]  ;;  %v2006_v22 = vsel %vm2005_vm5, %v1973_v33, %v3971_v56  ;;  %v1818_v33 = vrot.slane %v4378_v57, 2 }
 0x152   : > { %v4355_v55 = vpop.permute.xlu1 %1205 }
 0x153   : > { %v4359_v17 = vpop.permute.xlu0 %1203 }
 0x154   : > { %1391 = vrot.lane.b32.xlu1 %v1324_v36, %s3150_s16  ;;  %v1151_v36 = vrot.slane %v5538_v4, 1 }
 0x155   : > { %1359 = vrot.lane.b32.xlu0 %v1284_v16, %s3150_s16  ;;  %v5539_v16 = vld [vmem:[#allocation8_spill] sm:$0xff] }
 0x156   : > { %v4364_v62 = vpop.permute.xlu1 %1379  ;;  %v5544_v10 = vrot.slane %v5539_v16, 1 }
 0x157   : > { %v1348_v61 = vpop.permute.xlu0 %1347 }
 0x158   : > { %1885 = vrot.lane.b32.xlu1 %v1817_v32, %s3153_s17  ;;  %v5540_v32 = vld [vmem:[#allocation9_spill] sm:$0xff] }
 0x159   : > { %1853 = vrot.lane.b32.xlu0 %v1777_v7, %s3153_s17  ;;  %v1111_v63 = vrot.slane %v5540_v32, 1  ;;  %v1153_v32 = vsel %vm593_vm0, %v1151_v36, %v5543_v34  ;;  %v2039_v36 = vsel %vm2038_vm6, %v2006_v22, %v4333_v24  ;;  %v5546_v24 = vld [vmem:[#allocation30_spill] sm:$0xff] }
 0x15a   : > { %v4370_v11 = vpop.permute.xlu1 %1381  ;;  %v2072_v56 = vsel %vm2071_vm7, %v2039_v36, %v1348_v61 }
 0x15b   : > { %v4373_v45 = vpop.permute.xlu0 %1349 }
 0x15c   : > { %1393 = vrot.lane.b32.xlu1 %v1326_v9, %s3150_s16  ;;  %v4414_v9 = vld [vmem:[%s3853_s19 + $0x118] sm:$0x3] }
 0x15d   : > { %1361 = vrot.lane.b32.xlu0 %v1286_v31, %s3150_s16  ;;  %v1645_v44 = vrot.slane %v4414_v9, 1 }
 0x15e   : > { %v4380_v35 = vpop.permute.xlu1 %1507 }
 0x15f   : > { %v1476_v3 = vpop.permute.xlu0 %1475  ;;  %v1646_v22 = vsel %vm593_vm0, %v1643_v6, %v1645_v44  ;;  %v4465_v6 = vld [vmem:[%s3603_s13 + $0x70] sm:$0x3] }
 0x160   : > { %1519 = vrot.lane.b32.xlu1 %v4378_v57, %s3151_s20  ;;  %v1779_v57 = vrot.slane %v4389_v50, 2 }
 0x161   : > { %1487 = vrot.lane.b32.xlu0 %v4383_v15, %s3151_s20 }
 0x162   : > { %v4398_v51 = vpop.permute.xlu1 %1509 }
 0x163   : > { %v4401_v20 = vpop.permute.xlu0 %1477 }
 0x164   : > { %1521 = vrot.lane.b32.xlu1 %v4386_v1, %s3151_s20 }
 0x165   : > { %1489 = vrot.lane.b32.xlu0 %v4389_v50, %s3151_s20  ;;  %v4565_v50 = vld [vmem:[%s3853_s19 + $0x120] sm:$0xff] }
 0x166   : > { %v1700_v7 = vpop.permute.xlu1 %1699 }
 0x167   : > { %v1668_v31 = vpop.permute.xlu0 %1667 }
 0x168   : > { %1711 = vrot.lane.b32.xlu1 %v1644_v13, %s3152_s29  ;;  %v1113_v13 = vsel %vm593_vm0, %v1111_v63, %v5544_v10  ;;  %v2105_v63 = vsel %vm2104_vm8, %v2072_v56, %v1476_v3  ;;  %v1819_v10 = vrot.slane %v4386_v1, 2 }
 0x169   : > { %1679 = vrot.lane.b32.xlu0 %v1604_v23, %s3152_s29  ;;  %v5545_v23 = vld [vmem:[#allocation11_spill] sm:$0xff]  ;;  %v2138_v15 = vsel %vm2137_vm9, %v2105_v63, %v1668_v31 }
 0x16a   : > { %v4432_v47 = vpop.permute.xlu1 %1669  ;;  %v1956_v12 = vsel %vm1939_vm3, %v3101_v42, %v5545_v23  ;;  %v4459_v23 = vld [vmem:[%s3603_s13 + $0x130] sm:$0x3] }
 0x16b   : > { %v4443_v34 = vpop.permute.xlu0 %1207  ;;  %v1989_v61 = vsel %vm1972_vm4, %v1956_v12, %v5546_v24  ;;  %v1154_v31 = vrot.slane %v4459_v23, 1 }
 0x16c   : > { %1219 = vrot.lane.b32.xlu1 %v1153_v32, %s3149_s15  ;;  %v1606_v32 = vsel %vm593_vm0, %v1603_v2, %v1605_v38  ;;  %v2022_v3 = vsel %vm2005_vm5, %v1989_v61, %v4158_v54  ;;  %v1820_v54 = vsel %vm770_vm1, %v1818_v33, %v1819_v10  ;;  %v1780_v38 = vsel %vm770_vm1, %v1778_v46, %v1779_v57  ;;  %v3103_v33 = vld [vmem:[%s3221_s8 + $0xc8] sm:$0xff]  ;;  %v5547_v61 = vld [vmem:[#allocation10_spill] sm:$0xff]  ;;  %v5548_v46 = vld [vmem:[#allocation5_spill] sm:$0xff] }
 0x16d   : > { %1187 = vrot.lane.b32.xlu0 %v1113_v13, %s3149_s15  ;;  %v2055_v12 = vsel %vm2038_vm6, %v2022_v3, %v4359_v17 }
 0x16e   : > { %v1844_v42 = vpop.permute.xlu1 %1843  ;;  %v2088_v2 = vsel %vm2071_vm7, %v2055_v12, %v4364_v62  ;;  %v1114_v62 = vrot.slane %v4465_v6, 1 }
 0x16f   : > { %v1702_v36 = vpop.permute.xlu0 %1701  ;;  %v2171_v44 = vsel %vm2170_vm10, %v2138_v15, %v1844_v42  ;;  %v2121_v13 = vsel %vm2104_vm8, %v2088_v2, %v4380_v35  ;;  %v1957_v15 = vsel %vm1939_vm3, %v3103_v33, %v5547_v61  ;;  %v1328_v35 = vrot.slane %v5537_v41, 2 }
 0x170   : > { %1713 = vrot.lane.b32.xlu1 %v1646_v22, %s3152_s29  ;;  %2981 = vmatprep.mubr.msk.f32.mxu0 %vm2208_vm11, %v2171_v44  ;;  %v2154_v56 = vsel %vm2137_vm9, %v2121_v13, %v1700_v7  ;;  %v3102_v22 = vld [vmem:[%s3603_s13 + $0x68] sm:$0xff]  ;;  %v1327_v7 = vrot.slane %v5538_v4, 2  ;;  %v5549_v44 = vld [vmem:[#allocation29_spill] sm:$0xff]  ;;  %v5550_v2 = vrot.slane %v5537_v41, 1  ;;  %v5552_v61 = vrot.slane %v5539_v16, 1 }
 0x171   : > { %1681 = vrot.lane.b32.xlu0 %v1606_v32, %s3152_s29  ;;  %v1288_v24 = vrot.slane %v3102_v22, 2  ;;  %v3104_v32 = vld [vmem:[%s3221_s8 + $0x8] sm:$0xff]  ;;  %v1990_v12 = vsel %vm1972_vm4, %v1957_v15, %v5549_v44 }
 0x172   : > { %v4480_v17 = vpop.permute.xlu1 %1209  ;;  %v1941_v3 = vsel %vm1939_vm3, %v3104_v32, %v5548_v46  ;;  %v1155_v13 = vsel %vm593_vm0, %v5550_v2, %v1154_v31  ;;  %v2023_v33 = vsel %vm2005_vm5, %v1990_v12, %v4154_v5 }
 0x173   : > { %v1876_v63 = vpop.permute.xlu0 %1875  ;;  %v2056_v41 = vsel %vm2038_vm6, %v2023_v33, %v4355_v55  ;;  %v1821_v55 = vrot.slane %v4414_v9, 2 }
 0x174   : > { %1887 = vrot.lane.b32.xlu1 %v1820_v54, %s3153_s17  ;;  %v2187_v42 = vsel %vm2170_vm10, %v2154_v56, %v1876_v63  ;;  %v3105_v54 = vld [vmem:[%s3603_s13 + $0x60] sm:$0xff]  ;;  %v5551_v56 = vld [vmem:[#allocation25_spill] sm:$0xff]  ;;  %v2089_v5 = vsel %vm2071_vm7, %v2056_v41, %v4370_v11 }
 0x175   : > { %1855 = vrot.lane.b32.xlu0 %v1780_v38, %s3153_s17  ;;  %3005 = vmatprep.mubr.msk.f32.mxu1 %vm2208_vm11, %v2187_v42  ;;  %v1287_v22 = vrot.slane %v3105_v54, 2  ;;  %v1974_v63 = vsel %vm1972_vm4, %v1941_v3, %v5551_v56  ;;  %v1115_v38 = vsel %vm593_vm0, %v5552_v61, %v1114_v62  ;;  %v2122_v62 = vsel %vm2104_vm8, %v2089_v5, %v4398_v51  ;;  %v4595_v41 = vld [vmem:[%s3603_s13 + $0x138] sm:$0xff] }
 0x176   : > { %v4510_v4 = vpop.permute.xlu1 %1383  ;;  %v2007_v15 = vsel %vm2005_vm5, %v1974_v63, %v3968_v14  ;;  %v1329_v14 = vsel %vm770_vm1, %v1327_v7, %v1328_v35  ;;  %v2155_v32 = vsel %vm2137_vm9, %v2122_v62, %v1702_v36  ;;  %v1781_v3 = vrot.slane %v4417_v37, 2 }
 0x177   : > { %v4519_v31 = vpop.permute.xlu0 %1351  ;;  %v2040_v42 = vsel %vm2038_vm6, %v2007_v15, %v4330_v28  ;;  %v1289_v46 = vsel %vm770_vm1, %v1287_v22, %v1288_v24  ;;  %v1822_v37 = vsel %vm770_vm1, %v1819_v10, %v1821_v55  ;;  %v1290_v36 = vrot.slane %v4465_v6, 2  ;;  %v4570_v6 = vld [vmem:[%s3853_s19 + $0x60] sm:$0xff] }
 0x178   : > { %1221 = vrot.lane.b32.xlu1 %v1155_v13, %s3149_s15  ;;  %v2073_v16 = vsel %vm2071_vm7, %v2040_v42, %v4373_v45  ;;  %v4573_v13 = vld [vmem:[%s3853_s19 + $0x128] sm:$0xff]  ;;  %v1607_v56 = vrot.slane %v4570_v6, 1  ;;  %v1156_v42 = vrot.slane %v4595_v41, 1 }
 0x179   : > { %1189 = vrot.lane.b32.xlu0 %v1115_v38, %s3149_s15  ;;  %v2106_v28 = vsel %vm2104_vm8, %v2073_v16, %v4401_v20  ;;  %v1330_v20 = vrot.slane %v4459_v23, 2  ;;  %v1291_v23 = vsel %vm770_vm1, %v1288_v24, %v1290_v36  ;;  %v1647_v24 = vrot.slane %v4565_v50, 1  ;;  %v4591_v38 = vld [vmem:[%s3603_s13 + $0x140] sm:$0xff] }
 0x17a   : > { %v1878_v11 = vpop.permute.xlu1 %1877  ;;  %v2139_v45 = vsel %vm2137_vm9, %v2106_v28, %v4432_v47  ;;  %v1782_v47 = vsel %vm770_vm1, %v1779_v57, %v1781_v3  ;;  %v1648_v22 = vrot.slane %v4573_v13, 1  ;;  %v1157_v15 = vrot.slane %v4591_v38, 1  ;;  %v4602_v16 = vld [vmem:[%s3603_s13 + $0x80] sm:$0xff]  ;;  %v4618_v3 = vld [vmem:[%s3853_s19 + $0x70] sm:$0x3] }
 0x17b   : > { %v2188_v51 = vsel %vm2170_vm10, %v2155_v32, %v1878_v11  ;;  %v1846_v44 = vpop.permute.xlu0 %1845  ;;  %v1331_v1 = vsel %vm770_vm1, %v1328_v35, %v1330_v20  ;;  %v4578_v35 = vld [vmem:[%s3853_s19 + $0x68] sm:$0xff]  ;;  %v1117_v62 = vrot.slane %v4602_v16, 1  ;;  %v4613_v11 = vld [vmem:[%s3853_s19 + $0x130] sm:$0x3] }
 0x17c   : > { %v2172_v7 = vsel %vm2170_vm10, %v2139_v45, %v1846_v44  ;;  %1395 = vrot.lane.b32.xlu1 %v1329_v14, %s3150_s16  ;;  %3006 = vmatmul.mubr.msk.f32.vlgmr.msra.gmra.mrb[0].mxu1 %vm2208_vm11, %v2188_v51  ;;  %v1608_v33 = vrot.slane %v4578_v35, 1  ;;  %v1649_v5 = vsel %vm593_vm0, %v1647_v24, %v1648_v22  ;;  %v4606_v14 = vld [vmem:[%s3603_s13 + $0x78] sm:$0xff]  ;;  %v5556_v24 = vld [vmem:[#allocation28_spill] sm:$0xff] }
 0x17d   : > { %1363 = vrot.lane.b32.xlu0 %v1289_v46, %s3150_s16  ;;  %2982 = vmatmul.mubr.msk.f32.vlgmr.msra.gmra.mrb[0].mxu0 %vm2208_vm11, %v2172_v7  ;;  %v1116_v55 = vrot.slane %v4606_v14, 1  ;;  %v3110_v45 = vld [vmem:[%s3221_s8 + $0xd8] sm:$0xff] }
 0x17e   : > { %v4550_v9 = vpop.permute.xlu1 %1385  ;;  %v1609_v32 = vsel %vm593_vm0, %v1607_v56, %v1608_v33  ;;  %v5553_v51 = vld [vmem:[#allocation13_spill] sm:$0xff] }
 0x17f   : > { %v4556_v12 = vpop.permute.xlu0 %1353  ;;  %v1958_v44 = vsel %vm1939_vm3, %v3110_v45, %v5553_v51  ;;  %v3111_v7 = vld [vmem:[%s3221_s8 + $0x18] sm:$0xff]  ;;  %v1118_v51 = vsel %vm593_vm0, %v1116_v55, %v1117_v62  ;;  %v1783_v55 = vrot.slane %v4570_v6, 2 }
 0x180   : > { %1889 = vrot.lane.b32.xlu1 %v1822_v37, %s3153_s17  ;;  %v5554_v37 = vld [vmem:[#allocation2_spill] sm:$0xff] }
 0x181   : > { %1857 = vrot.lane.b32.xlu0 %v1782_v47, %s3153_s17  ;;  %v1942_v20 = vsel %vm1939_vm3, %v3111_v7, %v5554_v37  ;;  %v5555_v47 = vld [vmem:[#allocation32_spill] sm:$0xff] }
 0x182   : > { %v1512_v10 = vpop.permute.xlu1 %1511  ;;  %v1991_v36 = vsel %vm1972_vm4, %v1958_v44, %v5555_v47  ;;  %v1975_v56 = vsel %vm1972_vm4, %v1942_v20, %v5556_v24  ;;  %v1823_v20 = vrot.slane %v4565_v50, 2  ;;  %v1824_v47 = vrot.slane %v4573_v13, 2  ;;  %v4668_v24 = vld [vmem:[%s3603_s13 + $0x148] sm:$0x3] }
 0x183   : > { %v1480_v2 = vpop.permute.xlu0 %1479  ;;  %v2008_v44 = vsel %vm2005_vm5, %v1975_v56, %v3986_v52 }
 0x184   : > { %1397 = vrot.lane.b32.xlu1 %v1331_v1, %s3150_s16  ;;  %v1158_v1 = vsel %vm593_vm0, %v1156_v42, %v1157_v15 }
 0x185   : > { %1365 = vrot.lane.b32.xlu0 %v1291_v23, %s3150_s16  ;;  %v1650_v23 = vrot.slane %v4613_v11, 1 }
 0x186   : > { %v4567_v57 = vpop.permute.xlu1 %1513 }
 0x187   : > { %v4575_v54 = vpop.permute.xlu0 %1481 }
 0x188   : > { %1523 = vrot.lane.b32.xlu1 %v4565_v50, %s3151_s20 }
 0x189   : > { %1491 = vrot.lane.b32.xlu0 %v4570_v6, %s3151_s20  ;;  %v1784_v6 = vrot.slane %v4578_v35, 2 }
 0x18a   : > { %v1704_v63 = vpop.permute.xlu1 %1703 }
 0x18b   : > { %v1672_v61 = vpop.permute.xlu0 %1671 }
 0x18c   : > { %1525 = vrot.lane.b32.xlu1 %v4573_v13, %s3151_s20 }
 0x18d   : > { %1493 = vrot.lane.b32.xlu0 %v4578_v35, %s3151_s20  ;;  %v4769_v35 = vld [vmem:[%s3853_s19 + $0x138] sm:$0xff] }
 0x18e   : > { %v4609_v28 = vpop.permute.xlu1 %1211 }
 0x18f   : > { %v4615_v46 = vpop.permute.xlu0 %1179 }
 0x190   : > { %1715 = vrot.lane.b32.xlu1 %v1649_v5, %s3152_s29  ;;  %v2024_v5 = vsel %vm2005_vm5, %v1991_v36, %v4167_v18  ;;  %v2041_v18 = vsel %vm2038_vm6, %v2008_v44, %v4349_v59  ;;  %v1651_v59 = vsel %vm593_vm0, %v1648_v22, %v1650_v23  ;;  %v3112_v44 = vld [vmem:[%s3221_s8 + $0xe0] sm:$0xff] }
 0x191   : > { %1683 = vrot.lane.b32.xlu0 %v1609_v32, %s3152_s29  ;;  %v1610_v32 = vrot.slane %v4618_v3, 1  ;;  %v2057_v42 = vsel %vm2038_vm6, %v2024_v5, %v4443_v34  ;;  %v2074_v52 = vsel %vm2071_vm7, %v2041_v18, %v4519_v31  ;;  %v4673_v5 = vld [vmem:[%s3603_s13 + $0x88] sm:$0x3] }
 0x192   : > { %v4638_v45 = vpop.permute.xlu1 %1705  ;;  %v2090_v37 = vsel %vm2071_vm7, %v2057_v42, %v4510_v4  ;;  %v2107_v4 = vsel %vm2104_vm8, %v2074_v52, %v1480_v2  ;;  %v1825_v2 = vsel %vm770_vm1, %v1823_v20, %v1824_v47  ;;  %v1119_v23 = vrot.slane %v4673_v5, 1  ;;  %v5557_v42 = vld [vmem:[#allocation12_spill] sm:$0xff]  ;;  %v3113_v20 = vld [vmem:[%s3221_s8 + $0x20] sm:$0xff] }
 0x193   : > { %v4648_v7 = vpop.permute.xlu0 %1673  ;;  %v2123_v34 = vsel %vm2104_vm8, %v2090_v37, %v1512_v10  ;;  %v2140_v31 = vsel %vm2137_vm9, %v2107_v4, %v1672_v61  ;;  %v1785_v61 = vsel %vm770_vm1, %v1783_v55, %v1784_v6  ;;  %v1959_v18 = vsel %vm1939_vm3, %v3112_v44, %v5557_v42  ;;  %v5558_v52 = vld [vmem:[#allocation4_spill] sm:$0xff] }
 0x194   : > { %1223 = vrot.lane.b32.xlu1 %v1158_v1, %s3149_s15  ;;  %v2156_v50 = vsel %vm2137_vm9, %v2123_v34, %v1704_v63  ;;  %v1611_v1 = vsel %vm593_vm0, %v1608_v33, %v1610_v32  ;;  %v1159_v63 = vrot.slane %v4668_v24, 1  ;;  %v1293_v32 = vrot.slane %v4602_v16, 2 }
 0x195   : > { %1191 = vrot.lane.b32.xlu0 %v1118_v51, %s3149_s15  ;;  %v1333_v37 = vrot.slane %v4591_v38, 2  ;;  %v1943_v34 = vsel %vm1939_vm3, %v3113_v20, %v5558_v52  ;;  %v1332_v55 = vrot.slane %v4595_v41, 2  ;;  %v1120_v41 = vsel %vm593_vm0, %v1117_v62, %v1119_v23 }
 0x196   : > { %v1880_v36 = vpop.permute.xlu1 %1879 }
 0x197   : > { %v2189_v10 = vsel %vm2170_vm10, %v2156_v50, %v1880_v36  ;;  %v1848_v56 = vpop.permute.xlu0 %1847  ;;  %v1160_v50 = vsel %vm593_vm0, %v1157_v15, %v1159_v63  ;;  %v1292_v36 = vrot.slane %v4606_v14, 2  ;;  %v1826_v63 = vrot.slane %v4613_v11, 2 }
 0x198   : > { %v2173_v22 = vsel %vm2170_vm10, %v2140_v31, %v1848_v56  ;;  %1717 = vrot.lane.b32.xlu1 %v1651_v59, %s3152_s29  ;;  %3008 = vmatprep.mubr.msk.f32.mxu1 %vm2208_vm11, %v2189_v10  ;;  %v5559_v59 = vld [vmem:[#allocation31_spill] sm:$0xff]  ;;  %v1335_v11 = vrot.slane %v4668_v24, 2 }
 0x199   : > { %1685 = vrot.lane.b32.xlu0 %v1611_v1, %s3152_s29  ;;  %2984 = vmatprep.mubr.msk.f32.mxu0 %vm2208_vm11, %v2173_v22  ;;  %v1992_v4 = vsel %vm1972_vm4, %v1959_v18, %v5559_v59  ;;  %v5560_v1 = vld [vmem:[#allocation27_spill] sm:$0xff]  ;;  %v5561_v22 = vld [vmem:[#allocation33_spill] sm:$0xff]  ;;  %v1294_v23 = vsel %vm770_vm1, %v1292_v36, %v1293_v32 }
 0x19a   : > { %v4684_v33 = vpop.permute.xlu1 %1213  ;;  %v1976_v31 = vsel %vm1972_vm4, %v1943_v34, %v5560_v1  ;;  %v2025_v10 = vsel %vm2005_vm5, %v1992_v4, %v4163_v0  ;;  %v1336_v13 = vsel %vm770_vm1, %v1333_v37, %v1335_v11  ;;  %v4777_v34 = vld [vmem:[%s3853_s19 + $0x140] sm:$0xff] }
 0x19b   : > { %v4690_v51 = vpop.permute.xlu0 %1181  ;;  %v2058_v38 = vsel %vm2038_vm6, %v2025_v10, %v4480_v17  ;;  %v1334_v17 = vsel %vm770_vm1, %v1332_v55, %v1333_v37  ;;  %v4782_v37 = vld [vmem:[%s3853_s19 + $0x80] sm:$0xff]  ;;  %v1653_v59 = vrot.slane %v4777_v34, 1 }
 0x19c   : > { %1891 = vrot.lane.b32.xlu1 %v1825_v2, %s3153_s17  ;;  %v2009_v2 = vsel %vm2005_vm5, %v1976_v31, %v5561_v22  ;;  %v2091_v0 = vsel %vm2071_vm7, %v2058_v38, %v4550_v9  ;;  %v1613_v36 = vrot.slane %v4782_v37, 1  ;;  %v4795_v31 = vld [vmem:[%s3603_s13 + $0x158] sm:$0xff] }
 0x19d   : > { %1859 = vrot.lane.b32.xlu0 %v1785_v61, %s3153_s17  ;;  %v2042_v14 = vsel %vm2038_vm6, %v2009_v2, %v4344_v21  ;;  %v2124_v62 = vsel %vm2104_vm8, %v2091_v0, %v4567_v57  ;;  %v1162_v10 = vrot.slane %v4795_v31, 1  ;;  %v4806_v38 = vld [vmem:[%s3603_s13 + $0x98] sm:$0xff]  ;;  %v4810_v0 = vld [vmem:[%s3603_s13 + $0x90] sm:$0xff] }
 0x19e   : > { %v4713_v56 = vpop.permute.xlu1 %1387  ;;  %v2075_v16 = vsel %vm2071_vm7, %v2042_v14, %v4556_v12  ;;  %v2157_v9 = vsel %vm2137_vm9, %v2124_v62, %v4638_v45  ;;  %v1786_v12 = vrot.slane %v4618_v3, 2  ;;  %v1122_v14 = vrot.slane %v4806_v38, 1 }
 0x19f   : > { %v4722_v15 = vpop.permute.xlu0 %1355  ;;  %v2108_v21 = vsel %vm2104_vm8, %v2075_v16, %v4575_v54  ;;  %v1827_v54 = vsel %vm770_vm1, %v1824_v47, %v1826_v63  ;;  %v1121_v16 = vrot.slane %v4810_v0, 1  ;;  %v4817_v63 = vld [vmem:[%s3853_s19 + $0x148] sm:$0x3] }
 0x1a0   : > { %1225 = vrot.lane.b32.xlu1 %v1160_v50, %s3149_s15  ;;  %v2141_v57 = vsel %vm2137_vm9, %v2108_v21, %v4648_v7  ;;  %v1787_v45 = vsel %vm770_vm1, %v1784_v6, %v1786_v12  ;;  %v1295_v7 = vrot.slane %v4673_v5, 2  ;;  %v4774_v5 = vld [vmem:[%s3853_s19 + $0x78] sm:$0xff] }
 0x1a1   : > { %1193 = vrot.lane.b32.xlu0 %v1120_v41, %s3149_s15  ;;  %v1612_v4 = vrot.slane %v4774_v5, 1  ;;  %v4799_v41 = vld [vmem:[%s3603_s13 + $0x150] sm:$0xff] }
 0x1a2   : > { %v1882_v61 = vpop.permute.xlu1 %1881  ;;  %v1296_v24 = vsel %vm770_vm1, %v1293_v32, %v1295_v7  ;;  %v1652_v32 = vrot.slane %v4769_v35, 1  ;;  %v1161_v22 = vrot.slane %v4799_v41, 1  ;;  %v1828_v7 = vrot.slane %v4769_v35, 2 }
 0x1a3   : > { %v2190_v44 = vsel %vm2170_vm10, %v2157_v9, %v1882_v61  ;;  %v1850_v42 = vpop.permute.xlu0 %1849  ;;  %v4822_v9 = vld [vmem:[%s3853_s19 + $0x88] sm:$0x3] }
 0x1a4   : > { %v2174_v18 = vsel %vm2170_vm10, %v2141_v57, %v1850_v42  ;;  %1399 = vrot.lane.b32.xlu1 %v1334_v17, %s3150_s16  ;;  %3009 = vmatmul.mubr.msk.f32.gmra.mrb[2].mxu1 %vm2208_vm11, %v2190_v44  ;;  %v1654_v2 = vsel %vm593_vm0, %v1652_v32, %v1653_v59  ;;  %v1614_v17 = vsel %vm593_vm0, %v1612_v4, %v1613_v36  ;;  %v1615_v44 = vrot.slane %v4822_v9, 1 }
 0x1a5   : > { %1367 = vrot.lane.b32.xlu0 %v1294_v23, %s3150_s16  ;;  %2985 = vmatmul.mubr.msk.f32.gmra.mrb[2].mxu0 %vm2208_vm11, %v2174_v18  ;;  %v1163_v61 = vsel %vm593_vm0, %v1161_v22, %v1162_v10  ;;  %v1655_v23 = vrot.slane %v4817_v63, 1  ;;  %v1123_v57 = vsel %vm593_vm0, %v1121_v16, %v1122_v14  ;;  %v2059_v42 = vsel %vm2038_vm6, %v4187_v40, %v4609_v28  ;;  %v493_v22 = vld [vmem:[%s3603_s13 + $0x160] sm:$0x3] }
 0x1a6   : > { %v4754_v3 = vpop.permute.xlu1 %1389  ;;  %v1829_v28 = vrot.slane %v4777_v34, 2  ;;  %v1616_v4 = vsel %vm593_vm0, %v1613_v36, %v1615_v44  ;;  %v1297_v44 = vrot.slane %v4810_v0, 2 }
 0x1a7   : > { %v4760_v20 = vpop.permute.xlu0 %1357 }
 0x1a8   : > { %1893 = vrot.lane.b32.xlu1 %v1827_v54, %s3153_s17  ;;  %v5562_v54 = vld [vmem:[#allocation35_spill] sm:$0xff] }
 0x1a9   : > { %1861 = vrot.lane.b32.xlu0 %v1787_v45, %s3153_s17  ;;  %v2043_v11 = vsel %vm2038_vm6, %v5562_v54, %v4615_v46  ;;  %v2092_v45 = vsel %vm2071_vm7, %v2059_v42, %v4713_v56  ;;  %v1656_v46 = vsel %vm593_vm0, %v1653_v59, %v1655_v23 }
 0x1aa   : > { %v1516_v47 = vpop.permute.xlu1 %1515 }
 0x1ab   : > { %v1484_v52 = vpop.permute.xlu0 %1483  ;;  %v2125_v40 = vsel %vm2104_vm8, %v2092_v45, %v1516_v47 }
 0x1ac   : > { %1401 = vrot.lane.b32.xlu1 %v1336_v13, %s3150_s16  ;;  %v1788_v13 = vrot.slane %v4774_v5, 2 }
 0x1ad   : > { %1369 = vrot.lane.b32.xlu0 %v1296_v24, %s3150_s16  ;;  %v2076_v24 = vsel %vm2071_vm7, %v2043_v11, %v4722_v15  ;;  %v2060_v11 = vsel %vm2038_vm6, %v4184_v27, %v4684_v33  ;;  %v1831_v33 = vrot.slane %v4817_v63, 2  ;;  %v1340_v63 = vrot.slane %v493_v22, 2 }
 0x1ae   : > { %v4771_v6 = vpop.permute.xlu1 %1517  ;;  %v2109_v56 = vsel %vm2104_vm8, %v2076_v24, %v1484_v52  ;;  %v1830_v52 = vsel %vm770_vm1, %v1828_v7, %v1829_v28 }
 0x1af   : > { %v4779_v55 = vpop.permute.xlu0 %1485 }
 0x1b0   : > { %1527 = vrot.lane.b32.xlu1 %v4769_v35, %s3151_s20 }
 0x1b1   : > { %1495 = vrot.lane.b32.xlu0 %v4774_v5, %s3151_s20  ;;  %v1789_v5 = vrot.slane %v4782_v37, 2 }
 0x1b2   : > { %v1708_v50 = vpop.permute.xlu1 %1707 }
 0x1b3   : > { %v1676_v1 = vpop.permute.xlu0 %1675  ;;  %v2158_v35 = vsel %vm2137_vm9, %v2125_v40, %v1708_v50  ;;  %v1790_v50 = vsel %vm770_vm1, %v1788_v13, %v1789_v5  ;;  %v1791_v13 = vrot.slane %v4822_v9, 2 }
 0x1b4   : > { %1529 = vrot.lane.b32.xlu1 %v4777_v34, %s3151_s20  ;;  %v2142_v15 = vsel %vm2137_vm9, %v2109_v56, %v1676_v1  ;;  %v469_v34 = vld [vmem:[%s3603_s13 + $0xa0] sm:$0x3] }
 0x1b5   : > { %1497 = vrot.lane.b32.xlu0 %v4782_v37, %s3151_s20  ;;  %v1164_v37 = vrot.slane %v493_v22, 1  ;;  %v1124_v36 = vrot.slane %v469_v34, 1  ;;  %v4924_v22 = vld [vmem:[%s3853_s19 + $0x90] sm:$0xff] }
 0x1b6   : > { %v4813_v62 = vpop.permute.xlu1 %1215 }
 0x1b7   : > { %v4819_v21 = vpop.permute.xlu0 %1183  ;;  %v1165_v23 = vsel %vm593_vm0, %v1162_v10, %v1164_v37  ;;  %v1125_v54 = vsel %vm593_vm0, %v1122_v14, %v1124_v36  ;;  %v2093_v10 = vsel %vm2071_vm7, %v2060_v11, %v4754_v3 }
 0x1b8   : > { %1719 = vrot.lane.b32.xlu1 %v1654_v2, %s3152_s29  ;;  %v2126_v14 = vsel %vm2104_vm8, %v2093_v10, %v4771_v6 }
 0x1b9   : > { %1687 = vrot.lane.b32.xlu0 %v1614_v17, %s3152_s29  ;;  %v1338_v17 = vrot.slane %v4795_v31, 2  ;;  %v5563_v31 = vld [vmem:[#allocation34_spill] sm:$0xff] }
 0x1ba   : > { %v1710_v12 = vpop.permute.xlu1 %1709 }
 0x1bb   : > { %v1678_v18 = vpop.permute.xlu0 %1677  ;;  %v2159_v0 = vsel %vm2137_vm9, %v2126_v14, %v1710_v12  ;;  %v1792_v12 = vsel %vm770_vm1, %v1789_v5, %v1791_v13  ;;  %v1341_v56 = vsel %vm770_vm1, %v1338_v17, %v1340_v63  ;;  %v4919_v5 = vld [vmem:[%s3853_s19 + $0x150] sm:$0xff]  ;;  %v4967_v14 = vld [vmem:[%s3853_s19 + $0x160] sm:$0x3]  ;;  %v1793_v63 = vrot.slane %v4924_v22, 2 }
 0x1bc   : > { %1227 = vrot.lane.b32.xlu1 %v1163_v61, %s3149_s15  ;;  %v1337_v61 = vrot.slane %v4799_v41, 2  ;;  %v2044_v41 = vsel %vm2038_vm6, %v5563_v31, %v4690_v51  ;;  %v4960_v31 = vld [vmem:[%s3603_s13 + $0xa8] sm:$0xff] }
 0x1bd   : > { %1195 = vrot.lane.b32.xlu0 %v1123_v57, %s3149_s15  ;;  %v1298_v57 = vrot.slane %v4806_v38, 2  ;;  %v2077_v38 = vsel %vm2071_vm7, %v2044_v41, %v4760_v20  ;;  %v1126_v41 = vrot.slane %v4960_v31, 1 }
 0x1be   : > { %v1884_v32 = vpop.permute.xlu1 %1883  ;;  %v1339_v27 = vsel %vm770_vm1, %v1337_v61, %v1338_v17  ;;  %v2110_v51 = vsel %vm2104_vm8, %v2077_v38, %v4779_v55  ;;  %v1832_v55 = vsel %vm770_vm1, %v1829_v28, %v1831_v33  ;;  %v4945_v17 = vld [vmem:[%s3603_s13 + $0x170] sm:$0xff]  ;;  %v4972_v33 = vld [vmem:[%s3853_s19 + $0xa0] sm:$0x3] }
 0x1bf   : > { %v2191_v47 = vsel %vm2170_vm10, %v2158_v35, %v1884_v32  ;;  %v1852_v2 = vpop.permute.xlu0 %1851  ;;  %v1299_v7 = vsel %vm770_vm1, %v1297_v44, %v1298_v57  ;;  %v2143_v20 = vsel %vm2137_vm9, %v2110_v51, %v1678_v18  ;;  %v1300_v18 = vrot.slane %v469_v34, 2 }
 0x1c0   : > { %v2175_v16 = vsel %vm2170_vm10, %v2142_v15, %v1852_v2  ;;  %1721 = vrot.lane.b32.xlu1 %v1656_v46, %s3152_s29  ;;  %3011 = vmatprep.mubr.msk.f32.mxu1 %vm2208_vm11, %v2191_v47  ;;  %v4927_v15 = vld [vmem:[%s3853_s19 + $0x158] sm:$0xff]  ;;  %v1657_v34 = vrot.slane %v4919_v5, 1  ;;  %v1167_v61 = vrot.slane %v4945_v17, 1  ;;  %v1620_v13 = vrot.slane %v4972_v33, 1 }
 0x1c1   : > { %1689 = vrot.lane.b32.xlu0 %v1616_v4, %s3152_s29  ;;  %2987 = vmatprep.mubr.msk.f32.mxu0 %vm2208_vm11, %v2175_v16  ;;  %v1301_v28 = vsel %vm770_vm1, %v1298_v57, %v1300_v18  ;;  %v4932_v2 = vld [vmem:[%s3853_s19 + $0x98] sm:$0xff]  ;;  %v1658_v16 = vrot.slane %v4927_v15, 1 }
 0x1c2   : > { %v4861_v59 = vpop.permute.xlu1 %1217  ;;  %v1794_v18 = vrot.slane %v4932_v2, 2 }
 0x1c3   : > { %v4864_v1 = vpop.permute.xlu0 %1185  ;;  %v1659_v44 = vsel %vm593_vm0, %v1657_v34, %v1658_v16 }
 0x1c4   : > { %1895 = vrot.lane.b32.xlu1 %v1830_v52, %s3153_s17  ;;  %v1617_v52 = vrot.slane %v4924_v22, 1 }
 0x1c5   : > { %1863 = vrot.lane.b32.xlu0 %v1790_v50, %s3153_s17  ;;  %v1618_v50 = vrot.slane %v4932_v2, 1 }
 0x1c6   : > { %v4873_v42 = vpop.permute.xlu1 %1391 }
 0x1c7   : > { %v4879_v45 = vpop.permute.xlu0 %1359  ;;  %v1619_v38 = vsel %vm593_vm0, %v1617_v52, %v1618_v50  ;;  %v1795_v52 = vsel %vm770_vm1, %v1793_v63, %v1794_v18 }
 0x1c8   : > { %1229 = vrot.lane.b32.xlu1 %v1165_v23, %s3149_s15  ;;  %v4949_v23 = vld [vmem:[%s3603_s13 + $0x168] sm:$0xff] }
 0x1c9   : > { %1197 = vrot.lane.b32.xlu0 %v1125_v54, %s3149_s15  ;;  %v1166_v57 = vrot.slane %v4949_v23, 1  ;;  %v4956_v54 = vld [vmem:[%s3603_s13 + $0xb0] sm:$0xff] }
 0x1ca   : > { %v1886_v3 = vpop.permute.xlu1 %1885  ;;  %v1127_v11 = vrot.slane %v4956_v54, 1 }
 0x1cb   : > { %v2192_v6 = vsel %vm2170_vm10, %v2159_v0, %v1886_v3  ;;  %v1854_v24 = vpop.permute.xlu0 %1853  ;;  %v1168_v51 = vsel %vm593_vm0, %v1166_v57, %v1167_v61  ;;  %v1660_v0 = vrot.slane %v4967_v14, 1  ;;  %v1342_v57 = vrot.slane %v4949_v23, 2 }
 0x1cc   : > { %v2176_v40 = vsel %vm2170_vm10, %v2143_v20, %v1854_v24  ;;  %1403 = vrot.lane.b32.xlu1 %v1339_v27, %s3150_s16  ;;  %3012 = vmatmul.mubr.msk.f32.gmra.mrb[4].mxu1 %vm2208_vm11, %v2192_v6  ;;  %v2061_v20 = vsel %vm2038_vm6, %v4217_v26, %v4813_v62  ;;  %v2045_v24 = vsel %vm2038_vm6, %v4045_v60, %v4819_v21  ;;  %v1834_v62 = vrot.slane %v4927_v15, 2 }
 0x1cd   : > { %1371 = vrot.lane.b32.xlu0 %v1299_v7, %s3150_s16  ;;  %2988 = vmatmul.mubr.msk.f32.gmra.mrb[4].mxu0 %vm2208_vm11, %v2176_v40  ;;  %v1128_v7 = vsel %vm593_vm0, %v1126_v41, %v1127_v11  ;;  %v2094_v40 = vsel %vm2071_vm7, %v2061_v20, %v4873_v42  ;;  %v1661_v60 = vsel %vm593_vm0, %v1658_v16, %v1660_v0  ;;  %v1303_v41 = vrot.slane %v4956_v54, 2 }
 0x1ce   : > { %v4907_v9 = vpop.permute.xlu1 %1393 }
 0x1cf   : > { %v4910_v46 = vpop.permute.xlu0 %1361 }
 0x1d0   : > { %1897 = vrot.lane.b32.xlu1 %v1832_v55, %s3153_s17  ;;  %v1833_v55 = vrot.slane %v4919_v5, 2 }
 0x1d1   : > { %1865 = vrot.lane.b32.xlu0 %v1792_v12, %s3153_s17  ;;  %v2078_v12 = vsel %vm2071_vm7, %v2045_v24, %v4879_v45 }
 0x1d2   : > { %v1520_v35 = vpop.permute.xlu1 %1519 }
 0x1d3   : > { %v1488_v32 = vpop.permute.xlu0 %1487  ;;  %v2127_v26 = vsel %vm2104_vm8, %v2094_v40, %v1520_v35 }
 0x1d4   : > { %1405 = vrot.lane.b32.xlu1 %v1341_v56, %s3150_s16  ;;  %v2111_v21 = vsel %vm2104_vm8, %v2078_v12, %v1488_v32  ;;  %v1835_v32 = vsel %vm770_vm1, %v1833_v55, %v1834_v62 }
 0x1d5   : > { %1373 = vrot.lane.b32.xlu0 %v1301_v28, %s3150_s16  ;;  %v1621_v28 = vsel %vm593_vm0, %v1618_v50, %v1620_v13 }
 0x1d6   : > { %v4921_v4 = vpop.permute.xlu1 %1521 }
 0x1d7   : > { %v4929_v47 = vpop.permute.xlu0 %1489 }
 0x1d8   : > { %1531 = vrot.lane.b32.xlu1 %v4919_v5, %s3151_s20  ;;  %v496_v5 = vld [vmem:[%s3603_s13 + $0x178] sm:$0x3] }
 0x1d9   : > { %1499 = vrot.lane.b32.xlu0 %v4924_v22, %s3151_s20 }
 0x1da   : > { %v1712_v37 = vpop.permute.xlu1 %1711 }
 0x1db   : > { %v1680_v36 = vpop.permute.xlu0 %1679  ;;  %v2160_v42 = vsel %vm2137_vm9, %v2127_v26, %v1712_v37 }
 0x1dc   : > { %1533 = vrot.lane.b32.xlu1 %v4927_v15, %s3151_s20  ;;  %v2144_v45 = vsel %vm2137_vm9, %v2111_v21, %v1680_v36  ;;  %v472_v15 = vld [vmem:[%s3603_s13 + $0xb8] sm:$0x3]  ;;  %v1343_v36 = vrot.slane %v4945_v17, 2  ;;  %v2046_v17 = vsel %vm2038_vm6, %v4039_v43, %v4864_v1  ;;  %v518_v21 = vld [vmem:[%s3853_s19 + $0xa8] sm:$0xff] }
 0x1dd   : > { %1501 = vrot.lane.b32.xlu0 %v4932_v2, %s3151_s20  ;;  %v1169_v2 = vrot.slane %v496_v5, 1  ;;  %v1129_v37 = vrot.slane %v472_v15, 1  ;;  %v2079_v23 = vsel %vm2071_vm7, %v2046_v17, %v4910_v46 }
 0x1de   : > { %v4963_v10 = vpop.permute.xlu1 %1219  ;;  %v2112_v43 = vsel %vm2104_vm8, %v2079_v23, %v4929_v47 }
 0x1df   : > { %v4969_v27 = vpop.permute.xlu0 %1187  ;;  %v1130_v0 = vsel %vm593_vm0, %v1127_v11, %v1129_v37 }
 0x1e0   : > { %1723 = vrot.lane.b32.xlu1 %v1659_v44, %s3152_s29  ;;  %v1170_v44 = vsel %vm593_vm0, %v1167_v61, %v1169_v2 }
 0x1e1   : > { %1691 = vrot.lane.b32.xlu0 %v1619_v38, %s3152_s29  ;;  %v1302_v38 = vrot.slane %v4960_v31, 2  ;;  %v1796_v31 = vrot.slane %v4972_v33, 2 }
 0x1e2   : > { %v1714_v3 = vpop.permute.xlu1 %1713 }
 0x1e3   : > { %v1682_v6 = vpop.permute.xlu0 %1681  ;;  %v1304_v11 = vsel %vm770_vm1, %v1302_v38, %v1303_v41 }
 0x1e4   : > { %1231 = vrot.lane.b32.xlu1 %v1168_v51, %s3149_s15  ;;  %v2145_v46 = vsel %vm2137_vm9, %v2112_v43, %v1682_v6  ;;  %v1305_v6 = vrot.slane %v472_v15, 2  ;;  %v544_v15 = vld [vmem:[%s3853_s19 + $0x178] sm:$0x3] }
 0x1e5   : > { %1199 = vrot.lane.b32.xlu0 %v1128_v7, %s3149_s15  ;;  %v2062_v7 = vsel %vm2038_vm6, %v4211_v48, %v4861_v59  ;;  %v1344_v48 = vsel %vm770_vm1, %v1342_v57, %v1343_v36  ;;  %v1836_v59 = vrot.slane %v4967_v14, 2  ;;  %v1345_v14 = vrot.slane %v496_v5, 2 }
 0x1e6   : > { %v1888_v56 = vpop.permute.xlu1 %1887  ;;  %v2095_v61 = vsel %vm2071_vm7, %v2062_v7, %v4907_v9  ;;  %v1306_v12 = vsel %vm770_vm1, %v1303_v41, %v1305_v6  ;;  %v1798_v7 = vrot.slane %v518_v21, 2 }
 0x1e7   : > { %v2193_v35 = vsel %vm2170_vm10, %v2160_v42, %v1888_v56  ;;  %v1856_v22 = vpop.permute.xlu0 %1855  ;;  %v2128_v54 = vsel %vm2104_vm8, %v2095_v61, %v4921_v4  ;;  %v1837_v47 = vsel %vm770_vm1, %v1834_v62, %v1836_v59  ;;  %v1346_v55 = vsel %vm770_vm1, %v1343_v36, %v1345_v14  ;;  %v542_v62 = vld [vmem:[%s3853_s19 + $0x168] sm:$0xff]  ;;  %v543_v42 = vld [vmem:[%s3853_s19 + $0x170] sm:$0xff] }
 0x1e8   : > { %v2177_v34 = vsel %vm2170_vm10, %v2144_v45, %v1856_v22  ;;  %1725 = vrot.lane.b32.xlu1 %v1661_v60, %s3152_s29  ;;  %3014 = vmatprep.mubr.msk.f32.mxu1 %vm2208_vm11, %v2193_v35  ;;  %v2161_v1 = vsel %vm2137_vm9, %v2128_v54, %v1714_v3  ;;  %v1797_v3 = vsel %vm770_vm1, %v1794_v18, %v1796_v31  ;;  %v519_v56 = vld [vmem:[%s3853_s19 + $0xb0] sm:$0xff]  ;;  %v1663_v5 = vrot.slane %v543_v42, 1 }
 0x1e9   : > { %1693 = vrot.lane.b32.xlu0 %v1621_v28, %s3152_s29  ;;  %2990 = vmatprep.mubr.msk.f32.mxu0 %vm2208_vm11, %v2177_v34  ;;  %v1662_v28 = vrot.slane %v542_v62, 1  ;;  %v1622_v45 = vrot.slane %v518_v21, 1  ;;  %v1623_v22 = vrot.slane %v519_v56, 1  ;;  %v1838_v41 = vrot.slane %v542_v62, 2 }
 0x1ea   : > { %v5011_v16 = vpop.permute.xlu1 %1221  ;;  %v1839_v38 = vrot.slane %v543_v42, 2  ;;  %v1799_v17 = vrot.slane %v519_v56, 2  ;;  %v2063_v54 = vsel %vm2038_vm6, %v4242_v53, %v4963_v10  ;;  %v2047_v59 = vsel %vm2038_vm6, %v4072_v58, %v4969_v27 }
 0x1eb   : > { %v5014_v50 = vpop.permute.xlu0 %1189  ;;  %v1664_v2 = vsel %vm593_vm0, %v1662_v28, %v1663_v5  ;;  %v1624_v36 = vsel %vm593_vm0, %v1622_v45, %v1623_v22  ;;  %v1841_v53 = vrot.slane %v544_v15, 2 }
 0x1ec   : > { %1899 = vrot.lane.b32.xlu1 %v1835_v32, %s3153_s17  ;;  %v520_v32 = vld [vmem:[%s3853_s19 + $0xb8] sm:$0x3]  ;;  %v1800_v27 = vsel %vm770_vm1, %v1798_v7, %v1799_v17 }
 0x1ed   : > { %1867 = vrot.lane.b32.xlu0 %v1795_v52, %s3153_s17  ;;  %v1665_v52 = vrot.slane %v544_v15, 1  ;;  %v1625_v57 = vrot.slane %v520_v32, 1 }
 0x1ee   : > { %v5023_v51 = vpop.permute.xlu1 %1395 }
 0x1ef   : > { %v5029_v13 = vpop.permute.xlu0 %1363  ;;  %v1626_v23 = vsel %vm593_vm0, %v1623_v22, %v1625_v57  ;;  %v2096_v43 = vsel %vm2071_vm7, %v2063_v54, %v5023_v51  ;;  %v1801_v51 = vrot.slane %v520_v32, 2 }
 0x1f0   : > { %1233 = vrot.lane.b32.xlu1 %v1170_v44, %s3149_s15 }
 0x1f1   : > { %1201 = vrot.lane.b32.xlu0 %v1130_v0, %s3149_s15  ;;  %v1666_v0 = vsel %vm593_vm0, %v1663_v5, %v1665_v52  ;;  %v1802_v14 = vsel %vm770_vm1, %v1799_v17, %v1801_v51 }
 0x1f2   : > { %v1890_v9 = vpop.permute.xlu1 %1889 }
 0x1f3   : > { %v2194_v4 = vsel %vm2170_vm10, %v2161_v1, %v1890_v9  ;;  %v1858_v20 = vpop.permute.xlu0 %1857  ;;  %v2080_v1 = vsel %vm2071_vm7, %v2047_v59, %v5029_v13 }
 0x1f4   : > { %v2178_v24 = vsel %vm2170_vm10, %v2145_v46, %v1858_v20  ;;  %1407 = vrot.lane.b32.xlu1 %v1344_v48, %s3150_s16  ;;  %3015 = vmatmul.mubr.msk.f32.gmra.mrb[6].mxu1 %vm2208_vm11, %v2194_v4 }
 0x1f5   : > { %1375 = vrot.lane.b32.xlu0 %v1304_v11, %s3150_s16  ;;  %2991 = vmatmul.mubr.msk.f32.gmra.mrb[6].mxu0 %vm2208_vm11, %v2178_v24  ;;  %v1840_v11 = vsel %vm770_vm1, %v1838_v41, %v1839_v38  ;;  %v1842_v24 = vsel %vm770_vm1, %v1839_v38, %v1841_v53 }
 0x1f6   : > { %v5057_v33 = vpop.permute.xlu1 %1397 }
 0x1f7   : > { %v5060_v40 = vpop.permute.xlu0 %1365 }
 0x1f8   : > { %1901 = vrot.lane.b32.xlu1 %v1837_v47, %s3153_s17 }
 0x1f9   : > { %1869 = vrot.lane.b32.xlu0 %v1797_v3, %s3153_s17 }
 0x1fa   : > { %v1524_v63 = vpop.permute.xlu1 %1523 }
 0x1fb   : > { %v1492_v26 = vpop.permute.xlu0 %1491  ;;  %v2129_v9 = vsel %vm2104_vm8, %v2096_v43, %v1524_v63 }
 0x1fc   : > { %1409 = vrot.lane.b32.xlu1 %v1346_v55, %s3150_s16  ;;  %v2113_v10 = vsel %vm2104_vm8, %v2080_v1, %v1492_v26  ;;  %v2064_v55 = vsel %vm2038_vm6, %v4238_v19, %v5011_v16 }
 0x1fd   : > { %1377 = vrot.lane.b32.xlu0 %v1306_v12, %s3150_s16  ;;  %v2048_v12 = vsel %vm2038_vm6, %v4068_v25, %v5014_v50  ;;  %v2097_v26 = vsel %vm2071_vm7, %v2064_v55, %v5057_v33 }
 0x1fe   : > { %v5069_v60 = vpop.permute.xlu1 %1525 }
 0x1ff   : > { %v5073_v18 = vpop.permute.xlu0 %1493 }
 0x200   : > { %1535 = vrot.lane.b32.xlu1 %v542_v62, %s3151_s20  ;;  %v2081_v62 = vsel %vm2071_vm7, %v2048_v12, %v5060_v40 }
 0x201   : > { %1503 = vrot.lane.b32.xlu0 %v518_v21, %s3151_s20  ;;  %v2130_v21 = vsel %vm2104_vm8, %v2097_v26, %v5069_v60  ;;  %v5206_v26 = vld [vmem:[%s5464_s6] ss:$0 sm:$0xff] }
 0x202   : > { %v1716_v35 = vpop.permute.xlu1 %1715 }
 0x203   : > { %v1684_v34 = vpop.permute.xlu0 %1683  ;;  %v2162_v31 = vsel %vm2137_vm9, %v2129_v9, %v1716_v35 }
 0x204   : > { %1537 = vrot.lane.b32.xlu1 %v543_v42, %s3151_s20  ;;  %v2146_v46 = vsel %vm2137_vm9, %v2113_v10, %v1684_v34  ;;  %v2114_v42 = vsel %vm2104_vm8, %v2081_v62, %v5073_v18 }
 0x205   : > { %1505 = vrot.lane.b32.xlu0 %v519_v56, %s3151_s20 }
 0x206   : > { %v5083_v37 = vpop.permute.xlu1 %1223 }
 0x207   : > { %v5086_v44 = vpop.permute.xlu0 %1191 }
 0x208   : > { %1727 = vrot.lane.b32.xlu1 %v1664_v2, %s3152_s29  ;;  %v2065_v2 = vsel %vm2038_vm6, %v4273_v29, %v5083_v37 }
 0x209   : > { %1695 = vrot.lane.b32.xlu0 %v1624_v36, %s3152_s29  ;;  %v2049_v36 = vsel %vm2038_vm6, %v4099_v39, %v5086_v44 }
 0x20a   : > { %v1718_v61 = vpop.permute.xlu1 %1717 }
 0x20b   : > { %v1686_v48 = vpop.permute.xlu0 %1685  ;;  %v2163_v56 = vsel %vm2137_vm9, %v2130_v21, %v1718_v61 }
 0x20c   : > { %1729 = vrot.lane.b32.xlu1 %v1666_v0, %s3152_s29  ;;  %v2147_v16 = vsel %vm2137_vm9, %v2114_v42, %v1686_v48 }
 0x20d   : > { %1697 = vrot.lane.b32.xlu0 %v1626_v23, %s3152_s29 }
 0x20e   : > { %v1892_v58 = vpop.permute.xlu1 %1891 }
 0x20f   : > { %v2195_v4 = vsel %vm2170_vm10, %v2162_v31, %v1892_v58  ;;  %v1860_v13 = vpop.permute.xlu0 %1859 }
 0x210   : > { %v2179_v20 = vsel %vm2170_vm10, %v2146_v46, %v1860_v13  ;;  %1903 = vrot.lane.b32.xlu1 %v1840_v11, %s3153_s17  ;;  %3017 = vmatprep.mubr.msk.f32.mxu1 %vm2208_vm11, %v2195_v4 }
 0x211   : > { %1871 = vrot.lane.b32.xlu0 %v1800_v27, %s3153_s17  ;;  %2993 = vmatprep.mubr.msk.f32.mxu0 %vm2208_vm11, %v2179_v20  ;;  %v5189_v20 = vld [vmem:[%s5462_s4] ss:$0 sm:$0xff] }
 0x212   : > { %v1226_v47 = vpop.permute.xlu1 %1225 }
 0x213   : > { %v1194_v3 = vpop.permute.xlu0 %1193  ;;  %v2066_v48 = vsel %vm2038_vm6, %v4267_v8, %v1226_v47 }
 0x214   : > { %1905 = vrot.lane.b32.xlu1 %v1842_v24, %s3153_s17  ;;  %v2050_v43 = vsel %vm2038_vm6, %v4093_v30, %v1194_v3 }
 0x215   : > { %1873 = vrot.lane.b32.xlu0 %v1802_v14, %s3153_s17  ;;  %v5198_v14 = vld [vmem:[%s5463_s5] ss:$0 sm:$0xff] }
 0x216   : > { %v1400_v6 = vpop.permute.xlu1 %1399 }
 0x217   : > { %v1368_v63 = vpop.permute.xlu0 %1367  ;;  %v2098_v57 = vsel %vm2071_vm7, %v2065_v2, %v1400_v6 }
 0x218   : > { %v2082_v41 = vsel %vm2071_vm7, %v2049_v36, %v1368_v63 }
 0x21a   : > { %v1894_v19 = vpop.permute.xlu1 %1893 }
 0x21b   : > { %v2196_v28 = vsel %vm2170_vm10, %v2163_v56, %v1894_v19  ;;  %v1862_v25 = vpop.permute.xlu0 %1861 }
 0x21c   : > { %v2180_v50 = vsel %vm2170_vm10, %v2147_v16, %v1862_v25  ;;  %3018 = vmatmul.mubr.msk.f32.gmra.mrb[8].mxu1 %vm2208_vm11, %v2196_v28 }
 0x21d   : > { %2994 = vmatmul.mubr.msk.f32.gmra.mrb[8].mxu0 %vm2208_vm11, %v2180_v50 }
 0x21e   : > { %v1402_v33 = vpop.permute.xlu1 %1401 }
 0x21f   : > { %v1370_v40 = vpop.permute.xlu0 %1369  ;;  %v2099_v1 = vsel %vm2071_vm7, %v2066_v48, %v1402_v33 }
 0x220   : > { %v2083_v9 = vsel %vm2071_vm7, %v2050_v43, %v1370_v40  ;;  %v5565_v43 = vld [vmem:[#allocation14_spill] sm:$0xff] }
 0x222   : > { %v1528_v60 = vpop.permute.xlu1 %1527 }
 0x223   : > { %v1496_v5 = vpop.permute.xlu0 %1495  ;;  %v2131_v38 = vsel %vm2104_vm8, %v2098_v57, %v1528_v60 }
 0x224   : > { %v2115_v0 = vsel %vm2104_vm8, %v2082_v41, %v1496_v5  ;;  %v5564_v41 = vld [vmem:[#allocation37_spill] sm:$0xff] }
 0x226   : > { %v1530_v45 = vpop.permute.xlu1 %1529 }
 0x227   : > { %v1498_v18 = vpop.permute.xlu0 %1497  ;;  %v2132_v11 = vsel %vm2104_vm8, %v2099_v1, %v1530_v45 }
 0x228   : > { %v2116_v53 = vsel %vm2104_vm8, %v2083_v9, %v1498_v18 }
 0x22a   : > { %v1720_v35 = vpop.permute.xlu1 %1719 }
 0x22b   : > { %v1688_v22 = vpop.permute.xlu0 %1687  ;;  %v2164_v7 = vsel %vm2137_vm9, %v2131_v38, %v1720_v35 }
 0x22c   : > { %v2148_v61 = vsel %vm2137_vm9, %v2115_v0, %v1688_v22 }
 0x22e   : > { %v5140_v15 = vpop.permute.xlu1 %1227 }
 0x22f   : > { %v5142_v34 = vpop.permute.xlu0 %1195  ;;  %v2067_v36 = vsel %vm2038_vm6, %v4300_v49, %v5140_v15 }
 0x230   : > { %v2051_v38 = vsel %vm2038_vm6, %v5564_v41, %v5142_v34 }
 0x232   : > { %v1722_v32 = vpop.permute.xlu1 %1721 }
 0x233   : > { %v1690_v52 = vpop.permute.xlu0 %1689  ;;  %v2165_v10 = vsel %vm2137_vm9, %v2132_v11, %v1722_v32  ;;  %v5566_v11 = vld [vmem:[#allocation36_spill] sm:$0xff] }
 0x234   : > { %v2149_v58 = vsel %vm2137_vm9, %v2116_v53, %v1690_v52 }
 0x236   : > { %v1896_v17 = vpop.permute.xlu1 %1895 }
 0x237   : > { %v2197_v29 = vsel %vm2170_vm10, %v2164_v7, %v1896_v17  ;;  %v1864_v37 = vpop.permute.xlu0 %1863 }
 0x238   : > { %v2181_v23 = vsel %vm2170_vm10, %v2148_v61, %v1864_v37  ;;  %3020 = vmatprep.mubr.msk.f32.mxu1 %vm2208_vm11, %v2197_v29 }
 0x239   : > { %2996 = vmatprep.mubr.msk.f32.mxu0 %vm2208_vm11, %v2181_v23 }
 0x23a   : > { %v5160_v39 = vpop.permute.xlu1 %1229 }
 0x23b   : > { %v5162_v44 = vpop.permute.xlu0 %1197  ;;  %v2068_v1 = vsel %vm2038_vm6, %v5565_v43, %v5160_v39 }
 0x23c   : > { %v2052_v53 = vsel %vm2038_vm6, %v5566_v11, %v5162_v44 }
 0x23e   : > { %v5164_v54 = vpop.permute.xlu1 %1403 }
 0x23f   : > { %v5168_v59 = vpop.permute.xlu0 %1371  ;;  %v2100_v0 = vsel %vm2071_vm7, %v2067_v36, %v5164_v54 }
 0x240   : > { %v2084_v7 = vsel %vm2071_vm7, %v2051_v38, %v5168_v59 }
 0x242   : > { %v1898_v31 = vpop.permute.xlu1 %1897 }
 0x243   : > { %v2198_v8 = vsel %vm2170_vm10, %v2165_v10, %v1898_v31  ;;  %v1866_v27 = vpop.permute.xlu0 %1865 }
 0x244   : > { %v2182_v51 = vsel %vm2170_vm10, %v2149_v58, %v1866_v27  ;;  %3021 = vmatmul.mubr.msk.f32.gmra.mrb[10].mxu1 %vm2208_vm11, %v2198_v8 }
 0x245   : > { %2997 = vmatmul.mubr.msk.f32.gmra.mrb[10].mxu0 %vm2208_vm11, %v2182_v51 }
 0x246   : > { %v5182_v30 = vpop.permute.xlu1 %1405 }
 0x247   : > { %v5184_v46 = vpop.permute.xlu0 %1373  ;;  %v2101_v10 = vsel %vm2071_vm7, %v2068_v1, %v5182_v30  ;;  %v5570_v1 = vld [vmem:[#allocation38_spill] sm:$0xff] }
 0x248   : > { %v2085_v31 = vsel %vm2071_vm7, %v2052_v53, %v5184_v46 }
 0x24a   : > { %v1532_v4 = vpop.permute.xlu1 %1531 }
 0x24b   : > { %v1500_v13 = vpop.permute.xlu0 %1499  ;;  %v2133_v17 = vsel %vm2104_vm8, %v2100_v0, %v1532_v4  ;;  %v5568_v0 = vld [vmem:[#allocation39_spill] sm:$0xff] }
 0x24c   : > { %v2117_v61 = vsel %vm2104_vm8, %v2084_v7, %v1500_v13 }
 0x24e   : > { %v5191_v24 = vpop.permute.xlu1 %1533 }
 0x24f   : > { %v5193_v47 = vpop.permute.xlu0 %1501  ;;  %v3007_v3 = vpop.f32.mrb[0].mxu1  ;;  %v2134_v58 = vsel %vm2104_vm8, %v2101_v10, %v5191_v24 }
 0x250   : > { %v2983_v6 = vpop.f32.mrb[0].mxu0  ;;  %v2558_v55 = vmul.f32 %v3007_v3, %v5189_v20  ;;  %v2455_v63 = vpop.f32.mrb[1].mxu1  ;;  %v2118_v8 = vsel %vm2104_vm8, %v2085_v31, %v5193_v47 }
 0x251   : > { %v2542_v12 = vmul.f32 %v2983_v6, %v5189_v20  ;;  %v2375_v62 = vpop.f32.mrb[1].mxu0  ;;  %v2557_v21 = vmul.f32 %v5189_v20, %v2455_v63 }
 0x252   : > { %v2597_v42 = vadd.f32 %v5198_v14, %v2558_v55  ;;  %v2541_v56 = vmul.f32 %v5189_v20, %v2375_v62  ;;  %v1724_v19 = vpop.permute.xlu1 %1723 }
 0x253   : > { %v2581_v16 = vadd.f32 %v5198_v14, %v2542_v12  ;;  %v2596_v28 = vadd.f32 %v5198_v14, %v2557_v21  ;;  %v1692_v25 = vpop.permute.xlu0 %1691  ;;  %v2166_v29 = vsel %vm2137_vm9, %v2133_v17, %v1724_v19 }
 0x254   : > { %vm2629_vm12 = vcmp.gt.f32.partialorder %v2597_v42, 0.0  ;;  %v2668_v50 = vmul.f32 %v5206_v26, %v2597_v42  ;;  %v2580_v33 = vadd.f32 %v5198_v14, %v2541_v56  ;;  %v2150_v49 = vsel %vm2137_vm9, %v2117_v61, %v1692_v25 }
 0x255   : > { %vm2613_vm13 = vcmp.gt.f32.partialorder %v2581_v16, 0.0  ;;  %v2652_v40 = vmul.f32 %v5206_v26, %v2581_v16  ;;  %vm2628_vm14 = vcmp.gt.f32.partialorder %v2596_v28, 0.0  ;;  %v2667_v60 = vmul.f32 %v5206_v26, %v2596_v28 }
 0x256   : > { %v2700_v5 = vsel %vm2629_vm12, %v2597_v42, %v2668_v50  ;;  %vm2612_vm15 = vcmp.gt.f32.partialorder %v2580_v33, 0.0  ;;  %v2651_v45 = vmul.f32 %v5206_v26, %v2580_v33  ;;  %v5223_v18 = vpop.permute.xlu1 %1231 }
 0x257   : > { %v2684_v35 = vsel %vm2613_vm13, %v2581_v16, %v2652_v40  ;;  %2732 = vst.msk [vmem:[%s5216_s22 + $0x88] sm:$0xff] %vm1972_vm4, %v2700_v5  ;;  %v2699_v22 = vsel %vm2628_vm14, %v2596_v28, %v2667_v60  ;;  %v5227_v32 = vpop.permute.xlu0 %1199 }
 0x258   : > { %2716 = vst.msk [vmem:[%s5216_s22 + $0x8] sm:$0xff] %vm1972_vm4, %v2684_v35  ;;  %v2683_v2 = vsel %vm2612_vm15, %v2580_v33, %v2651_v45  ;;  %2731 = vst.msk [vmem:[%s5216_s22 + $0x80] sm:$0xff] %vm1972_vm4, %v2699_v22  ;;  %v2053_v7 = vsel %vm2038_vm6, %v5568_v0, %v5227_v32  ;;  %v5569_v32 = vld [vmem:[#allocation6_spill] sm:$0xff] }
 0x259   : > { %2715 = vst.msk [vmem:[%s5216_s22] sm:$0xff] %vm1972_vm4, %v2683_v2 }
 0x25a   : > { %v1726_v52 = vpop.permute.xlu1 %1725 }
 0x25b   : > { %v1694_v57 = vpop.permute.xlu0 %1693  ;;  %v2167_v27 = vsel %vm2137_vm9, %v2134_v58, %v1726_v52  ;;  %v5567_v52 = vld [vmem:[#allocation15_spill] sm:$0xff] }
 0x25c   : > { %v2151_v51 = vsel %vm2137_vm9, %v2118_v8, %v1694_v57  ;;  %v2069_v36 = vsel %vm2038_vm6, %v5567_v52, %v5223_v18 }
 0x25e   : > { %v1900_v37 = vpop.permute.xlu1 %1899 }
 0x25f   : > { %v2199_v15 = vsel %vm2170_vm10, %v2166_v29, %v1900_v37  ;;  %v1868_v23 = vpop.permute.xlu0 %1867 }
 0x260   : > { %v2183_v34 = vsel %vm2170_vm10, %v2150_v49, %v1868_v23  ;;  %3023 = vmatprep.mubr.msk.f32.mxu1 %vm2208_vm11, %v2199_v15 }
 0x261   : > { %2999 = vmatprep.mubr.msk.f32.mxu0 %vm2208_vm11, %v2183_v34 }
 0x262   : > { %v5253_v54 = vpop.permute.xlu1 %1233 }
 0x263   : > { %v5255_v48 = vpop.permute.xlu0 %1201  ;;  %v2070_v23 = vsel %vm2038_vm6, %v5569_v32, %v5253_v54 }
 0x266   : > { %v1408_v59 = vpop.permute.xlu1 %1407 }
 0x267   : > { %v1376_v9 = vpop.permute.xlu0 %1375  ;;  %v2102_v17 = vsel %vm2071_vm7, %v2069_v36, %v1408_v59 }
 0x268   : > { %v2086_v29 = vsel %vm2071_vm7, %v2053_v7, %v1376_v9  ;;  %v2054_v9 = vsel %vm2038_vm6, %v5570_v1, %v5255_v48 }
 0x26a   : > { %v1902_v39 = vpop.permute.xlu1 %1901 }
 0x26b   : > { %v2200_v4 = vsel %vm2170_vm10, %v2167_v27, %v1902_v39  ;;  %v1870_v44 = vpop.permute.xlu0 %1869 }
 0x26c   : > { %v2184_v13 = vsel %vm2170_vm10, %v2151_v51, %v1870_v44  ;;  %3024 = vmatmul.mubr.msk.f32.gmra.mrb[12].mxu1 %vm2208_vm11, %v2200_v4 }
 0x26d   : > { %3000 = vmatmul.mubr.msk.f32.gmra.mrb[12].mxu0 %vm2208_vm11, %v2184_v13 }
 0x26e   : > { %v1410_v30 = vpop.permute.xlu1 %1409 }
 0x26f   : > { %v1378_v46 = vpop.permute.xlu0 %1377  ;;  %v2103_v11 = vsel %vm2071_vm7, %v2070_v23, %v1410_v30 }
 0x270   : > { %v2087_v10 = vsel %vm2071_vm7, %v2054_v9, %v1378_v46 }
 0x272   : > { %v1536_v24 = vpop.permute.xlu1 %1535 }
 0x273   : > { %v1504_v3 = vpop.permute.xlu0 %1503  ;;  %v2135_v18 = vsel %vm2104_vm8, %v2102_v17, %v1536_v24 }
 0x274   : > { %v2119_v37 = vsel %vm2104_vm8, %v2086_v29, %v1504_v3 }
 0x276   : > { %v1538_v6 = vpop.permute.xlu1 %1537 }
 0x277   : > { %v1506_v47 = vpop.permute.xlu0 %1505  ;;  %v3010_v55 = vpop.f32.mrb[2].mxu1  ;;  %v2136_v31 = vsel %vm2104_vm8, %v2103_v11, %v1538_v6 }
 0x278   : > { %v2986_v63 = vpop.f32.mrb[2].mxu0  ;;  %v2560_v12 = vmul.f32 %v3010_v55, %v5189_v20  ;;  %v2465_v62 = vpop.f32.mrb[3].mxu1  ;;  %v2120_v54 = vsel %vm2104_vm8, %v2087_v10, %v1506_v47 }
 0x279   : > { %v2544_v21 = vmul.f32 %v2986_v63, %v5189_v20  ;;  %v2385_v42 = vpop.f32.mrb[3].mxu0  ;;  %v2559_v56 = vmul.f32 %v5189_v20, %v2465_v62 }
 0x27a   : > { %v2599_v19 = vadd.f32 %v5198_v14, %v2560_v12  ;;  %v2543_v16 = vmul.f32 %v5189_v20, %v2385_v42  ;;  %v1728_v28 = vpop.permute.xlu1 %1727 }
 0x27b   : > { %v2583_v25 = vadd.f32 %v5198_v14, %v2544_v21  ;;  %v2598_v50 = vadd.f32 %v5198_v14, %v2559_v56  ;;  %v1696_v33 = vpop.permute.xlu0 %1695  ;;  %v2168_v49 = vsel %vm2137_vm9, %v2135_v18, %v1728_v28 }
 0x27c   : > { %vm2631_vm0 = vcmp.gt.f32.partialorder %v2599_v19, 0.0  ;;  %v2670_v40 = vmul.f32 %v5206_v26, %v2599_v19  ;;  %v2582_v60 = vadd.f32 %v5198_v14, %v2543_v16  ;;  %v2152_v34 = vsel %vm2137_vm9, %v2119_v37, %v1696_v33 }
 0x27d   : > { %vm2615_vm1 = vcmp.gt.f32.partialorder %v2583_v25, 0.0  ;;  %v2654_v5 = vmul.f32 %v5206_v26, %v2583_v25  ;;  %vm2630_vm2 = vcmp.gt.f32.partialorder %v2598_v50, 0.0  ;;  %v2669_v45 = vmul.f32 %v5206_v26, %v2598_v50 }
 0x27e   : > { %v2702_v35 = vsel %vm2631_vm0, %v2599_v19, %v2670_v40  ;;  %vm2614_vm3 = vcmp.gt.f32.partialorder %v2582_v60, 0.0  ;;  %v2653_v22 = vmul.f32 %v5206_v26, %v2582_v60  ;;  %v1730_v2 = vpop.permute.xlu1 %1729 }
 0x27f   : > { %v2686_v57 = vsel %vm2615_vm1, %v2583_v25, %v2654_v5  ;;  %2734 = vst.msk [vmem:[%s5216_s22 + $0x98] sm:$0xff] %vm1972_vm4, %v2702_v35  ;;  %v2701_v41 = vsel %vm2630_vm2, %v2598_v50, %v2669_v45  ;;  %v1698_v38 = vpop.permute.xlu0 %1697  ;;  %v2169_v58 = vsel %vm2137_vm9, %v2136_v31, %v1730_v2 }
 0x280   : > { %2718 = vst.msk [vmem:[%s5216_s22 + $0x18] sm:$0xff] %vm1972_vm4, %v2686_v57  ;;  %v2685_v61 = vsel %vm2614_vm3, %v2582_v60, %v2653_v22  ;;  %2733 = vst.msk [vmem:[%s5216_s22 + $0x90] sm:$0xff] %vm1972_vm4, %v2701_v41  ;;  %v2153_v27 = vsel %vm2137_vm9, %v2120_v54, %v1698_v38 }
 0x281   : > { %2717 = vst.msk [vmem:[%s5216_s22 + $0x10] sm:$0xff] %vm1972_vm4, %v2685_v61 }
 0x282   : > { %v1904_v15 = vpop.permute.xlu1 %1903 }
 0x283   : > { %v2201_v59 = vsel %vm2170_vm10, %v2168_v49, %v1904_v15  ;;  %v1872_v43 = vpop.permute.xlu0 %1871 }
 0x284   : > { %v2185_v53 = vsel %vm2170_vm10, %v2152_v34, %v1872_v43  ;;  %3026 = vmatprep.mubr.msk.f32.mxu1 %vm2208_vm11, %v2201_v59 }
 0x285   : > { %3002 = vmatprep.mubr.msk.f32.mxu0 %vm2208_vm11, %v2185_v53 }
 0x286   : > { %v1906_v8 = vpop.permute.xlu1 %1905 }
 0x287   : > { %v2202_v48 = vsel %vm2170_vm10, %v2169_v58, %v1906_v8  ;;  %v1874_v39 = vpop.permute.xlu0 %1873 }
 0x288   : > { %v2186_v51 = vsel %vm2170_vm10, %v2153_v27, %v1874_v39  ;;  %3027 = vmatmul.mubr.msk.f32.gmra.mrb[14].mxu1 %vm2208_vm11, %v2202_v48 }
 0x289   : > { %3003 = vmatmul.mubr.msk.f32.gmra.mrb[14].mxu0 %vm2208_vm11, %v2186_v51 }
 0x29f   : > { %v3013_v4 = vpop.f32.mrb[4].mxu1 }
 0x2a0   : > { %v2989_v44 = vpop.f32.mrb[4].mxu0  ;;  %v2562_v13 = vmul.f32 %v3013_v4, %v5189_v20  ;;  %v2475_v30 = vpop.f32.mrb[5].mxu1 }
 0x2a1   : > { %v2546_v46 = vmul.f32 %v2989_v44, %v5189_v20  ;;  %v2395_v24 = vpop.f32.mrb[5].mxu0  ;;  %v2561_v3 = vmul.f32 %v5189_v20, %v2475_v30 }
 0x2a2   : > { %v2601_v6 = vadd.f32 %v5198_v14, %v2562_v13  ;;  %v2545_v47 = vmul.f32 %v5189_v20, %v2395_v24 }
 0x2a3   : > { %v2585_v55 = vadd.f32 %v5198_v14, %v2546_v46  ;;  %v2600_v63 = vadd.f32 %v5198_v14, %v2561_v3 }
 0x2a4   : > { %vm2633_vm5 = vcmp.gt.f32.partialorder %v2601_v6, 0.0  ;;  %v2672_v12 = vmul.f32 %v5206_v26, %v2601_v6  ;;  %v2584_v62 = vadd.f32 %v5198_v14, %v2545_v47 }
 0x2a5   : > { %vm2617_vm6 = vcmp.gt.f32.partialorder %v2585_v55, 0.0  ;;  %v2656_v21 = vmul.f32 %v5206_v26, %v2585_v55  ;;  %vm2632_vm7 = vcmp.gt.f32.partialorder %v2600_v63, 0.0  ;;  %v2671_v42 = vmul.f32 %v5206_v26, %v2600_v63 }
 0x2a6   : > { %v2704_v56 = vsel %vm2633_vm5, %v2601_v6, %v2672_v12  ;;  %vm2616_vm8 = vcmp.gt.f32.partialorder %v2584_v62, 0.0  ;;  %v2655_v19 = vmul.f32 %v5206_v26, %v2584_v62 }
 0x2a7   : > { %v2688_v16 = vsel %vm2617_vm6, %v2585_v55, %v2656_v21  ;;  %2736 = vst.msk [vmem:[%s5216_s22 + $0xa8] sm:$0xff] %vm1972_vm4, %v2704_v56  ;;  %v2703_v28 = vsel %vm2632_vm7, %v2600_v63, %v2671_v42 }
 0x2a8   : > { %2720 = vst.msk [vmem:[%s5216_s22 + $0x28] sm:$0xff] %vm1972_vm4, %v2688_v16  ;;  %v2687_v25 = vsel %vm2616_vm8, %v2584_v62, %v2655_v19  ;;  %2735 = vst.msk [vmem:[%s5216_s22 + $0xa0] sm:$0xff] %vm1972_vm4, %v2703_v28 }
 0x2a9   : > { %2719 = vst.msk [vmem:[%s5216_s22 + $0x20] sm:$0xff] %vm1972_vm4, %v2687_v25 }
 0x2c7   : > { %v3016_v50 = vpop.f32.mrb[6].mxu1 }
 0x2c8   : > { %v2992_v33 = vpop.f32.mrb[6].mxu0  ;;  %v2564_v40 = vmul.f32 %v3016_v50, %v5189_v20  ;;  %v2485_v60 = vpop.f32.mrb[7].mxu1 }
 0x2c9   : > { %v2548_v5 = vmul.f32 %v2992_v33, %v5189_v20  ;;  %v2405_v45 = vpop.f32.mrb[7].mxu0  ;;  %v2563_v35 = vmul.f32 %v5189_v20, %v2485_v60 }
 0x2ca   : > { %v2603_v22 = vadd.f32 %v5198_v14, %v2564_v40  ;;  %v2547_v2 = vmul.f32 %v5189_v20, %v2405_v45 }
 0x2cb   : > { %v2587_v52 = vadd.f32 %v5198_v14, %v2548_v5  ;;  %v2602_v36 = vadd.f32 %v5198_v14, %v2563_v35 }
 0x2cc   : > { %vm2635_vm9 = vcmp.gt.f32.partialorder %v2603_v22, 0.0  ;;  %v2674_v57 = vmul.f32 %v5206_v26, %v2603_v22  ;;  %v2586_v41 = vadd.f32 %v5198_v14, %v2547_v2 }
 0x2cd   : > { %vm2619_vm10 = vcmp.gt.f32.partialorder %v2587_v52, 0.0  ;;  %v2658_v38 = vmul.f32 %v5206_v26, %v2587_v52  ;;  %vm2634_vm11 = vcmp.gt.f32.partialorder %v2602_v36, 0.0  ;;  %v2673_v0 = vmul.f32 %v5206_v26, %v2602_v36 }
 0x2ce   : > { %v2706_v7 = vsel %vm2635_vm9, %v2603_v22, %v2674_v57  ;;  %vm2618_vm12 = vcmp.gt.f32.partialorder %v2586_v41, 0.0  ;;  %v2657_v17 = vmul.f32 %v5206_v26, %v2586_v41 }
 0x2cf   : > { %v2690_v61 = vsel %vm2619_vm10, %v2587_v52, %v2658_v38  ;;  %2738 = vst.msk [vmem:[%s5216_s22 + $0xb8] sm:$0xff] %vm1972_vm4, %v2706_v7  ;;  %v2705_v29 = vsel %vm2634_vm11, %v2602_v36, %v2673_v0 }
 0x2d0   : > { %2722 = vst.msk [vmem:[%s5216_s22 + $0x38] sm:$0xff] %vm1972_vm4, %v2690_v61  ;;  %v2689_v18 = vsel %vm2618_vm12, %v2586_v41, %v2657_v17  ;;  %2737 = vst.msk [vmem:[%s5216_s22 + $0xb0] sm:$0xff] %vm1972_vm4, %v2705_v29 }
 0x2d1   : > { %2721 = vst.msk [vmem:[%s5216_s22 + $0x30] sm:$0xff] %vm1972_vm4, %v2689_v18 }
 0x2ef   : > { %v3019_v37 = vpop.f32.mrb[8].mxu1 }
 0x2f0   : > { %v2995_v49 = vpop.f32.mrb[8].mxu0  ;;  %v2566_v15 = vmul.f32 %v3019_v37, %v5189_v20  ;;  %v2495_v32 = vpop.f32.mrb[9].mxu1 }
 0x2f1   : > { %v2550_v23 = vmul.f32 %v2995_v49, %v5189_v20  ;;  %v2415_v34 = vpop.f32.mrb[9].mxu0  ;;  %v2565_v59 = vmul.f32 %v5189_v20, %v2495_v32 }
 0x2f2   : > { %v2605_v43 = vadd.f32 %v5198_v14, %v2566_v15  ;;  %v2549_v1 = vmul.f32 %v5189_v20, %v2415_v34 }
 0x2f3   : > { %v2589_v9 = vadd.f32 %v5198_v14, %v2550_v23  ;;  %v2604_v11 = vadd.f32 %v5198_v14, %v2565_v59 }
 0x2f4   : > { %vm2637_vm13 = vcmp.gt.f32.partialorder %v2605_v43, 0.0  ;;  %v2676_v53 = vmul.f32 %v5206_v26, %v2605_v43  ;;  %v2588_v10 = vadd.f32 %v5198_v14, %v2549_v1 }
 0x2f5   : > { %vm2621_vm14 = vcmp.gt.f32.partialorder %v2589_v9, 0.0  ;;  %v2660_v31 = vmul.f32 %v5206_v26, %v2589_v9  ;;  %vm2636_vm15 = vcmp.gt.f32.partialorder %v2604_v11, 0.0  ;;  %v2675_v54 = vmul.f32 %v5206_v26, %v2604_v11 }
 0x2f6   : > { %v2708_v58 = vsel %vm2637_vm13, %v2605_v43, %v2676_v53  ;;  %vm2620_vm0 = vcmp.gt.f32.partialorder %v2588_v10, 0.0  ;;  %v2659_v8 = vmul.f32 %v5206_v26, %v2588_v10 }
 0x2f7   : > { %v2692_v27 = vsel %vm2621_vm14, %v2589_v9, %v2660_v31  ;;  %2740 = vst.msk [vmem:[%s5216_s22 + $0xc8] sm:$0xff] %vm1972_vm4, %v2708_v58  ;;  %v2707_v48 = vsel %vm2636_vm15, %v2604_v11, %v2675_v54 }
 0x2f8   : > { %2724 = vst.msk [vmem:[%s5216_s22 + $0x48] sm:$0xff] %vm1972_vm4, %v2692_v27  ;;  %v2691_v39 = vsel %vm2620_vm0, %v2588_v10, %v2659_v8  ;;  %2739 = vst.msk [vmem:[%s5216_s22 + $0xc0] sm:$0xff] %vm1972_vm4, %v2707_v48 }
 0x2f9   : > { %2723 = vst.msk [vmem:[%s5216_s22 + $0x40] sm:$0xff] %vm1972_vm4, %v2691_v39 }
 0x317   : > { %v3022_v51 = vpop.f32.mrb[10].mxu1 }
 0x318   : > { %v2998_v4 = vpop.f32.mrb[10].mxu0  ;;  %v2568_v44 = vmul.f32 %v3022_v51, %v5189_v20  ;;  %v2505_v13 = vpop.f32.mrb[11].mxu1 }
 0x319   : > { %v2552_v30 = vmul.f32 %v2998_v4, %v5189_v20  ;;  %v2425_v46 = vpop.f32.mrb[11].mxu0  ;;  %v2567_v24 = vmul.f32 %v5189_v20, %v2505_v13 }
 0x31a   : > { %v2607_v3 = vadd.f32 %v5198_v14, %v2568_v44  ;;  %v2551_v6 = vmul.f32 %v5189_v20, %v2425_v46 }
 0x31b   : > { %v2591_v47 = vadd.f32 %v5198_v14, %v2552_v30  ;;  %v2606_v55 = vadd.f32 %v5198_v14, %v2567_v24 }
 0x31c   : > { %vm2639_vm1 = vcmp.gt.f32.partialorder %v2607_v3, 0.0  ;;  %v2678_v63 = vmul.f32 %v5206_v26, %v2607_v3  ;;  %v2590_v12 = vadd.f32 %v5198_v14, %v2551_v6 }
 0x31d   : > { %vm2623_vm2 = vcmp.gt.f32.partialorder %v2591_v47, 0.0  ;;  %v2662_v62 = vmul.f32 %v5206_v26, %v2591_v47  ;;  %vm2638_vm3 = vcmp.gt.f32.partialorder %v2606_v55, 0.0  ;;  %v2677_v21 = vmul.f32 %v5206_v26, %v2606_v55 }
 0x31e   : > { %v2710_v42 = vsel %vm2639_vm1, %v2607_v3, %v2678_v63  ;;  %vm2622_vm5 = vcmp.gt.f32.partialorder %v2590_v12, 0.0  ;;  %v2661_v56 = vmul.f32 %v5206_v26, %v2590_v12 }
 0x31f   : > { %v2694_v19 = vsel %vm2623_vm2, %v2591_v47, %v2662_v62  ;;  %2742 = vst.msk [vmem:[%s5216_s22 + $0xd8] sm:$0xff] %vm1972_vm4, %v2710_v42  ;;  %v2709_v16 = vsel %vm2638_vm3, %v2606_v55, %v2677_v21 }
 0x320   : > { %2726 = vst.msk [vmem:[%s5216_s22 + $0x58] sm:$0xff] %vm1972_vm4, %v2694_v19  ;;  %v2693_v28 = vsel %vm2622_vm5, %v2590_v12, %v2661_v56  ;;  %2741 = vst.msk [vmem:[%s5216_s22 + $0xd0] sm:$0xff] %vm1972_vm4, %v2709_v16 }
 0x321   : > { %2725 = vst.msk [vmem:[%s5216_s22 + $0x50] sm:$0xff] %vm1972_vm4, %v2693_v28 }
 0x33f   : > { %v3025_v25 = vpop.f32.mrb[12].mxu1 }
 0x340   : > { %v3001_v50 = vpop.f32.mrb[12].mxu0  ;;  %v2570_v33 = vmul.f32 %v3025_v25, %v5189_v20  ;;  %v2515_v40 = vpop.f32.mrb[13].mxu1 }
 0x341   : > { %v2554_v60 = vmul.f32 %v3001_v50, %v5189_v20  ;;  %v2435_v5 = vpop.f32.mrb[13].mxu0  ;;  %v2569_v45 = vmul.f32 %v5189_v20, %v2515_v40 }
 0x342   : > { %v2609_v35 = vadd.f32 %v5198_v14, %v2570_v33  ;;  %v2553_v22 = vmul.f32 %v5189_v20, %v2435_v5 }
 0x343   : > { %v2593_v2 = vadd.f32 %v5198_v14, %v2554_v60  ;;  %v2608_v52 = vadd.f32 %v5198_v14, %v2569_v45 }
 0x344   : > { %vm2641_vm6 = vcmp.gt.f32.partialorder %v2609_v35, 0.0  ;;  %v2680_v36 = vmul.f32 %v5206_v26, %v2609_v35  ;;  %v2592_v57 = vadd.f32 %v5198_v14, %v2553_v22 }
 0x345   : > { %vm2625_vm7 = vcmp.gt.f32.partialorder %v2593_v2, 0.0  ;;  %v2664_v41 = vmul.f32 %v5206_v26, %v2593_v2  ;;  %vm2640_vm8 = vcmp.gt.f32.partialorder %v2608_v52, 0.0  ;;  %v2679_v38 = vmul.f32 %v5206_v26, %v2608_v52 }
 0x346   : > { %v2712_v0 = vsel %vm2641_vm6, %v2609_v35, %v2680_v36  ;;  %vm2624_vm9 = vcmp.gt.f32.partialorder %v2592_v57, 0.0  ;;  %v2663_v7 = vmul.f32 %v5206_v26, %v2592_v57 }
 0x347   : > { %v2696_v17 = vsel %vm2625_vm7, %v2593_v2, %v2664_v41  ;;  %2744 = vst.msk [vmem:[%s5216_s22 + $0xe8] sm:$0xff] %vm1972_vm4, %v2712_v0  ;;  %v2711_v61 = vsel %vm2640_vm8, %v2608_v52, %v2679_v38 }
 0x348   : > { %2728 = vst.msk [vmem:[%s5216_s22 + $0x68] sm:$0xff] %vm1972_vm4, %v2696_v17  ;;  %v2695_v29 = vsel %vm2624_vm9, %v2592_v57, %v2663_v7  ;;  %2743 = vst.msk [vmem:[%s5216_s22 + $0xe0] sm:$0xff] %vm1972_vm4, %v2711_v61 }
 0x349   : > { %2727 = vst.msk [vmem:[%s5216_s22 + $0x60] sm:$0xff] %vm1972_vm4, %v2695_v29 }
 0x35b   : > { %v3028_v18 = vpop.f32.mrb[14].mxu1 }
 0x35c   : > { %v3004_v37 = vpop.f32.mrb[14].mxu0  ;;  %v2572_v49 = vmul.f32 %v3028_v18, %v5189_v20  ;;  %v2525_v15 = vpop.f32.mrb[15].mxu1 }
 0x35d   : > { %v2556_v32 = vmul.f32 %v3004_v37, %v5189_v20  ;;  %v2445_v23 = vpop.f32.mrb[15].mxu0  ;;  %v2571_v34 = vmul.f32 %v5189_v20, %v2525_v15 }
 0x35e   : > { %v2611_v59 = vadd.f32 %v5198_v14, %v2572_v49  ;;  %v2555_v43 = vmul.f32 %v5189_v20, %v2445_v23 }
 0x35f   : > { %v2595_v1 = vadd.f32 %v5198_v14, %v2556_v32  ;;  %v2610_v9 = vadd.f32 %v5198_v14, %v2571_v34 }
 0x360   : > { %vm2643_vm10 = vcmp.gt.f32.partialorder %v2611_v59, 0.0  ;;  %v2682_v11 = vmul.f32 %v5206_v26, %v2611_v59  ;;  %v2594_v53 = vadd.f32 %v5198_v14, %v2555_v43 }
 0x361   : > { %vm2627_vm11 = vcmp.gt.f32.partialorder %v2595_v1, 0.0  ;;  %v2666_v10 = vmul.f32 %v5206_v26, %v2595_v1  ;;  %vm2642_vm12 = vcmp.gt.f32.partialorder %v2610_v9, 0.0  ;;  %v2681_v31 = vmul.f32 %v5206_v26, %v2610_v9 }
 0x362   : > { %v2714_v54 = vsel %vm2643_vm10, %v2611_v59, %v2682_v11  ;;  %vm2626_vm13 = vcmp.gt.f32.partialorder %v2594_v53, 0.0  ;;  %v2665_v20 = vmul.f32 %v5206_v26, %v2594_v53 }
 0x363   : > { %v2698_v58 = vsel %vm2627_vm11, %v2595_v1, %v2666_v10  ;;  %2746 = vst.msk [vmem:[%s5216_s22 + $0xf8] sm:$0xff] %vm1972_vm4, %v2714_v54  ;;  %v2713_v8 = vsel %vm2642_vm12, %v2610_v9, %v2681_v31 }
 0x364   : > { %2730 = vst.msk [vmem:[%s5216_s22 + $0x78] sm:$0xff] %vm1972_vm4, %v2698_v58  ;;  %v2697_v27 = vsel %vm2626_vm13, %v2594_v53, %v2665_v20  ;;  %2745 = vst.msk [vmem:[%s5216_s22 + $0xf0] sm:$0xff] %vm1972_vm4, %v2713_v8 }
 0x365   : > { %2729 = vst.msk [vmem:[%s5216_s22 + $0x70] sm:$0xff] %vm1972_vm4, %v2697_v27 }
 0x366 PF: > { %s17_s26 = sadd.s32 1, %s3144_s26   ;;  %s5571_s24 = smov %s3140_s25 }
 0x367   : > { %p14_p5 = scmp.ge.s32.totalorder %s17_s26, 4   ;;  %s5572_s25 = smov %s5574_s27 }
 0x369   :  { %16 = sbr.rel (!%p14_p5) target bundleno = 2 (0x2), region = 84 }

// kernel: single_conv.2
= control target key start
LH: loop header
LB: loop body
LE: loop exit
PB: predicated region body
PF: predicated region fallthrough
CT: control target
= control target key end

     0   :  { %s2977_s18 = smov 0   ;;  %s2979_s19 = smov 0   ;;  %s4589_s0 = inlined_call_operand.vmem [shape: f32[2,16,18,4], index: 0, kind: input, shape index: {}]   ;;  %s4590_s1 = inlined_call_operand.vmem [shape: f32[2,16,18,4], index: 1, kind: input, shape index: {}]   ;;  %s4591_s2 = inlined_call_operand.vmem [shape: f32[2,16,18,4], index: 2, kind: input, shape index: {}]   ;;  %s4592_s3 = inlined_call_operand.vmem [shape: f32[36,128], index: 3, kind: input, shape index: {}]   ;;  %s4593_s4 = inlined_call_operand.vmem [shape: f32[2,1,128], index: 4, kind: output, shape index: {0}]   ;;  %s4594_s5 = inlined_call_operand.vmem [shape: f32[2,1,128], index: 5, kind: output, shape index: {1}]  }
   0x1   :  { %s2981_s20 = smov 0  }
   0x2 LB: > { %s28_s21 = sadd.s32 1, %s2932_s19  ;;  %p2725_p0 = scmp.ge.s32.totalorder %s2936_s20, 1  ;;  %s2936_s20 = sphi %s2981_s20, %s16_s20   ;;  %s2932_s19 = sphi %s2979_s19, %s4666_s19   ;;  %s2928_s18 = sphi %s2977_s18, %s4665_s18  }
   0x3   : > { %p30_p1 = scmp.ge.s32.totalorder %s28_s21, 2  ;;  %p246_p2 = scmp.lt.s32.totalorder %s2936_s20, 3 }
   0x5   : > { %s4668_s21 = smov (%p30_p1, %s28_s21), 0  ;;  %p247_p3 = pnand %p2725_p0, %p246_p2 }
   0x7   : > { %250 = sbr.rel (%p247_p3) target bundleno = 884 (0x374), region = 36 }
   0xe   : > { %p301_p4 = scmp.lt.s32.totalorder %s2928_s18, 1  ;;  %vm531_vm0 = vcmask 1046528   ;;  %s2938_s26 = smov 4   ;;  %vm708_vm1 = vcmask 1045504   ;;  %vm2243_vm2 = vcmask 1043456   ;;  %vm1877_vm3 = vcmask 31744  }
   0xf   : > { %s2939_s27 = smov 8   ;;  %s2940_s6 = smov 12   ;;  %vm1910_vm4 = vcmask 64512   ;;  %vm1943_vm5 = vcmask 97280   ;;  %vm1976_vm6 = vcmask 130048   ;;  %vm2009_vm7 = vcmask 162816  }
  0x10   : > { %s4670_s18 = smov (!%p301_p4, %s2928_s18), 1  ;;  %s2941_s7 = smov 16   ;;  %vm2042_vm8 = vcmask 195584   ;;  %vm2075_vm9 = vcmask 228352   ;;  %vm2108_vm10 = vcmask 261120   ;;  %vm2146_vm11 = vcmask 293888  }
  0x11   : > { %s2998_s22 = smul.u32 384, %s4670_s18  ;;  %s2942_s15 = smov 20  }
  0x12   : > { %s2943_s24 = smov 24   ;;  %s2944_s28 = smov 28  }
  0x13   : > { %s3004_s25 = scalar_lea.vmem %s4589_s0, %s2998_s22  ;;  %s3386_s30 = scalar_lea.vmem %s4590_s1, %s2998_s22 }
  0x14   : > { %v3007_v0 = vld [vmem:[%s3004_s25 + $0x18] sm:$0xff]  ;;  %v3010_v1 = vld [vmem:[%s3004_s25 + $0x20] sm:$0xff]  ;;  %v3018_v5 = vld [vmem:[%s3004_s25 + $0x8] sm:$0xff]  ;;  %s3501_s10 = scalar_lea.vmem %s4591_s2, %s2998_s22  ;;  %s2945_s29 = smov 32  }
  0x15   : > { %v3013_v2 = vld [vmem:[%s3004_s25] sm:$0xff]  ;;  %v537_v3 = vrot.slane %v3007_v0, 1  ;;  %v538_v4 = vrot.slane %v3010_v1, 1  ;;  %v3022_v7 = vld [vmem:[%s3004_s25 + $0x28] sm:$0x3]  ;;  %v533_v8 = vrot.slane %v3018_v5, 1  ;;  %s4572_s9 = scalar_lea.vmem %s4594_s5, %s4670_s18 }
  0x16   : > { %v532_v6 = vrot.slane %v3013_v2, 1  ;;  %v540_v9 = vrot.slane %v3022_v7, 1  ;;  %v3027_v10 = vld [vmem:[%s3004_s25 + $0x10] sm:$0x3]  ;;  %v3030_v11 = vld [vmem:[%s3004_s25 + $0x38] sm:$0xff]  ;;  %v3055_v24 = vld [vmem:[%s3004_s25 + $0x48] sm:$0xff] }
  0x17   : > { %v539_v12 = vsel %vm531_vm0, %v537_v3, %v538_v4  ;;  %v535_v13 = vrot.slane %v3027_v10, 1  ;;  %v3035_v14 = vld [vmem:[%s3004_s25 + $0x40] sm:$0x3]  ;;  %v3038_v15 = vld [vmem:[%s3004_s25 + $0x30] sm:$0xff]  ;;  %v543_v18 = vrot.slane %v3030_v11, 1  ;;  %v547_v29 = vrot.slane %v3055_v24, 1 }
  0x18   : > { %616 = vrot.lane.b32.xlu1 %v539_v12, %s2938_s26  ;;  %v534_v16 = vsel %vm531_vm0, %v532_v6, %v533_v8  ;;  %v541_v17 = vsel %vm531_vm0, %v538_v4, %v540_v9  ;;  %v545_v19 = vrot.slane %v3035_v14, 1  ;;  %v542_v21 = vrot.slane %v3038_v15, 1  ;;  %v3049_v22 = vld [vmem:[%s3004_s25 + $0x50] sm:$0xff]  ;;  %v3052_v23 = vld [vmem:[%s3004_s25 + $0x58] sm:$0x3]  ;;  %v3065_v30 = vld [vmem:[%s3004_s25 + $0x68] sm:$0xff] }
  0x19   : > { %612 = vrot.lane.b32.xlu0 %v534_v16, %s2938_s26  ;;  %v536_v20 = vsel %vm531_vm0, %v533_v8, %v535_v13  ;;  %v548_v26 = vrot.slane %v3049_v22, 1  ;;  %v550_v27 = vrot.slane %v3052_v23, 1  ;;  %v3068_v31 = vld [vmem:[%s3004_s25 + $0x70] sm:$0x3]  ;;  %v3071_v32 = vld [vmem:[%s3004_s25 + $0x60] sm:$0xff]  ;;  %v553_v34 = vrot.slane %v3065_v30, 1 }
  0x1a   : > { %v546_v25 = vsel %vm531_vm0, %v543_v18, %v545_v19  ;;  %v544_v28 = vsel %vm531_vm0, %v542_v21, %v543_v18  ;;  %v555_v35 = vrot.slane %v3068_v31, 1  ;;  %v552_v37 = vrot.slane %v3071_v32, 1  ;;  %v3081_v38 = vld [vmem:[%s3004_s25 + $0x80] sm:$0xff]  ;;  %v3084_v39 = vld [vmem:[%s3004_s25 + $0x88] sm:$0x3]  ;;  %v3087_v40 = vld [vmem:[%s3004_s25 + $0x78] sm:$0xff] }
  0x1b   : > { %v551_v33 = vsel %vm531_vm0, %v548_v26, %v550_v27  ;;  %v549_v36 = vsel %vm531_vm0, %v547_v29, %v548_v26  ;;  %v558_v42 = vrot.slane %v3081_v38, 1  ;;  %v560_v43 = vrot.slane %v3084_v39, 1  ;;  %v3097_v46 = vld [vmem:[%s3004_s25 + $0x98] sm:$0xff]  ;;  %v3100_v47 = vld [vmem:[%s3004_s25 + $0xa0] sm:$0x3]  ;;  %v3103_v48 = vld [vmem:[%s3004_s25 + $0x90] sm:$0xff] }
  0x1c   : > { %618 = vrot.lane.b32.xlu1 %v541_v17, %s2938_s26  ;;  %v556_v41 = vsel %vm531_vm0, %v553_v34, %v555_v35  ;;  %v554_v44 = vsel %vm531_vm0, %v552_v37, %v553_v34  ;;  %v557_v45 = vrot.slane %v3087_v40, 1  ;;  %v563_v50 = vrot.slane %v3097_v46, 1  ;;  %v3113_v54 = vld [vmem:[%s3004_s25 + $0xb0] sm:$0xff]  ;;  %v3116_v55 = vld [vmem:[%s3004_s25 + $0xb8] sm:$0x3]  ;;  %v3119_v56 = vld [vmem:[%s3004_s25 + $0xa8] sm:$0xff] }
  0x1d   : > { %614 = vrot.lane.b32.xlu0 %v536_v20, %s2938_s26  ;;  %v561_v49 = vsel %vm531_vm0, %v558_v42, %v560_v43  ;;  %v565_v51 = vrot.slane %v3100_v47, 1  ;;  %v562_v53 = vrot.slane %v3103_v48, 1  ;;  %v568_v58 = vrot.slane %v3113_v54, 1  ;;  %v3129_v62 = vld [vmem:[%s3004_s25 + $0xc8] sm:$0xff]  ;;  %v3132_v63 = vld [vmem:[%s3004_s25 + $0xd0] sm:$0x3] }
  0x1e   : > { %v559_v52 = vsel %vm531_vm0, %v557_v45, %v558_v42  ;;  %v570_v59 = vrot.slane %v3116_v55, 1  ;;  %v567_v61 = vrot.slane %v3119_v56, 1  ;;  %v3135_v3 = vld [vmem:[%s3004_s25 + $0xc0] sm:$0xff]  ;;  %v573_v6 = vrot.slane %v3129_v62, 1  ;;  %v3148_v16 = vld [vmem:[%s3004_s25 + $0xe8] sm:$0x3] }
  0x1f   : > { %v566_v57 = vsel %vm531_vm0, %v563_v50, %v565_v51  ;;  %v564_v60 = vsel %vm531_vm0, %v562_v53, %v563_v50  ;;  %v575_v8 = vrot.slane %v3132_v63, 1  ;;  %v572_v12 = vrot.slane %v3135_v3, 1  ;;  %v3145_v13 = vld [vmem:[%s3004_s25 + $0xe0] sm:$0xff]  ;;  %v3151_v17 = vld [vmem:[%s3004_s25 + $0xd8] sm:$0xff]  ;;  %v3177_v37 = vld [vmem:[%s3004_s25 + $0x110] sm:$0xff] }
  0x20   : > { %622 = vrot.lane.b32.xlu1 %v546_v25, %s2938_s26  ;;  %v571_v4 = vsel %vm531_vm0, %v568_v58, %v570_v59  ;;  %v569_v9 = vsel %vm531_vm0, %v567_v61, %v568_v58  ;;  %v578_v19 = vrot.slane %v3145_v13, 1  ;;  %v580_v20 = vrot.slane %v3148_v16, 1  ;;  %v3161_v26 = vld [vmem:[%s3004_s25 + $0xf8] sm:$0xff]  ;;  %v3164_v27 = vld [vmem:[%s3004_s25 + $0x100] sm:$0x3]  ;;  %v3183_v42 = vld [vmem:[%s3004_s25 + $0x108] sm:$0xff] }
  0x21   : > { %620 = vrot.lane.b32.xlu0 %v544_v28, %s2938_s26  ;;  %v576_v18 = vsel %vm531_vm0, %v573_v6, %v575_v8  ;;  %v574_v21 = vsel %vm531_vm0, %v572_v12, %v573_v6  ;;  %v577_v25 = vrot.slane %v3151_v17, 1  ;;  %v3167_v28 = vld [vmem:[%s3004_s25 + $0xf0] sm:$0xff]  ;;  %v585_v34 = vrot.slane %v3164_v27, 1  ;;  %v3193_v51 = vld [vmem:[%s3004_s25 + $0x128] sm:$0xff]  ;;  %v3199_v53 = vld [vmem:[%s3004_s25 + $0x120] sm:$0xff] }
  0x22   : > { %v581_v29 = vsel %vm531_vm0, %v578_v19, %v580_v20  ;;  %v587_v50 = vrot.slane %v3183_v42, 1  ;;  %v593_v58 = vrot.slane %v3193_v51, 1  ;;  %v592_v61 = vrot.slane %v3199_v53, 1  ;;  %v3212_v6 = vld [vmem:[%s3004_s25 + $0x148] sm:$0x3]  ;;  %v3215_v8 = vld [vmem:[%s3004_s25 + $0x138] sm:$0xff] }
  0x23   : > { %v579_v35 = vsel %vm531_vm0, %v577_v25, %v578_v19  ;;  %4610 = vst [vmem:[#allocation3_spill] sm:$0xff] %v3215_v8  ;;  %v597_v20 = vrot.slane %v3215_v8, 1  ;;  %v3228_v25 = vld [vmem:[%s3004_s25 + $0x160] sm:$0x3] }
  0x24   : > { %626 = vrot.lane.b32.xlu1 %v551_v33, %s2938_s26  ;;  %v583_v33 = vrot.slane %v3161_v26, 1  ;;  %v594_v19 = vsel %vm531_vm0, %v592_v61, %v593_v58 }
  0x25   : > { %624 = vrot.lane.b32.xlu0 %v549_v36, %s2938_s26  ;;  %v582_v36 = vrot.slane %v3167_v28, 1 }
  0x26   : > { %v586_v43 = vsel %vm531_vm0, %v583_v33, %v585_v34 }
  0x28   : > { %630 = vrot.lane.b32.xlu1 %v556_v41, %s2938_s26  ;;  %v3180_v41 = vld [vmem:[%s3004_s25 + $0x118] sm:$0x3] }
  0x29   : > { %628 = vrot.lane.b32.xlu0 %v554_v44, %s2938_s26  ;;  %v588_v44 = vrot.slane %v3177_v37, 1  ;;  %v590_v45 = vrot.slane %v3180_v41, 1 }
  0x2c   : > { %634 = vrot.lane.b32.xlu1 %v561_v49, %s2938_s26  ;;  %v584_v49 = vsel %vm531_vm0, %v582_v36, %v583_v33 }
  0x2d   : > { %632 = vrot.lane.b32.xlu0 %v559_v52, %s2938_s26  ;;  %v3196_v52 = vld [vmem:[%s3004_s25 + $0x130] sm:$0x3] }
  0x2e   : > { %v595_v59 = vrot.slane %v3196_v52, 1 }
  0x30   : > { %638 = vrot.lane.b32.xlu1 %v566_v57, %s2938_s26  ;;  %v591_v57 = vsel %vm531_vm0, %v588_v44, %v590_v45  ;;  %v3244_v45 = vld [vmem:[%s3004_s25 + $0x178] sm:$0x3] }
  0x31   : > { %636 = vrot.lane.b32.xlu0 %v564_v60, %s2938_s26  ;;  %v589_v60 = vsel %vm531_vm0, %v587_v50, %v588_v44  ;;  %v3241_v44 = vld [vmem:[%s3004_s25 + $0x170] sm:$0xff] }
  0x32   : > { %4613 = vst [vmem:[#allocation6_spill] sm:$0xff] %v3241_v44 }
  0x34   : > { %642 = vrot.lane.b32.xlu1 %v571_v4, %s2938_s26  ;;  %v3209_v4 = vld [vmem:[%s3004_s25 + $0x140] sm:$0xff] }
  0x35   : > { %640 = vrot.lane.b32.xlu0 %v569_v9, %s2938_s26  ;;  %4609 = vst [vmem:[#allocation2_spill] sm:$0xff] %v3209_v4  ;;  %v596_v9 = vsel %vm531_vm0, %v593_v58, %v595_v59  ;;  %v598_v12 = vrot.slane %v3209_v4, 1  ;;  %v610_v58 = vrot.slane %v3244_v45, 1 }
  0x37   : > { %v599_v36 = vsel %vm531_vm0, %v597_v20, %v598_v12 }
  0x38   : > { %646 = vrot.lane.b32.xlu1 %v576_v18, %s2938_s26  ;;  %v600_v18 = vrot.slane %v3212_v6, 1 }
  0x39   : > { %644 = vrot.lane.b32.xlu0 %v574_v21, %s2938_s26  ;;  %v3225_v21 = vld [vmem:[%s3004_s25 + $0x158] sm:$0xff] }
  0x3a   : > { %4611 = vst [vmem:[#allocation4_spill] sm:$0xff] %v3225_v21  ;;  %v601_v33 = vsel %vm531_vm0, %v598_v12, %v600_v18  ;;  %v603_v34 = vrot.slane %v3225_v21, 1  ;;  %v712_v12 = vrot.slane %v3027_v10, 2  ;;  %v720_v10 = vrot.slane %v3030_v11, 2 }
  0x3b   : > { %v724_v11 = vrot.slane %v3055_v24, 2  ;;  %v735_v24 = vrot.slane %v3081_v38, 2 }
  0x3c   : > { %650 = vrot.lane.b32.xlu1 %v581_v29, %s2938_s26  ;;  %v3231_v29 = vld [vmem:[%s3004_s25 + $0x150] sm:$0xff] }
  0x3d   : > { %648 = vrot.lane.b32.xlu0 %v579_v35, %s2938_s26  ;;  %4612 = vst [vmem:[#allocation5_spill] sm:$0xff] %v3231_v29  ;;  %v605_v35 = vrot.slane %v3228_v25, 1 }
  0x3f   : > { %v606_v50 = vsel %vm531_vm0, %v603_v34, %v605_v35 }
  0x40   : > { %654 = vrot.lane.b32.xlu1 %v586_v43, %s2938_s26  ;;  %v602_v43 = vrot.slane %v3231_v29, 1 }
  0x41   : > { %652 = vrot.lane.b32.xlu0 %v584_v49, %s2938_s26  ;;  %v3247_v49 = vld [vmem:[%s3004_s25 + $0x168] sm:$0xff] }
  0x42   : > { %4614 = vst [vmem:[#allocation7_spill] sm:$0xff] %v3247_v49  ;;  %v604_v59 = vsel %vm531_vm0, %v602_v43, %v603_v34  ;;  %v717_v34 = vrot.slane %v3022_v7, 2  ;;  %v725_v7 = vrot.slane %v3049_v22, 2 }
  0x44   : > { %658 = vrot.lane.b32.xlu1 %v591_v57, %s2938_s26  ;;  %v608_v57 = vrot.slane %v3241_v44, 1 }
  0x45   : > { %656 = vrot.lane.b32.xlu0 %v589_v60, %s2938_s26  ;;  %v607_v60 = vrot.slane %v3247_v49, 1 }
  0x46   : > { %v611_v61 = vsel %vm531_vm0, %v608_v57, %v610_v58  ;;  %v732_v58 = vrot.slane %v3068_v31, 2 }
  0x47   : > { %v609_v18 = vsel %vm531_vm0, %v607_v60, %v608_v57  ;;  %v729_v60 = vrot.slane %v3071_v32, 2 }
  0x48   : > { %662 = vrot.lane.b32.xlu1 %v596_v9, %s2938_s26  ;;  %v710_v9 = vrot.slane %v3018_v5, 2  ;;  %v714_v5 = vrot.slane %v3007_v0, 2 }
  0x49   : > { %660 = vrot.lane.b32.xlu0 %v594_v19, %s2938_s26  ;;  %v709_v19 = vrot.slane %v3013_v2, 2 }
  0x4a   : > { %v713_v20 = vsel %vm708_vm1, %v710_v9, %v712_v12  ;;  %v734_v12 = vrot.slane %v3087_v40, 2 }
  0x4b   : > { %v711_v35 = vsel %vm708_vm1, %v709_v19, %v710_v9  ;;  %v742_v19 = vrot.slane %v3100_v47, 2 }
  0x4c   : > { %666 = vrot.lane.b32.xlu1 %v601_v33, %s2938_s26  ;;  %v715_v33 = vrot.slane %v3010_v1, 2  ;;  %v719_v1 = vrot.slane %v3038_v15, 2  ;;  %v730_v15 = vrot.slane %v3065_v30, 2 }
  0x4d   : > { %664 = vrot.lane.b32.xlu0 %v599_v36, %s2938_s26  ;;  %v722_v36 = vrot.slane %v3035_v14, 2 }
  0x4e   : > { %v718_v2 = vsel %vm708_vm1, %v715_v33, %v717_v34  ;;  %v716_v43 = vsel %vm708_vm1, %v714_v5, %v715_v33  ;;  %v721_v57 = vsel %vm708_vm1, %v719_v1, %v720_v10  ;;  %v731_v9 = vsel %vm708_vm1, %v729_v60, %v730_v15 }
  0x4f   : > { %v723_v0 = vsel %vm708_vm1, %v720_v10, %v722_v36  ;;  %v739_v33 = vrot.slane %v3103_v48, 2  ;;  %v745_v34 = vrot.slane %v3113_v54, 2  ;;  %v750_v10 = vrot.slane %v3129_v62, 2 }
  0x50   : > { %670 = vrot.lane.b32.xlu1 %v606_v50, %s2938_s26  ;;  %v727_v50 = vrot.slane %v3052_v23, 2  ;;  %v733_v23 = vsel %vm708_vm1, %v730_v15, %v732_v58  ;;  %v752_v36 = vrot.slane %v3132_v63, 2  ;;  %v749_v1 = vrot.slane %v3135_v3, 2 }
  0x51   : > { %668 = vrot.lane.b32.xlu0 %v604_v59, %s2938_s26  ;;  %v726_v59 = vsel %vm708_vm1, %v724_v11, %v725_v7  ;;  %v760_v11 = vrot.slane %v3161_v26, 2  ;;  %v759_v58 = vrot.slane %v3167_v28, 2  ;;  %v767_v60 = vrot.slane %v3180_v41, 2 }
  0x52   : > { %v728_v14 = vsel %vm708_vm1, %v725_v7, %v727_v50  ;;  %v757_v7 = vrot.slane %v3148_v16, 2  ;;  %v751_v50 = vsel %vm708_vm1, %v749_v1, %v750_v10  ;;  %v784_v1 = vrot.slane %v3247_v49, 2  ;;  %v2145_v49 = vld [vmem:[%s4592_s3 + $0x20] sm:$0xf] }
  0x54   : > { %674 = vrot.lane.b32.xlu1 %v611_v61, %s2938_s26  ;;  %v737_v61 = vrot.slane %v3084_v39, 2 }
  0x55   : > { %672 = vrot.lane.b32.xlu0 %v609_v18, %s2938_s26  ;;  %v740_v18 = vrot.slane %v3097_v46, 2 }
  0x56   : > { %v738_v31 = vsel %vm708_vm1, %v735_v24, %v737_v61  ;;  %v770_v61 = vrot.slane %v3193_v51, 2 }
  0x57   : > { %v743_v39 = vsel %vm708_vm1, %v740_v18, %v742_v19  ;;  %v741_v5 = vsel %vm708_vm1, %v739_v33, %v740_v18  ;;  %v775_v18 = vrot.slane %v3209_v4, 2  ;;  %v777_v19 = vrot.slane %v3212_v6, 2 }
  0x58   : > { %791 = vrot.lane.b32.xlu1 %v713_v20, %s2939_s27  ;;  %v736_v20 = vsel %vm708_vm1, %v734_v12, %v735_v24  ;;  %v764_v24 = vrot.slane %v3183_v42, 2  ;;  %v774_v33 = vrot.slane %v3215_v8, 2  ;;  %v779_v6 = vrot.slane %v3231_v29, 2 }
  0x59   : > { %789 = vrot.lane.b32.xlu0 %v711_v35, %s2939_s27  ;;  %v747_v35 = vrot.slane %v3116_v55, 2  ;;  %v753_v55 = vsel %vm708_vm1, %v750_v10, %v752_v36  ;;  %v785_v10 = vrot.slane %v3241_v44, 2  ;;  %v787_v36 = vrot.slane %v3244_v45, 2 }
  0x5b   : > { %v748_v47 = vsel %vm708_vm1, %v745_v34, %v747_v35 }
  0x5c   : > { %795 = vrot.lane.b32.xlu1 %v718_v2, %s2939_s27  ;;  %v744_v2 = vrot.slane %v3119_v56, 2 }
  0x5d   : > { %793 = vrot.lane.b32.xlu0 %v716_v43, %s2939_s27 }
  0x5e   : > { %v746_v43 = vsel %vm708_vm1, %v744_v2, %v745_v34  ;;  %v782_v34 = vrot.slane %v3228_v25, 2 }
  0x60   : > { %799 = vrot.lane.b32.xlu1 %v723_v0, %s2939_s27  ;;  %v755_v0 = vrot.slane %v3145_v13, 2 }
  0x61   : > { %797 = vrot.lane.b32.xlu0 %v721_v57, %s2939_s27  ;;  %v754_v57 = vrot.slane %v3151_v17, 2 }
  0x62   : > { %v758_v63 = vsel %vm708_vm1, %v755_v0, %v757_v7 }
  0x63   : > { %v756_v15 = vsel %vm708_vm1, %v754_v57, %v755_v0  ;;  %v788_v0 = vsel %vm708_vm1, %v785_v10, %v787_v36  ;;  %v3393_v57 = vld [vmem:[%s3386_s30 + $0x8] sm:$0xff] }
  0x64   : > { %803 = vrot.lane.b32.xlu1 %v728_v14, %s2939_s27  ;;  %v762_v14 = vrot.slane %v3164_v27, 2 }
  0x65   : > { %801 = vrot.lane.b32.xlu0 %v726_v59, %s2939_s27  ;;  %v765_v59 = vrot.slane %v3177_v37, 2 }
  0x66   : > { %v763_v16 = vsel %vm708_vm1, %v760_v11, %v762_v14 }
  0x67   : > { %v768_v27 = vsel %vm708_vm1, %v765_v59, %v767_v60  ;;  %v766_v12 = vsel %vm708_vm1, %v764_v24, %v765_v59  ;;  %v3418_v60 = vld [vmem:[%s3386_s30 + $0x38] sm:$0xff]  ;;  %v3423_v24 = vld [vmem:[%s3386_s30 + $0x30] sm:$0xff] }
  0x68   : > { %807 = vrot.lane.b32.xlu1 %v733_v23, %s2939_s27  ;;  %v761_v23 = vsel %vm708_vm1, %v759_v58, %v760_v11  ;;  %v387_v11 = vld [vmem:[%s3386_s30] sm:$0xff] }
  0x69   : > { %805 = vrot.lane.b32.xlu0 %v731_v9, %s2939_s27  ;;  %v772_v9 = vrot.slane %v3196_v52, 2  ;;  %v778_v52 = vsel %vm708_vm1, %v775_v18, %v777_v19  ;;  %v3451_v19 = vld [vmem:[%s3386_s30 + $0x60] sm:$0xff]  ;;  %v1029_v36 = vrot.slane %v387_v11, 1 }
  0x6b   : > { %v773_v41 = vsel %vm708_vm1, %v770_v61, %v772_v9 }
  0x6c   : > { %811 = vrot.lane.b32.xlu1 %v738_v31, %s2939_s27  ;;  %v769_v31 = vrot.slane %v3199_v53, 2 }
  0x6d   : > { %809 = vrot.lane.b32.xlu0 %v736_v20, %s2939_s27 }
  0x6e   : > { %v771_v20 = vsel %vm708_vm1, %v769_v31, %v770_v61  ;;  %v3432_v61 = vld [vmem:[%s3386_s30 + $0x50] sm:$0xff] }
  0x70   : > { %815 = vrot.lane.b32.xlu1 %v743_v39, %s2939_s27  ;;  %v780_v39 = vrot.slane %v3225_v21, 2 }
  0x71   : > { %813 = vrot.lane.b32.xlu0 %v741_v5, %s2939_s27  ;;  %v776_v5 = vsel %vm708_vm1, %v774_v33, %v775_v18  ;;  %v3460_v33 = vld [vmem:[%s3386_s30 + $0x80] sm:$0xff] }
  0x72   : > { %4622 = vst [vmem:[#allocation15_spill] sm:$0xff] %v3460_v33 }
  0x74   : > { %819 = vrot.lane.b32.xlu1 %v748_v47, %s2939_s27  ;;  %v783_v47 = vsel %vm708_vm1, %v780_v39, %v782_v34  ;;  %v389_v34 = vld [vmem:[%s3386_s30 + $0x10] sm:$0x3] }
  0x75   : > { %817 = vrot.lane.b32.xlu0 %v746_v43, %s2939_s27  ;;  %v781_v43 = vsel %vm708_vm1, %v779_v6, %v780_v39  ;;  %v3465_v39 = vld [vmem:[%s3386_s30 + $0x78] sm:$0xff]  ;;  %v1030_v6 = vrot.slane %v3393_v57, 1 }
  0x76   : > { %4623 = vst [vmem:[#allocation16_spill] sm:$0xff] %v3465_v39 }
  0x78   : > { %823 = vrot.lane.b32.xlu1 %v753_v55, %s2939_s27 }
  0x79   : > { %821 = vrot.lane.b32.xlu0 %v751_v50, %s2939_s27  ;;  %v786_v50 = vsel %vm708_vm1, %v784_v1, %v785_v10  ;;  %v1032_v10 = vrot.slane %v389_v34, 1  ;;  %v3481_v1 = vld [vmem:[%s3386_s30 + $0x90] sm:$0xff] }
  0x7a   : > { %4625 = vst [vmem:[#allocation18_spill] sm:$0xff] %v3481_v1 }
  0x7c   : > { %827 = vrot.lane.b32.xlu1 %v758_v63, %s2939_s27 }
  0x7d   : > { %825 = vrot.lane.b32.xlu0 %v756_v15, %s2939_s27  ;;  %v3404_v15 = vld [vmem:[%s3386_s30 + $0x20] sm:$0xff] }
  0x80   : > { %831 = vrot.lane.b32.xlu1 %v763_v16, %s2939_s27  ;;  %v3409_v16 = vld [vmem:[%s3386_s30 + $0x18] sm:$0xff] }
  0x81   : > { %829 = vrot.lane.b32.xlu0 %v761_v23, %s2939_s27 }
  0x84   : > { %835 = vrot.lane.b32.xlu1 %v768_v27, %s2939_s27 }
  0x85   : > { %833 = vrot.lane.b32.xlu0 %v766_v12, %s2939_s27  ;;  %v3437_v12 = vld [vmem:[%s3386_s30 + $0x48] sm:$0xff] }
  0x88   : > { %839 = vrot.lane.b32.xlu1 %v773_v41, %s2939_s27  ;;  %v3446_v41 = vld [vmem:[%s3386_s30 + $0x68] sm:$0xff] }
  0x89   : > { %837 = vrot.lane.b32.xlu0 %v771_v20, %s2939_s27 }
  0x8a   : > { %v3359_v35 = vpop.permute.xlu1 %616 }
  0x8b   : > { %4615 = vst [vmem:[#allocation8_spill] sm:$0xff] %v3359_v35  ;;  %v3363_v2 = vpop.permute.xlu0 %612  ;;  %v1031_v35 = vsel %vm531_vm0, %v1029_v36, %v1030_v6 }
  0x8c   : > { %4616 = vst [vmem:[#allocation9_spill] sm:$0xff] %v3363_v2  ;;  %843 = vrot.lane.b32.xlu1 %v778_v52, %s2939_s27  ;;  %v3517_v2 = vld [vmem:[%s3501_s10 + $0x8] sm:$0xff] }
  0x8d   : > { %841 = vrot.lane.b32.xlu0 %v776_v5, %s2939_s27 }
  0x8e   : > { %v3370_v25 = vpop.permute.xlu1 %618 }
  0x8f   : > { %4617 = vst [vmem:[#allocation10_spill] sm:$0xff] %v3370_v25  ;;  %v3374_v55 = vpop.permute.xlu0 %614 }
  0x90   : > { %4618 = vst [vmem:[#allocation11_spill] sm:$0xff] %v3374_v55  ;;  %847 = vrot.lane.b32.xlu1 %v783_v47, %s2939_s27  ;;  %v3476_v47 = vld [vmem:[%s3386_s30 + $0x98] sm:$0xff] }
  0x91   : > { %845 = vrot.lane.b32.xlu0 %v781_v43, %s2939_s27  ;;  %4624 = vst [vmem:[#allocation17_spill] sm:$0xff] %v3476_v47 }
  0x92   : > { %v3379_v7 = vpop.permute.xlu1 %622 }
  0x93   : > { %4619 = vst [vmem:[#allocation12_spill] sm:$0xff] %v3379_v7  ;;  %v3388_v45 = vpop.permute.xlu0 %620  ;;  %v1208_v7 = vrot.slane %v389_v34, 2  ;;  %v2142_v34 = vld [vmem:[%s4592_s3 + $0x8] sm:$0xff] }
  0x94   : > { %4620 = vst [vmem:[#allocation13_spill] sm:$0xff] %v3388_v45  ;;  %851 = vrot.lane.b32.xlu1 %v788_v0, %s2939_s27  ;;  %v1205_v45 = vrot.slane %v387_v11, 2 }
  0x95   : > { %849 = vrot.lane.b32.xlu0 %v786_v50, %s2939_s27  ;;  %v1206_v50 = vrot.slane %v3393_v57, 2 }
  0x96   : > { %v3395_v63 = vpop.permute.xlu1 %626 }
  0x97   : > { %v3398_v14 = vpop.permute.xlu0 %624 }
  0x98   : > { %4621 = vst [vmem:[#allocation14_spill] sm:$0xff] %v3398_v14  ;;  %919 = vrot.lane.b32.xlu1 %v3393_v57, %s2940_s6  ;;  %v1033_v14 = vsel %vm531_vm0, %v1030_v6, %v1032_v10  ;;  %v2141_v57 = vld [vmem:[%s4592_s3] sm:$0xff]  ;;  %v1207_v6 = vsel %vm708_vm1, %v1205_v45, %v1206_v50  ;;  %v1035_v45 = vrot.slane %v3404_v15, 1 }
  0x99   : > { %917 = vrot.lane.b32.xlu0 %v387_v11, %s2940_s6  ;;  %v1209_v11 = vsel %vm708_vm1, %v1206_v50, %v1208_v7  ;;  %v2859_v10 = vpack.c.bf16 %v2142_v34, %v2141_v57  ;;  %v2144_v7 = vld [vmem:[%s4592_s3 + $0x18] sm:$0xff]  ;;  %v1034_v50 = vrot.slane %v3409_v16, 1 }
  0x9a   : > { %v3406_v58 = vpop.permute.xlu1 %630 }
  0x9b   : > { %v3411_v59 = vpop.permute.xlu0 %628  ;;  %2860 = vmatprep.subr.bf16.mxu0 %v2859_v10  ;;  %2867 = vmatprep.subr.bf16.mxu1 %v2859_v10 }
  0x9c   : > { %923 = vrot.lane.b32.xlu1 %v3404_v15, %s2940_s6  ;;  %2862 = vmatpush3.bf16.msra.mxu0 %v2859_v10 }
  0x9d   : > { %921 = vrot.lane.b32.xlu0 %v3409_v16, %s2940_s6  ;;  %2870 = vmatpush3.bf16.msra.mxu1 %v2859_v10 }
  0x9e   : > { %v3420_v23 = vpop.permute.xlu1 %634 }
  0x9f   : > { %v3425_v27 = vpop.permute.xlu0 %632 }
  0xa0   : > { %927 = vrot.lane.b32.xlu1 %v3418_v60, %s2940_s6 }
  0xa1   : > { %925 = vrot.lane.b32.xlu0 %v3423_v24, %s2940_s6 }
  0xa2   : > { %v3434_v9 = vpop.permute.xlu1 %638 }
  0xa3   : > { %v3439_v31 = vpop.permute.xlu0 %636 }
  0xa4   : > { %931 = vrot.lane.b32.xlu1 %v3432_v61, %s2940_s6 }
  0xa5   : > { %929 = vrot.lane.b32.xlu0 %v3437_v12, %s2940_s6 }
  0xa6   : > { %v3448_v18 = vpop.permute.xlu1 %642 }
  0xa7   : > { %v3453_v20 = vpop.permute.xlu0 %640 }
  0xa8   : > { %935 = vrot.lane.b32.xlu1 %v3446_v41, %s2940_s6 }
  0xa9   : > { %933 = vrot.lane.b32.xlu0 %v3451_v19, %s2940_s6 }
  0xaa   : > { %v3462_v52 = vpop.permute.xlu1 %646 }
  0xab   : > { %v3468_v5 = vpop.permute.xlu0 %644 }
  0xac   : > { %939 = vrot.lane.b32.xlu1 %v3460_v33, %s2940_s6  ;;  %v437_v33 = vld [vmem:[%s3501_s10 + $0x10] sm:$0x3] }
  0xad   : > { %937 = vrot.lane.b32.xlu0 %v3465_v39, %s2940_s6  ;;  %v1528_v29 = vrot.slane %v437_v33, 1 }
  0xae   : > { %v3478_v43 = vpop.permute.xlu1 %650 }
  0xaf   : > { %v3483_v0 = vpop.permute.xlu0 %648 }
  0xb0   : > { %943 = vrot.lane.b32.xlu1 %v3476_v47, %s2940_s6 }
  0xb1   : > { %941 = vrot.lane.b32.xlu0 %v3481_v1, %s2940_s6  ;;  %v435_v1 = vld [vmem:[%s3501_s10] sm:$0xff] }
  0xb2   : > { %v3491_v25 = vpop.permute.xlu1 %654  ;;  %v1525_v47 = vrot.slane %v435_v1, 1 }
  0xb3   : > { %v3494_v55 = vpop.permute.xlu0 %652 }
  0xb4   : > { %1111 = vrot.lane.b32.xlu1 %v1033_v14, %s2941_s7 }
  0xb5   : > { %1109 = vrot.lane.b32.xlu0 %v1031_v35, %s2941_s7  ;;  %v2143_v35 = vld [vmem:[%s4592_s3 + $0x10] sm:$0xff] }
  0xb6   : > { %v3511_v14 = vpop.permute.xlu1 %658  ;;  %v2863_v57 = vpack.c.bf16 %v2144_v7, %v2143_v35  ;;  %v1701_v35 = vrot.slane %v435_v1, 2  ;;  %v1036_v7 = vsel %vm531_vm0, %v1034_v50, %v1035_v45  ;;  %v1210_v50 = vrot.slane %v3409_v16, 2 }
  0xb7   : > { %v3514_v36 = vpop.permute.xlu0 %656 }
  0xb8   : > { %1287 = vrot.lane.b32.xlu1 %v1209_v11, %s2942_s15  ;;  %v1526_v11 = vrot.slane %v3517_v2, 1  ;;  %2864 = vmatprep.subr.bf16.mxu0 %v2863_v57 }
  0xb9   : > { %1285 = vrot.lane.b32.xlu0 %v1207_v6, %s2942_s15  ;;  %2868 = vmatprep.subr.bf16.mxu1 %v2863_v57  ;;  %v1702_v6 = vrot.slane %v3517_v2, 2 }
  0xba   : > { %v3530_v34 = vpop.permute.xlu1 %662  ;;  %2866 = vmatpush3.bf16.msra.mxu0 %v2863_v57  ;;  %v1527_v44 = vsel %vm531_vm0, %v1525_v47, %v1526_v11  ;;  %2871 = vmatpush3.bf16.msra.mxu1 %v2863_v57 }
  0xbb   : > { %v3533_v39 = vpop.permute.xlu0 %660  ;;  %2809 = vmatprep.subr.msk.mxu0 %vm2243_vm2, %v2145_v49  ;;  %2869 = vmatprep.subr.msk.mxu1 %vm2243_vm2, %v2145_v49  ;;  %v1703_v47 = vsel %vm708_vm1, %v1701_v35, %v1702_v6 }
  0xbc   : > { %1415 = vrot.lane.b32.xlu1 %v3517_v2, %s2943_s24  ;;  %v392_v2 = vld [vmem:[%s3386_s30 + $0x28] sm:$0x3] }
  0xbd   : > { %1413 = vrot.lane.b32.xlu0 %v435_v1, %s2943_s24  ;;  %v1211_v1 = vrot.slane %v3404_v15, 2  ;;  %v1037_v57 = vrot.slane %v392_v2, 1  ;;  %v1213_v15 = vrot.slane %v392_v2, 2  ;;  %v439_v2 = vld [vmem:[%s3501_s10 + $0x20] sm:$0xff] }
  0xbe   : > { %v3544_v10 = vpop.permute.xlu1 %666  ;;  %2810 = vmatpush3.msk.msra.mxu0 %vm2243_vm2, %v2145_v49  ;;  %2872 = vmatpush3.msk.msra.mxu1 %vm2243_vm2, %v2145_v49 }
  0xbf   : > { %v3548_v21 = vpop.permute.xlu0 %664  ;;  %v1038_v35 = vsel %vm531_vm0, %v1035_v45, %v1037_v57  ;;  %v1214_v49 = vsel %vm708_vm1, %v1211_v1, %v1213_v15  ;;  %v1039_v45 = vrot.slane %v3423_v24, 1 }
  0xc0   : > { %4626 = vst [vmem:[#allocation19_spill] sm:$0xff] %v3548_v21  ;;  %1113 = vrot.lane.b32.xlu1 %v1036_v7, %s2941_s7  ;;  %v1529_v21 = vsel %vm531_vm0, %v1526_v11, %v1528_v29  ;;  %v1704_v29 = vrot.slane %v437_v33, 2  ;;  %v1040_v33 = vrot.slane %v3418_v60, 1 }
  0xc1   : > { %1605 = vrot.lane.b32.xlu0 %v1527_v44, %s2944_s28  ;;  %v1212_v44 = vsel %vm708_vm1, %v1210_v50, %v1211_v1  ;;  %v1531_v1 = vrot.slane %v439_v2, 1 }
  0xc2   : > { %v3558_v8 = vpop.permute.xlu1 %670 }
  0xc3   : > { %v3561_v4 = vpop.permute.xlu0 %668 }
  0xc4   : > { %1781 = vrot.lane.b32.xlu1 %v1703_v47, %s2945_s29  ;;  %v438_v47 = vld [vmem:[%s3501_s10 + $0x18] sm:$0xff] }
  0xc5   : > { %1607 = vrot.lane.b32.xlu0 %v1529_v21, %s2944_s28  ;;  %v1705_v21 = vsel %vm708_vm1, %v1702_v6, %v1704_v29  ;;  %v440_v6 = vld [vmem:[%s3501_s10 + $0x28] sm:$0x3]  ;;  %v1706_v29 = vrot.slane %v438_v47, 2 }
  0xc6   : > { %v3567_v16 = vpop.permute.xlu1 %674 }
  0xc7   : > { %4627 = vst [vmem:[#allocation20_spill] sm:$0xff] %v3567_v16  ;;  %v3570_v11 = vpop.permute.xlu0 %672 }
  0xc8   : > { %4628 = vst [vmem:[#allocation21_spill] sm:$0xff] %v3570_v11  ;;  %1289 = vrot.lane.b32.xlu1 %v1212_v44, %s2942_s15  ;;  %v1530_v44 = vrot.slane %v438_v47, 1 }
  0xc9   : > { %1115 = vrot.lane.b32.xlu0 %v1038_v35, %s2941_s7  ;;  %v1707_v35 = vrot.slane %v439_v2, 2 }
  0xca   : > { %v3575_v7 = vpop.permute.xlu1 %791 }
  0xcb   : > { %4629 = vst [vmem:[#allocation22_spill] sm:$0xff] %v3575_v7  ;;  %v3578_v50 = vpop.permute.xlu0 %789 }
  0xcc   : > { %4630 = vst [vmem:[#allocation23_spill] sm:$0xff] %v3578_v50  ;;  %1291 = vrot.lane.b32.xlu1 %v1214_v49, %s2942_s15  ;;  %v1041_v49 = vsel %vm531_vm0, %v1039_v45, %v1040_v33  ;;  %v1532_v50 = vsel %vm531_vm0, %v1530_v44, %v1531_v1  ;;  %v1885_v45 = vsel %vm1877_vm3, %v3049_v22, %v3395_v63 }
  0xcd   : > { %1783 = vrot.lane.b32.xlu0 %v1705_v21, %s2945_s29  ;;  %v1533_v21 = vrot.slane %v440_v6, 1  ;;  %v1887_v22 = vsel %vm1877_vm3, %v3065_v30, %v3406_v58  ;;  %v1889_v58 = vsel %vm1877_vm3, %v3081_v38, %v3420_v23  ;;  %v1045_v38 = vrot.slane %v3432_v61, 1 }
  0xce   : > { %v3586_v57 = vpop.permute.xlu1 %795  ;;  %v1044_v23 = vrot.slane %v3437_v12, 1 }
  0xcf   : > { %4631 = vst [vmem:[#allocation24_spill] sm:$0xff] %v3586_v57  ;;  %v3588_v15 = vpop.permute.xlu0 %793  ;;  %v395_v57 = vld [vmem:[%s3386_s30 + $0x40] sm:$0x3] }
  0xd0   : > { %4632 = vst [vmem:[#allocation25_spill] sm:$0xff] %v3588_v15  ;;  %1419 = vrot.lane.b32.xlu1 %v439_v2, %s2943_s24  ;;  %v1216_v15 = vrot.slane %v3418_v60, 2  ;;  %v1215_v2 = vrot.slane %v3423_v24, 2  ;;  %v1218_v24 = vrot.slane %v395_v57, 2 }
  0xd1   : > { %1417 = vrot.lane.b32.xlu0 %v438_v47, %s2943_s24  ;;  %v1708_v47 = vsel %vm708_vm1, %v1706_v29, %v1707_v35  ;;  %v1886_v29 = vsel %vm1877_vm3, %v3071_v32, %v3411_v59  ;;  %v1888_v59 = vsel %vm1877_vm3, %v3087_v40, %v3425_v27  ;;  %v1891_v40 = vsel %vm1877_vm3, %v3097_v46, %v3434_v9 }
  0xd2   : > { %v3594_v7 = vpop.permute.xlu1 %799  ;;  %v1217_v60 = vsel %vm708_vm1, %v1215_v2, %v1216_v15  ;;  %v1219_v30 = vsel %vm708_vm1, %v1216_v15, %v1218_v24  ;;  %v442_v2 = vld [vmem:[%s3501_s10 + $0x38] sm:$0xff]  ;;  %v1046_v9 = vsel %vm531_vm0, %v1044_v23, %v1045_v38 }
  0xd3   : > { %4633 = vst [vmem:[#allocation26_spill] sm:$0xff] %v3594_v7  ;;  %v3597_v11 = vpop.permute.xlu0 %797  ;;  %v1534_v7 = vsel %vm531_vm0, %v1531_v1, %v1533_v21  ;;  %v1709_v1 = vrot.slane %v440_v6, 2 }
  0xd4   : > { %4634 = vst [vmem:[#allocation27_spill] sm:$0xff] %v3597_v11  ;;  %1117 = vrot.lane.b32.xlu1 %v1041_v49, %s2941_s7  ;;  %v1042_v11 = vrot.slane %v395_v57, 1 }
  0xd5   : > { %1609 = vrot.lane.b32.xlu0 %v1532_v50, %s2944_s28  ;;  %v1710_v32 = vsel %vm708_vm1, %v1707_v35, %v1709_v1  ;;  %v1536_v35 = vrot.slane %v442_v2, 1 }
  0xd6   : > { %v804_v44 = vpop.permute.xlu1 %803  ;;  %v1043_v50 = vsel %vm531_vm0, %v1040_v33, %v1042_v11 }
  0xd7   : > { %v3610_v49 = vsel %vm1910_vm4, %v1885_v45, %v804_v44  ;;  %v3612_v16 = vpop.permute.xlu0 %801  ;;  %v1890_v44 = vsel %vm1877_vm3, %v3103_v48, %v3439_v31  ;;  %v1893_v48 = vsel %vm1877_vm3, %v3113_v54, %v3448_v18  ;;  %v1221_v54 = vrot.slane %v3432_v61, 2 }
  0xd8   : > { %1785 = vrot.lane.b32.xlu1 %v1708_v47, %s2945_s29  ;;  %v441_v47 = vld [vmem:[%s3501_s10 + $0x30] sm:$0xff]  ;;  %v1220_v18 = vrot.slane %v3437_v12, 2 }
  0xd9   : > { %1611 = vrot.lane.b32.xlu0 %v1534_v7, %s2944_s28  ;;  %v1535_v45 = vrot.slane %v441_v47, 1  ;;  %v1711_v46 = vrot.slane %v441_v47, 2 }
  0xda   : > { %v808_v63 = vpop.permute.xlu1 %807 }
  0xdb   : > { %v3625_v21 = vsel %vm1910_vm4, %v1887_v22, %v808_v63  ;;  %v806_v7 = vpop.permute.xlu0 %805  ;;  %v443_v22 = vld [vmem:[%s3501_s10 + $0x40] sm:$0x3]  ;;  %v1537_v1 = vsel %vm531_vm0, %v1535_v45, %v1536_v35 }
  0xdc   : > { %v3628_v57 = vsel %vm1910_vm4, %v1886_v29, %v806_v7  ;;  %1293 = vrot.lane.b32.xlu1 %v1217_v60, %s2942_s15  ;;  %v1538_v29 = vrot.slane %v443_v22, 1  ;;  %v1892_v7 = vsel %vm1877_vm3, %v3119_v56, %v3453_v20  ;;  %v1895_v56 = vsel %vm1877_vm3, %v3129_v62, %v3462_v52 }
  0xdd   : > { %1119 = vrot.lane.b32.xlu0 %v1043_v50, %s2941_s7  ;;  %v1712_v50 = vrot.slane %v442_v2, 2  ;;  %v1222_v62 = vsel %vm708_vm1, %v1220_v18, %v1221_v54 }
  0xde   : > { %v812_v11 = vpop.permute.xlu1 %811 }
  0xdf   : > { %v3641_v33 = vsel %vm1910_vm4, %v1889_v58, %v812_v11  ;;  %v810_v6 = vpop.permute.xlu0 %809  ;;  %v398_v11 = vld [vmem:[%s3386_s30 + $0x58] sm:$0x3] }
  0xe0   : > { %v3646_v15 = vsel %vm1910_vm4, %v1888_v59, %v810_v6  ;;  %1295 = vrot.lane.b32.xlu1 %v1219_v30, %s2942_s15  ;;  %v1713_v59 = vsel %vm708_vm1, %v1711_v46, %v1712_v50  ;;  %v1539_v6 = vsel %vm531_vm0, %v1536_v35, %v1538_v29  ;;  %v1223_v52 = vrot.slane %v398_v11, 2 }
  0xe1   : > { %1787 = vrot.lane.b32.xlu0 %v1710_v32, %s2945_s29  ;;  %v1896_v35 = vsel %vm1877_vm3, %v3151_v17, %v3483_v0  ;;  %v1898_v0 = vsel %vm1877_vm3, %v3167_v28, %v3494_v55  ;;  %v1901_v28 = vsel %vm1877_vm3, %v3177_v37, %v3511_v14  ;;  %v1900_v29 = vsel %vm1877_vm3, %v3183_v42, %v3514_v36 }
  0xe2   : > { %v816_v27 = vpop.permute.xlu1 %815  ;;  %v1903_v42 = vsel %vm1877_vm3, %v3193_v51, %v3530_v34  ;;  %v1226_v51 = vrot.slane %v3446_v41, 2  ;;  %v1225_v34 = vrot.slane %v3451_v19, 2 }
  0xe3   : > { %v3659_v60 = vsel %vm1910_vm4, %v1891_v40, %v816_v27  ;;  %v814_v24 = vpop.permute.xlu0 %813  ;;  %v1897_v40 = vsel %vm1877_vm3, %v3145_v13, %v3478_v43  ;;  %v1224_v13 = vsel %vm708_vm1, %v1221_v54, %v1223_v52  ;;  %v1899_v43 = vsel %vm1877_vm3, %v3161_v26, %v3491_v25 }
  0xe4   : > { %v3663_v63 = vsel %vm1910_vm4, %v1890_v44, %v814_v24  ;;  %1423 = vrot.lane.b32.xlu1 %v442_v2, %s2943_s24  ;;  %v1047_v2 = vrot.slane %v398_v11, 1  ;;  %v1050_v26 = vrot.slane %v3446_v41, 1  ;;  %v1049_v25 = vrot.slane %v3451_v19, 1  ;;  %v446_v11 = vld [vmem:[%s3501_s10 + $0x58] sm:$0x3] }
  0xe5   : > { %1421 = vrot.lane.b32.xlu0 %v441_v47, %s2943_s24  ;;  %v1894_v47 = vsel %vm1877_vm3, %v3135_v3, %v3468_v5  ;;  %v1714_v5 = vrot.slane %v443_v22, 2 }
  0xe6   : > { %v820_v31 = vpop.permute.xlu1 %819  ;;  %v1048_v3 = vsel %vm531_vm0, %v1045_v38, %v1047_v2  ;;  %v1051_v14 = vsel %vm531_vm0, %v1049_v25, %v1050_v26 }
  0xe7   : > { %v3676_v30 = vsel %vm1910_vm4, %v1893_v48, %v820_v31  ;;  %v818_v58 = vpop.permute.xlu0 %817  ;;  %v1715_v17 = vsel %vm708_vm1, %v1712_v50, %v1714_v5  ;;  %v444_v48 = vld [vmem:[%s3501_s10 + $0x48] sm:$0xff] }
  0xe8   : > { %v3680_v32 = vsel %vm1910_vm4, %v1892_v7, %v818_v58  ;;  %1121 = vrot.lane.b32.xlu1 %v1046_v9, %s2941_s7  ;;  %v445_v9 = vld [vmem:[%s3501_s10 + $0x50] sm:$0xff]  ;;  %v1716_v37 = vrot.slane %v444_v48, 2  ;;  %v4637_v5 = vld [vmem:[#allocation3_spill] sm:$0xff] }
  0xe9   : > { %1613 = vrot.lane.b32.xlu0 %v1537_v1, %s2944_s28  ;;  %v1541_v50 = vrot.slane %v445_v9, 1  ;;  %v1540_v1 = vrot.slane %v444_v48, 1  ;;  %v1717_v18 = vrot.slane %v445_v9, 2 }
  0xea   : > { %v824_v20 = vpop.permute.xlu1 %823 }
  0xeb   : > { %v3695_v61 = vsel %vm1910_vm4, %v1895_v56, %v824_v20  ;;  %v822_v12 = vpop.permute.xlu0 %821  ;;  %v1543_v56 = vrot.slane %v446_v11, 1  ;;  %v1902_v20 = vsel %vm1877_vm3, %v3199_v53, %v3533_v39  ;;  %v4635_v53 = vld [vmem:[#allocation2_spill] sm:$0xff] }
  0xec   : > { %v3698_v23 = vsel %vm1910_vm4, %v1894_v47, %v822_v12  ;;  %1789 = vrot.lane.b32.xlu1 %v1713_v59, %s2945_s29  ;;  %v1542_v59 = vsel %vm531_vm0, %v1540_v1, %v1541_v50  ;;  %v401_v47 = vld [vmem:[%s3386_s30 + $0x70] sm:$0x3]  ;;  %v1905_v39 = vsel %vm1877_vm3, %v4635_v53, %v3544_v10  ;;  %v1227_v10 = vsel %vm708_vm1, %v1225_v34, %v1226_v51 }
  0xed   : > { %1615 = vrot.lane.b32.xlu0 %v1539_v6, %s2944_s28 }
  0xee   : > { %v828_v27 = vpop.permute.xlu1 %827 }
  0xef   : > { %v3711_v45 = vsel %vm1910_vm4, %v1897_v40, %v828_v27  ;;  %v826_v44 = vpop.permute.xlu0 %825  ;;  %v1544_v40 = vsel %vm531_vm0, %v1541_v50, %v1543_v56  ;;  %v1052_v27 = vrot.slane %v401_v47, 1  ;;  %v4641_v50 = vld [vmem:[#allocation6_spill] sm:$0xff] }
  0xf0   : > { %v3714_v24 = vsel %vm1910_vm4, %v1896_v35, %v826_v44  ;;  %1297 = vrot.lane.b32.xlu1 %v1222_v62, %s2942_s15  ;;  %v1718_v62 = vsel %vm708_vm1, %v1716_v37, %v1717_v18 }
  0xf1   : > { %1123 = vrot.lane.b32.xlu0 %v1048_v3, %s2941_s7  ;;  %v4636_v3 = vld [vmem:[#allocation19_spill] sm:$0xff] }
  0xf2   : > { %v832_v38 = vpop.permute.xlu1 %831  ;;  %v1904_v35 = vsel %vm1877_vm3, %v4637_v5, %v4636_v3 }
  0xf3   : > { %v3727_v22 = vsel %vm1910_vm4, %v1899_v43, %v832_v38  ;;  %v830_v46 = vpop.permute.xlu0 %829  ;;  %v4638_v43 = vld [vmem:[#allocation4_spill] sm:$0xff] }
  0xf4   : > { %v3732_v31 = vsel %vm1910_vm4, %v1898_v0, %v830_v46  ;;  %1299 = vrot.lane.b32.xlu1 %v1224_v13, %s2942_s15  ;;  %v1228_v13 = vrot.slane %v401_v47, 2  ;;  %v1907_v38 = vsel %vm1877_vm3, %v4638_v43, %v3558_v8  ;;  %v1053_v0 = vsel %vm531_vm0, %v1050_v26, %v1052_v27  ;;  %v4640_v26 = vld [vmem:[#allocation20_spill] sm:$0xff] }
  0xf5   : > { %1791 = vrot.lane.b32.xlu0 %v1715_v17, %s2945_s29  ;;  %v1719_v46 = vrot.slane %v446_v11, 2  ;;  %v1909_v1 = vsel %vm1877_vm3, %v4641_v50, %v4640_v26  ;;  %v4643_v11 = vld [vmem:[#allocation7_spill] sm:$0xff]  ;;  %v4647_v47 = vld [vmem:[#allocation16_spill] sm:$0xff] }
  0xf6   : > { %v836_v55 = vpop.permute.xlu1 %835  ;;  %v1229_v8 = vsel %vm708_vm1, %v1226_v51, %v1228_v13  ;;  %v1054_v51 = vrot.slane %v4647_v47, 1  ;;  %v1230_v43 = vrot.slane %v4647_v47, 2 }
  0xf7   : > { %v3745_v7 = vsel %vm1910_vm4, %v1901_v28, %v836_v55  ;;  %v834_v58 = vpop.permute.xlu0 %833 }
  0xf8   : > { %v3749_v54 = vsel %vm1910_vm4, %v1900_v29, %v834_v58  ;;  %1427 = vrot.lane.b32.xlu1 %v445_v9, %s2943_s24  ;;  %v4639_v9 = vld [vmem:[#allocation5_spill] sm:$0xff] }
  0xf9   : > { %1425 = vrot.lane.b32.xlu0 %v444_v48, %s2943_s24  ;;  %v1906_v48 = vsel %vm1877_vm3, %v4639_v9, %v3561_v4  ;;  %v1720_v4 = vsel %vm708_vm1, %v1717_v18, %v1719_v46  ;;  %v4642_v58 = vld [vmem:[#allocation21_spill] sm:$0xff] }
  0xfa   : > { %v840_v36 = vpop.permute.xlu1 %839  ;;  %v1908_v37 = vsel %vm1877_vm3, %v4643_v11, %v4642_v58 }
  0xfb   : > { %v3762_v6 = vsel %vm1910_vm4, %v1903_v42, %v840_v36  ;;  %v838_v2 = vpop.permute.xlu0 %837  ;;  %v448_v36 = vld [vmem:[%s3501_s10 + $0x68] sm:$0xff] }
  0xfc   : > { %v3766_v12 = vsel %vm1910_vm4, %v1902_v20, %v838_v2  ;;  %1125 = vrot.lane.b32.xlu1 %v1051_v14, %s2941_s7  ;;  %v4646_v20 = vld [vmem:[#allocation15_spill] sm:$0xff]  ;;  %v1546_v34 = vrot.slane %v448_v36, 1 }
  0xfd   : > { %1617 = vrot.lane.b32.xlu0 %v1542_v59, %s2944_s28  ;;  %v447_v59 = vld [vmem:[%s3501_s10 + $0x60] sm:$0xff]  ;;  %v1055_v2 = vrot.slane %v4646_v20, 1  ;;  %v1231_v13 = vrot.slane %v4646_v20, 2 }
  0xfe   : > { %v844_v52 = vpop.permute.xlu1 %843  ;;  %v4649_v20 = vld [vmem:[#allocation18_spill] sm:$0xff] }
  0xff   : > { %v3781_v41 = vsel %vm1910_vm4, %v1905_v39, %v844_v52  ;;  %v842_v19 = vpop.permute.xlu0 %841  ;;  %v449_v39 = vld [vmem:[%s3501_s10 + $0x70] sm:$0x3]  ;;  %v1722_v52 = vrot.slane %v448_v36, 2  ;;  %v1056_v27 = vsel %vm531_vm0, %v1054_v51, %v1055_v2 }
 0x100   : > { %v3784_v44 = vsel %vm1910_vm4, %v1904_v35, %v842_v19  ;;  %1793 = vrot.lane.b32.xlu1 %v1718_v62, %s2945_s29  ;;  %v1545_v62 = vrot.slane %v447_v59, 1  ;;  %v1548_v35 = vrot.slane %v449_v39, 1  ;;  %v1724_v50 = vrot.slane %v449_v39, 2  ;;  %v452_v39 = vld [vmem:[%s3501_s10 + $0x88] sm:$0x3] }
 0x101   : > { %1619 = vrot.lane.b32.xlu0 %v1544_v40, %s2944_s28  ;;  %v1721_v40 = vrot.slane %v447_v59, 2 }
 0x102   : > { %v848_v17 = vpop.permute.xlu1 %847  ;;  %v1547_v5 = vsel %vm531_vm0, %v1545_v62, %v1546_v34  ;;  %v1725_v58 = vsel %vm708_vm1, %v1722_v52, %v1724_v50 }
 0x103   : > { %v3797_v25 = vsel %vm1910_vm4, %v1907_v38, %v848_v17  ;;  %v846_v28 = vpop.permute.xlu0 %845  ;;  %v1723_v38 = vsel %vm708_vm1, %v1721_v40, %v1722_v52 }
 0x104   : > { %v3800_v55 = vsel %vm1910_vm4, %v1906_v48, %v846_v28  ;;  %1301 = vrot.lane.b32.xlu1 %v1227_v10, %s2942_s15  ;;  %v404_v10 = vld [vmem:[%s3386_s30 + $0x88] sm:$0x3]  ;;  %v1232_v48 = vsel %vm708_vm1, %v1230_v43, %v1231_v13  ;;  %v407_v43 = vld [vmem:[%s3386_s30 + $0xa0] sm:$0x3] }
 0x105   : > { %1127 = vrot.lane.b32.xlu0 %v1053_v0, %s2941_s7  ;;  %v1549_v0 = vsel %vm531_vm0, %v1546_v34, %v1548_v35  ;;  %v1057_v46 = vrot.slane %v404_v10, 1  ;;  %v1233_v28 = vrot.slane %v404_v10, 2  ;;  %v1553_v10 = vrot.slane %v452_v39, 1 }
 0x106   : > { %v852_v29 = vpop.permute.xlu1 %851 }
 0x107   : > { %v3813_v14 = vsel %vm1910_vm4, %v1909_v1, %v852_v29  ;;  %v850_v42 = vpop.permute.xlu0 %849  ;;  %v1058_v26 = vsel %vm531_vm0, %v1055_v2, %v1057_v46  ;;  %v1234_v29 = vsel %vm708_vm1, %v1231_v13, %v1233_v28  ;;  %v1059_v2 = vrot.slane %v4649_v20, 1 }
 0x108   : > { %4644 = vst [vmem:[#allocation2_spill] sm:$0xff] %v3813_v14  ;;  %v3818_v56 = vsel %vm1910_vm4, %v1908_v37, %v850_v42  ;;  %1303 = vrot.lane.b32.xlu1 %v1229_v8, %s2942_s15  ;;  %v451_v37 = vld [vmem:[%s3501_s10 + $0x80] sm:$0xff]  ;;  %v450_v42 = vld [vmem:[%s3501_s10 + $0x78] sm:$0xff] }
 0x109   : > { %4645 = vst [vmem:[#allocation19_spill] sm:$0xff] %v3818_v56  ;;  %1795 = vrot.lane.b32.xlu0 %v1720_v4, %s2945_s29  ;;  %v1551_v51 = vrot.slane %v451_v37, 1  ;;  %v1550_v34 = vrot.slane %v450_v42, 1  ;;  %v1727_v52 = vrot.slane %v451_v37, 2  ;;  %v1726_v40 = vrot.slane %v450_v42, 2 }
 0x10a   : > { %v3824_v18 = vpop.permute.xlu1 %919  ;;  %v410_v56 = vld [vmem:[%s3386_s30 + $0xb8] sm:$0x3] }
 0x10b   : > { %v3826_v53 = vpop.permute.xlu0 %917  ;;  %v1552_v35 = vsel %vm531_vm0, %v1550_v34, %v1551_v51  ;;  %v1728_v46 = vsel %vm708_vm1, %v1726_v40, %v1727_v52  ;;  %v1554_v28 = vsel %vm531_vm0, %v1551_v51, %v1553_v10  ;;  %v453_v40 = vld [vmem:[%s3501_s10 + $0x90] sm:$0xff]  ;;  %v2907_v10 = vld [vmem:[%s3004_s25] sm:$0xff] }
 0x10c   : > { %1431 = vrot.lane.b32.xlu1 %v448_v36, %s2943_s24  ;;  %v4648_v36 = vld [vmem:[#allocation17_spill] sm:$0xff] }
 0x10d   : > { %1429 = vrot.lane.b32.xlu0 %v447_v59, %s2943_s24  ;;  %v1060_v59 = vrot.slane %v4648_v36, 1 }
 0x10e   : > { %v3832_v3 = vpop.permute.xlu1 %923 }
 0x10f   : > { %v3835_v19 = vpop.permute.xlu0 %921 }
 0x110   : > { %1129 = vrot.lane.b32.xlu1 %v1056_v27, %s2941_s7  ;;  %v1061_v27 = vsel %vm531_vm0, %v1059_v2, %v1060_v59 }
 0x111   : > { %1621 = vrot.lane.b32.xlu0 %v1547_v5, %s2944_s28 }
 0x112   : > { %v3843_v17 = vpop.permute.xlu1 %927 }
 0x113   : > { %v3846_v9 = vpop.permute.xlu0 %925 }
 0x114   : > { %1797 = vrot.lane.b32.xlu1 %v1723_v38, %s2945_s29  ;;  %v1236_v38 = vrot.slane %v4648_v36, 2  ;;  %v1729_v36 = vrot.slane %v452_v39, 2 }
 0x115   : > { %1623 = vrot.lane.b32.xlu0 %v1549_v0, %s2944_s28  ;;  %v1235_v0 = vrot.slane %v4649_v20, 2 }
 0x116   : > { %v3851_v8 = vpop.permute.xlu1 %931  ;;  %v1730_v34 = vsel %vm708_vm1, %v1727_v52, %v1729_v36  ;;  %v408_v52 = vld [vmem:[%s3386_s30 + $0xa8] sm:$0xff] }
 0x117   : > { %v3854_v1 = vpop.permute.xlu0 %929 }
 0x118   : > { %1305 = vrot.lane.b32.xlu1 %v1232_v48, %s2942_s15 }
 0x119   : > { %1131 = vrot.lane.b32.xlu0 %v1058_v26, %s2941_s7  ;;  %v1062_v26 = vrot.slane %v407_v43, 1 }
 0x11a   : > { %v3859_v4 = vpop.permute.xlu1 %935 }
 0x11b   : > { %v3862_v11 = vpop.permute.xlu0 %933 }
 0x11c   : > { %1307 = vrot.lane.b32.xlu1 %v1234_v29, %s2942_s15  ;;  %v1237_v29 = vsel %vm708_vm1, %v1235_v0, %v1236_v38 }
 0x11d   : > { %1799 = vrot.lane.b32.xlu0 %v1725_v58, %s2945_s29  ;;  %v1238_v58 = vrot.slane %v407_v43, 2  ;;  %v4651_v43 = vld [vmem:[#allocation23_spill] sm:$0xff] }
 0x11e   : > { %v3870_v47 = vpop.permute.xlu1 %939 }
 0x11f   : > { %v3872_v62 = vpop.permute.xlu0 %937  ;;  %v1239_v2 = vsel %vm708_vm1, %v1236_v38, %v1238_v58  ;;  %v1555_v38 = vrot.slane %v453_v40, 1 }
 0x120   : > { %1435 = vrot.lane.b32.xlu1 %v451_v37, %s2943_s24 }
 0x121   : > { %1433 = vrot.lane.b32.xlu0 %v450_v42, %s2943_s24  ;;  %v1063_v42 = vsel %vm531_vm0, %v1060_v59, %v1062_v26  ;;  %v4650_v59 = vld [vmem:[#allocation9_spill] sm:$0xff] }
 0x122   : > { %v3878_v5 = vpop.permute.xlu1 %943  ;;  %v1878_v39 = vsel %vm1877_vm3, %v2907_v10, %v4650_v59 }
 0x123   : > { %v3881_v13 = vpop.permute.xlu0 %941  ;;  %v1911_v0 = vsel %vm1910_vm4, %v1878_v39, %v4651_v43  ;;  %v455_v43 = vld [vmem:[%s3501_s10 + $0xa0] sm:$0x3] }
 0x124   : > { %1133 = vrot.lane.b32.xlu1 %v1061_v27, %s2941_s7  ;;  %v3902_v27 = vld [vmem:[%s3501_s10 + $0x98] sm:$0xff] }
 0x125   : > { %1625 = vrot.lane.b32.xlu0 %v1552_v35, %s2944_s28 }
 0x126   : > { %v3889_v48 = vpop.permute.xlu1 %1111 }
 0x127   : > { %v1110_v50 = vpop.permute.xlu0 %1109 }
 0x128   : > { %1801 = vrot.lane.b32.xlu1 %v1728_v46, %s2945_s29  ;;  %v1556_v46 = vrot.slane %v3902_v27, 1 }
 0x129   : > { %1627 = vrot.lane.b32.xlu0 %v1554_v28, %s2944_s28  ;;  %v1944_v28 = vsel %vm1943_vm5, %v1911_v0, %v3826_v53  ;;  %v2908_v0 = vld [vmem:[%s3004_s25 + $0x8] sm:$0xff] }
 0x12a   : > { %v1288_v37 = vpop.permute.xlu1 %1287  ;;  %v1977_v58 = vsel %vm1976_vm6, %v1944_v28, %v1110_v50  ;;  %v1557_v53 = vsel %vm531_vm0, %v1555_v38, %v1556_v46 }
 0x12b   : > { %v1286_v20 = vpop.permute.xlu0 %1285 }
 0x12c   : > { %1309 = vrot.lane.b32.xlu1 %v1237_v29, %s2942_s15  ;;  %v409_v29 = vld [vmem:[%s3386_s30 + $0xb0] sm:$0xff]  ;;  %v2010_v36 = vsel %vm2009_vm7, %v1977_v58, %v1286_v20  ;;  %v1731_v58 = vrot.slane %v453_v40, 2 }
 0x12d   : > { %1135 = vrot.lane.b32.xlu0 %v1063_v42, %s2941_s7  ;;  %v1065_v10 = vrot.slane %v409_v29, 1 }
 0x12e   : > { %v1416_v51 = vpop.permute.xlu1 %1415 }
 0x12f   : > { %v1414_v35 = vpop.permute.xlu0 %1413 }
 0x130   : > { %1311 = vrot.lane.b32.xlu1 %v1239_v2, %s2942_s15  ;;  %v1064_v2 = vrot.slane %v408_v52, 1 }
 0x131   : > { %1803 = vrot.lane.b32.xlu0 %v1730_v34, %s2945_s29  ;;  %v2043_v34 = vsel %vm2042_vm8, %v2010_v36, %v1414_v35  ;;  %v4652_v35 = vld [vmem:[#allocation11_spill] sm:$0xff]  ;;  %v4653_v36 = vld [vmem:[#allocation22_spill] sm:$0xff] }
 0x132   : > { %v3915_v26 = vpop.permute.xlu1 %1113  ;;  %v1879_v28 = vsel %vm1877_vm3, %v2908_v0, %v4652_v35  ;;  %v1066_v38 = vsel %vm531_vm0, %v1064_v2, %v1065_v10  ;;  %v1240_v0 = vrot.slane %v408_v52, 2  ;;  %v1241_v35 = vrot.slane %v409_v29, 2 }
 0x133   : > { %v1606_v42 = vpop.permute.xlu0 %1605 }
 0x134   : > { %945 = vrot.lane.b32.xlu1 %v408_v52, %s2940_s6  ;;  %v2076_v50 = vsel %vm2075_vm9, %v2043_v34, %v1606_v42  ;;  %v1732_v42 = vrot.slane %v3902_v27, 2  ;;  %v1912_v34 = vsel %vm1910_vm4, %v1879_v28, %v4653_v36 }
 0x135   : > { %1437 = vrot.lane.b32.xlu0 %v453_v40, %s2943_s24 }
 0x136   : > { %v1782_v59 = vpop.permute.xlu1 %1781 }
 0x137   : > { %v1608_v39 = vpop.permute.xlu0 %1607  ;;  %v2109_v20 = vsel %vm2108_vm10, %v2076_v50, %v1782_v59  ;;  %v1558_v59 = vrot.slane %v455_v43, 1 }
 0x138   : > { %1629 = vrot.lane.b32.xlu1 %v1557_v53, %s2944_s28  ;;  %2811 = vmatprep.mubr.msk.f32.mxu0 %vm2146_vm11, %v2109_v20  ;;  %v1945_v53 = vsel %vm1943_vm5, %v1912_v34, %v3824_v18  ;;  %v1067_v34 = vrot.slane %v410_v56, 1 }
 0x139   : > { %1439 = vrot.lane.b32.xlu0 %v3902_v27, %s2943_s24  ;;  %v1978_v40 = vsel %vm1976_vm6, %v1945_v53, %v3889_v48  ;;  %v1733_v27 = vsel %vm708_vm1, %v1731_v58, %v1732_v42  ;;  %v1559_v36 = vsel %vm531_vm0, %v1556_v46, %v1558_v59  ;;  %v4654_v59 = vld [vmem:[#allocation8_spill] sm:$0xff]  ;;  %v4655_v53 = vld [vmem:[#allocation25_spill] sm:$0xff] }
 0x13a   : > { %v1290_v50 = vpop.permute.xlu1 %1289  ;;  %v2011_v2 = vsel %vm2009_vm7, %v1978_v40, %v1288_v37  ;;  %v1242_v37 = vsel %vm708_vm1, %v1240_v0, %v1241_v35  ;;  %v1068_v46 = vsel %vm531_vm0, %v1065_v10, %v1067_v34  ;;  %v456_v0 = vld [vmem:[%s3501_s10 + $0xa8] sm:$0xff] }
 0x13b   : > { %v3940_v20 = vpop.permute.xlu0 %1115  ;;  %v2044_v28 = vsel %vm2042_vm8, %v2011_v2, %v1416_v51  ;;  %v1243_v51 = vrot.slane %v410_v56, 2 }
 0x13c   : > { %1137 = vrot.lane.b32.xlu1 %v1066_v38, %s2941_s7  ;;  %v2077_v14 = vsel %vm2075_vm9, %v2044_v28, %v1608_v39  ;;  %v2909_v39 = vld [vmem:[%s3004_s25 + $0x18] sm:$0xff] }
 0x13d   : > { %947 = vrot.lane.b32.xlu0 %v409_v29, %s2940_s6  ;;  %v1734_v29 = vrot.slane %v455_v43, 2  ;;  %v1244_v2 = vsel %vm708_vm1, %v1241_v35, %v1243_v51  ;;  %v412_v51 = vld [vmem:[%s3386_s30 + $0xc8] sm:$0xff] }
 0x13e   : > { %v1292_v18 = vpop.permute.xlu1 %1291 }
 0x13f   : > { %v1784_v48 = vpop.permute.xlu0 %1783  ;;  %v1735_v43 = vsel %vm708_vm1, %v1732_v42, %v1734_v29  ;;  %v4656_v29 = vld [vmem:[#allocation10_spill] sm:$0xff] }
 0x140   : > { %v2110_v38 = vsel %vm2108_vm10, %v2077_v14, %v1784_v48  ;;  %1805 = vrot.lane.b32.xlu1 %v1733_v27, %s2945_s29  ;;  %v1880_v14 = vsel %vm1877_vm3, %v2909_v39, %v4654_v59  ;;  %v3973_v27 = vld [vmem:[%s3501_s10 + $0xb0] sm:$0xff]  ;;  %v1560_v48 = vrot.slane %v456_v0, 1 }
 0x141   : > { %1631 = vrot.lane.b32.xlu0 %v1559_v36, %s2944_s28  ;;  %2812 = vmatmul.mubr.msk.f32.vlgmr.msra.gmra.mrb[0].mxu0 %vm2146_vm11, %v2110_v38  ;;  %v1913_v40 = vsel %vm1910_vm4, %v1880_v14, %v4655_v53  ;;  %v1561_v42 = vrot.slane %v3973_v27, 1  ;;  %v1070_v14 = vrot.slane %v412_v51, 1  ;;  %v4657_v53 = vld [vmem:[#allocation24_spill] sm:$0xff] }
 0x142   : > { %v1420_v52 = vpop.permute.xlu1 %1419  ;;  %v1946_v56 = vsel %vm1943_vm5, %v1913_v40, %v3835_v19  ;;  %v411_v19 = vld [vmem:[%s3386_s30 + $0xc0] sm:$0xff] }
 0x143   : > { %v1418_v58 = vpop.permute.xlu0 %1417  ;;  %v1979_v28 = vsel %vm1976_vm6, %v1946_v56, %v3915_v26  ;;  %v1069_v39 = vrot.slane %v411_v19, 1  ;;  %v1562_v59 = vsel %vm531_vm0, %v1560_v48, %v1561_v42 }
 0x144   : > { %1313 = vrot.lane.b32.xlu1 %v1242_v37, %s2942_s15  ;;  %v2012_v34 = vsel %vm2009_vm7, %v1979_v28, %v1290_v50  ;;  %v2910_v50 = vld [vmem:[%s3004_s25 + $0x20] sm:$0xff]  ;;  %v458_v28 = vld [vmem:[%s3501_s10 + $0xb8] sm:$0x3] }
 0x145   : > { %1139 = vrot.lane.b32.xlu0 %v1068_v46, %s2941_s7  ;;  %v2045_v35 = vsel %vm2042_vm8, %v2012_v34, %v1418_v58  ;;  %v1881_v58 = vsel %vm1877_vm3, %v2910_v50, %v4656_v29  ;;  %v1071_v48 = vsel %vm531_vm0, %v1069_v39, %v1070_v14  ;;  %v413_v29 = vld [vmem:[%s3386_s30 + $0xd0] sm:$0x3] }
 0x146   : > { %v3968_v10 = vpop.permute.xlu1 %1117  ;;  %v1914_v40 = vsel %vm1910_vm4, %v1881_v58, %v4657_v53 }
 0x147   : > { %v1610_v36 = vpop.permute.xlu0 %1609  ;;  %v1947_v56 = vsel %vm1943_vm5, %v1914_v40, %v3832_v3  ;;  %v4658_v40 = vld [vmem:[#allocation13_spill] sm:$0xff] }
 0x148   : > { %1315 = vrot.lane.b32.xlu1 %v1244_v2, %s2942_s15  ;;  %v2078_v38 = vsel %vm2075_vm9, %v2045_v35, %v1610_v36  ;;  %v1980_v36 = vsel %vm1976_vm6, %v1947_v56, %v3940_v20  ;;  %v1736_v35 = vrot.slane %v456_v0, 2 }
 0x149   : > { %1807 = vrot.lane.b32.xlu0 %v1735_v43, %s2945_s29  ;;  %v2013_v34 = vsel %vm2009_vm7, %v1980_v36, %v1292_v18  ;;  %v1245_v18 = vrot.slane %v411_v19, 2  ;;  %v4659_v36 = vld [vmem:[#allocation27_spill] sm:$0xff] }
 0x14a   : > { %v1786_v37 = vpop.permute.xlu1 %1785  ;;  %v2046_v3 = vsel %vm2042_vm8, %v2013_v34, %v1420_v52 }
 0x14b   : > { %v2111_v26 = vsel %vm2108_vm10, %v2078_v38, %v1786_v37  ;;  %v1612_v46 = vpop.permute.xlu0 %1611  ;;  %v1737_v38 = vrot.slane %v3973_v27, 2 }
 0x14c   : > { %949 = vrot.lane.b32.xlu1 %v411_v19, %s2940_s6  ;;  %2814 = vmatprep.mubr.msk.f32.mxu0 %vm2146_vm11, %v2111_v26  ;;  %v1563_v26 = vrot.slane %v458_v28, 1  ;;  %v2079_v50 = vsel %vm2075_vm9, %v2046_v3, %v1612_v46  ;;  %v2911_v46 = vld [vmem:[%s3004_s25 + $0x30] sm:$0xff]  ;;  %v1739_v3 = vrot.slane %v458_v28, 2 }
 0x14d   : > { %1441 = vrot.lane.b32.xlu0 %v456_v0, %s2943_s24  ;;  %v1738_v0 = vsel %vm708_vm1, %v1736_v35, %v1737_v38  ;;  %v1882_v56 = vsel %vm1877_vm3, %v2911_v46, %v4658_v40  ;;  %v4661_v40 = vld [vmem:[#allocation26_spill] sm:$0xff] }
 0x14e   : > { %v1294_v2 = vpop.permute.xlu1 %1293  ;;  %v1564_v39 = vsel %vm531_vm0, %v1561_v42, %v1563_v26  ;;  %v1915_v19 = vsel %vm1910_vm4, %v1882_v56, %v4659_v36  ;;  %v1740_v28 = vsel %vm708_vm1, %v1737_v38, %v1739_v3 }
 0x14f   : > { %v3997_v43 = vpop.permute.xlu0 %1119  ;;  %v1948_v42 = vsel %vm1943_vm5, %v1915_v19, %v3846_v9  ;;  %v415_v19 = vld [vmem:[%s3386_s30 + $0xe0] sm:$0xff] }
 0x150   : > { %1633 = vrot.lane.b32.xlu1 %v1562_v59, %s2944_s28  ;;  %v1072_v59 = vrot.slane %v413_v29, 1  ;;  %v1981_v26 = vsel %vm1976_vm6, %v1948_v42, %v3968_v10  ;;  %v459_v10 = vld [vmem:[%s3501_s10 + $0xc0] sm:$0xff] }
 0x151   : > { %1443 = vrot.lane.b32.xlu0 %v3973_v27, %s2943_s24  ;;  %v1246_v27 = vrot.slane %v412_v51, 2  ;;  %v1565_v46 = vrot.slane %v459_v10, 1 }
 0x152   : > { %v1296_v37 = vpop.permute.xlu1 %1295 }
 0x153   : > { %v1788_v20 = vpop.permute.xlu0 %1787  ;;  %v1247_v34 = vsel %vm708_vm1, %v1245_v18, %v1246_v27  ;;  %v4041_v18 = vld [vmem:[%s3501_s10 + $0xc8] sm:$0xff] }
 0x154   : > { %v2112_v58 = vsel %vm2108_vm10, %v2079_v50, %v1788_v20  ;;  %1141 = vrot.lane.b32.xlu1 %v1071_v48, %s2941_s7  ;;  %v1073_v48 = vsel %vm531_vm0, %v1070_v14, %v1072_v59  ;;  %v2014_v20 = vsel %vm2009_vm7, %v1981_v26, %v1294_v2  ;;  %v4660_v59 = vld [vmem:[#allocation12_spill] sm:$0xff]  ;;  %v1566_v38 = vrot.slane %v4041_v18, 1 }
 0x155   : > { %951 = vrot.lane.b32.xlu0 %v412_v51, %s2940_s6  ;;  %2815 = vmatmul.mubr.msk.f32.gmra.mrb[2].mxu0 %vm2146_vm11, %v2112_v58  ;;  %v1248_v51 = vrot.slane %v413_v29, 2 }
 0x156   : > { %v1424_v52 = vpop.permute.xlu1 %1423  ;;  %v1567_v26 = vsel %vm531_vm0, %v1565_v46, %v1566_v38 }
 0x157   : > { %v1422_v53 = vpop.permute.xlu0 %1421  ;;  %v1249_v9 = vsel %vm708_vm1, %v1246_v27, %v1248_v51 }
 0x158   : > { %1809 = vrot.lane.b32.xlu1 %v1738_v0, %s2945_s29  ;;  %v2047_v29 = vsel %vm2042_vm8, %v2014_v20, %v1422_v53  ;;  %v414_v53 = vld [vmem:[%s3386_s30 + $0xd8] sm:$0xff] }
 0x159   : > { %1635 = vrot.lane.b32.xlu0 %v1564_v39, %s2944_s28  ;;  %v2912_v39 = vld [vmem:[%s3004_s25 + $0x38] sm:$0xff]  ;;  %v1074_v3 = vrot.slane %v414_v53, 1 }
 0x15a   : > { %v4027_v35 = vpop.permute.xlu1 %1121  ;;  %v1883_v27 = vsel %vm1877_vm3, %v2912_v39, %v4660_v59  ;;  %v2913_v59 = vld [vmem:[%s3004_s25 + $0x48] sm:$0xff] }
 0x15b   : > { %v1614_v50 = vpop.permute.xlu0 %1613  ;;  %v1916_v56 = vsel %vm1910_vm4, %v1883_v27, %v4661_v40  ;;  %v4662_v27 = vld [vmem:[#allocation14_spill] sm:$0xff]  ;;  %v1250_v40 = vrot.slane %v414_v53, 2 }
 0x15c   : > { %1317 = vrot.lane.b32.xlu1 %v1247_v34, %s2942_s15  ;;  %v2080_v58 = vsel %vm2075_vm9, %v2047_v29, %v1614_v50  ;;  %v1949_v34 = vsel %vm1943_vm5, %v1916_v56, %v3843_v17  ;;  %v1075_v50 = vrot.slane %v415_v19, 1  ;;  %v1884_v46 = vsel %vm1877_vm3, %v2913_v59, %v4662_v27 }
 0x15d   : > { %1143 = vrot.lane.b32.xlu0 %v1073_v48, %s2941_s7  ;;  %v1982_v42 = vsel %vm1976_vm6, %v1949_v34, %v3997_v43  ;;  %v1251_v34 = vrot.slane %v415_v19, 2 }
 0x15e   : > { %v1790_v14 = vpop.permute.xlu1 %1789  ;;  %v2015_v48 = vsel %vm2009_vm7, %v1982_v42, %v1296_v37  ;;  %v1741_v37 = vrot.slane %v459_v10, 2 }
 0x15f   : > { %v2113_v2 = vsel %vm2108_vm10, %v2080_v58, %v1790_v14  ;;  %v1616_v0 = vpop.permute.xlu0 %1615  ;;  %v2048_v20 = vsel %vm2042_vm8, %v2015_v48, %v1424_v52  ;;  %v461_v58 = vld [vmem:[%s3501_s10 + $0xd0] sm:$0x3]  ;;  %v1076_v14 = vsel %vm531_vm0, %v1074_v3, %v1075_v50  ;;  %v1742_v52 = vrot.slane %v4041_v18, 2 }
 0x160   : > { %1319 = vrot.lane.b32.xlu1 %v1249_v9, %s2942_s15  ;;  %2817 = vmatprep.mubr.msk.f32.mxu0 %vm2146_vm11, %v2113_v2  ;;  %v2081_v17 = vsel %vm2075_vm9, %v2048_v20, %v1616_v0  ;;  %v1568_v2 = vrot.slane %v461_v58, 1  ;;  %v416_v0 = vld [vmem:[%s3386_s30 + $0xe8] sm:$0x3] }
 0x161   : > { %1811 = vrot.lane.b32.xlu0 %v1740_v28, %s2945_s29  ;;  %v1743_v56 = vsel %vm708_vm1, %v1741_v37, %v1742_v52  ;;  %v1077_v3 = vrot.slane %v416_v0, 1 }
 0x162   : > { %v1298_v36 = vpop.permute.xlu1 %1297  ;;  %v1569_v48 = vsel %vm531_vm0, %v1566_v38, %v1568_v2 }
 0x163   : > { %v1124_v51 = vpop.permute.xlu0 %1123 }
 0x164   : > { %953 = vrot.lane.b32.xlu1 %v414_v53, %s2940_s6  ;;  %v1253_v53 = vrot.slane %v416_v0, 2  ;;  %v4102_v0 = vld [vmem:[%s3501_s10 + $0xe0] sm:$0xff] }
 0x165   : > { %1445 = vrot.lane.b32.xlu0 %v459_v10, %s2943_s24  ;;  %v1917_v10 = vsel %vm1910_vm4, %v1884_v46, %v3612_v16  ;;  %v417_v46 = vld [vmem:[%s3386_s30 + $0xf0] sm:$0xff] }
 0x166   : > { %v1300_v29 = vpop.permute.xlu1 %1299  ;;  %v1254_v37 = vsel %vm708_vm1, %v1251_v34, %v1253_v53 }
 0x167   : > { %v1792_v9 = vpop.permute.xlu0 %1791 }
 0x168   : > { %v2114_v43 = vsel %vm2108_vm10, %v2081_v17, %v1792_v9  ;;  %1637 = vrot.lane.b32.xlu1 %v1567_v26, %s2944_s28  ;;  %v1078_v9 = vsel %vm531_vm0, %v1075_v50, %v1077_v3  ;;  %v1951_v50 = vsel %vm1943_vm5, %v3610_v49, %v3851_v8 }
 0x169   : > { %1447 = vrot.lane.b32.xlu0 %v4041_v18, %s2943_s24  ;;  %2818 = vmatmul.mubr.msk.f32.gmra.mrb[4].mxu0 %vm2146_vm11, %v2114_v43  ;;  %v1950_v18 = vsel %vm1943_vm5, %v1917_v10, %v3854_v1  ;;  %v1252_v1 = vsel %vm708_vm1, %v1250_v40, %v1251_v34  ;;  %v1984_v59 = vsel %vm1976_vm6, %v1951_v50, %v1124_v51  ;;  %v418_v34 = vld [vmem:[%s3386_s30 + $0xf8] sm:$0xff] }
 0x16a   : > { %v1428_v28 = vpop.permute.xlu1 %1427  ;;  %v1983_v26 = vsel %vm1976_vm6, %v1950_v18, %v4027_v35  ;;  %v1744_v35 = vrot.slane %v461_v58, 2  ;;  %v2017_v27 = vsel %vm2009_vm7, %v1984_v59, %v1300_v29  ;;  %v1079_v18 = vrot.slane %v417_v46, 1 }
 0x16b   : > { %v1426_v39 = vpop.permute.xlu0 %1425  ;;  %v2016_v17 = vsel %vm2009_vm7, %v1983_v26, %v1298_v36  ;;  %v2050_v40 = vsel %vm2042_vm8, %v2017_v27, %v1428_v28  ;;  %v464_v26 = vld [vmem:[%s3501_s10 + $0xe8] sm:$0x3] }
 0x16c   : > { %1145 = vrot.lane.b32.xlu1 %v1076_v14, %s2941_s7  ;;  %v2049_v16 = vsel %vm2042_vm8, %v2016_v17, %v1426_v39  ;;  %v1745_v2 = vsel %vm708_vm1, %v1742_v52, %v1744_v35  ;;  %v462_v39 = vld [vmem:[%s3501_s10 + $0xd8] sm:$0xff]  ;;  %v1571_v52 = vrot.slane %v4102_v0, 1  ;;  %v419_v35 = vld [vmem:[%s3386_s30 + $0x100] sm:$0x3] }
 0x16d   : > { %955 = vrot.lane.b32.xlu0 %v415_v19, %s2940_s6  ;;  %v1570_v10 = vrot.slane %v462_v39, 1  ;;  %v1258_v27 = vrot.slane %v419_v35, 2 }
 0x16e   : > { %v1126_v42 = vpop.permute.xlu1 %1125 }
 0x16f   : > { %v1618_v20 = vpop.permute.xlu0 %1617  ;;  %v1572_v29 = vsel %vm531_vm0, %v1570_v10, %v1571_v52 }
 0x170   : > { %1813 = vrot.lane.b32.xlu1 %v1743_v56, %s2945_s29  ;;  %v2082_v38 = vsel %vm2075_vm9, %v2049_v16, %v1618_v20  ;;  %v1746_v20 = vrot.slane %v462_v39, 2  ;;  %v1747_v16 = vrot.slane %v4102_v0, 2 }
 0x171   : > { %1639 = vrot.lane.b32.xlu0 %v1569_v48, %s2944_s28  ;;  %v1080_v48 = vrot.slane %v418_v34, 1 }
 0x172   : > { %v1794_v19 = vpop.permute.xlu1 %1793 }
 0x173   : > { %v2115_v43 = vsel %vm2108_vm10, %v2082_v38, %v1794_v19  ;;  %v1620_v36 = vpop.permute.xlu0 %1619  ;;  %v1081_v17 = vsel %vm531_vm0, %v1079_v18, %v1080_v48  ;;  %v1573_v38 = vrot.slane %v464_v26, 1 }
 0x174   : > { %1321 = vrot.lane.b32.xlu1 %v1252_v1, %s2942_s15  ;;  %2820 = vmatprep.mubr.msk.f32.mxu0 %vm2146_vm11, %v2115_v43  ;;  %v2083_v49 = vsel %vm2075_vm9, %v2050_v40, %v1620_v36  ;;  %v1952_v1 = vsel %vm1943_vm5, %v3628_v57, %v3862_v11  ;;  %v1255_v36 = vrot.slane %v417_v46, 2  ;;  %v1749_v40 = vrot.slane %v464_v26, 2 }
 0x175   : > { %1147 = vrot.lane.b32.xlu0 %v1078_v9, %s2941_s7  ;;  %v1985_v19 = vsel %vm1976_vm6, %v1952_v1, %v1126_v42  ;;  %v1082_v42 = vrot.slane %v419_v35, 1  ;;  %v1954_v35 = vsel %vm1943_vm5, %v3646_v15, %v3872_v62 }
 0x176   : > { %v1302_v14 = vpop.permute.xlu1 %1301 }
 0x177   : > { %v1128_v58 = vpop.permute.xlu0 %1127  ;;  %v2018_v43 = vsel %vm2009_vm7, %v1985_v19, %v1302_v14  ;;  %v1083_v10 = vsel %vm531_vm0, %v1080_v48, %v1082_v42  ;;  %v1750_v48 = vsel %vm708_vm1, %v1747_v16, %v1749_v40 }
 0x178   : > { %1323 = vrot.lane.b32.xlu1 %v1254_v37, %s2942_s15 }
 0x179   : > { %1815 = vrot.lane.b32.xlu0 %v1745_v2, %s2945_s29  ;;  %v1748_v2 = vsel %vm708_vm1, %v1746_v20, %v1747_v16  ;;  %v421_v16 = vld [vmem:[%s3386_s30 + $0x110] sm:$0xff] }
 0x17a   : > { %v1304_v56 = vpop.permute.xlu1 %1303 }
 0x17b   : > { %v1796_v8 = vpop.permute.xlu0 %1795 }
 0x17c   : > { %v2116_v51 = vsel %vm2108_vm10, %v2083_v49, %v1796_v8  ;;  %957 = vrot.lane.b32.xlu1 %v417_v46, %s2940_s6 }
 0x17d   : > { %1449 = vrot.lane.b32.xlu0 %v462_v39, %s2943_s24  ;;  %2821 = vmatmul.mubr.msk.f32.gmra.mrb[6].mxu0 %vm2146_vm11, %v2116_v51  ;;  %v1256_v39 = vrot.slane %v418_v34, 2 }
 0x17e   : > { %v1432_v3 = vpop.permute.xlu1 %1431 }
 0x17f   : > { %v1430_v28 = vpop.permute.xlu0 %1429  ;;  %v1257_v14 = vsel %vm708_vm1, %v1255_v36, %v1256_v39  ;;  %v1259_v51 = vsel %vm708_vm1, %v1256_v39, %v1258_v27 }
 0x180   : > { %1641 = vrot.lane.b32.xlu1 %v1572_v29, %s2944_s28  ;;  %v2051_v37 = vsel %vm2042_vm8, %v2018_v43, %v1430_v28  ;;  %v465_v28 = vld [vmem:[%s3501_s10 + $0xf0] sm:$0xff] }
 0x181   : > { %1451 = vrot.lane.b32.xlu0 %v4102_v0, %s2943_s24  ;;  %v1574_v0 = vsel %vm531_vm0, %v1571_v52, %v1573_v38  ;;  %v1953_v52 = vsel %vm1943_vm5, %v3625_v21, %v3859_v4  ;;  %v4157_v21 = vld [vmem:[%s3501_s10 + $0xf8] sm:$0xff] }
 0x182   : > { %v1130_v53 = vpop.permute.xlu1 %1129  ;;  %v1986_v49 = vsel %vm1976_vm6, %v1953_v52, %v1128_v58  ;;  %v1576_v20 = vrot.slane %v4157_v21, 1  ;;  %v1752_v15 = vrot.slane %v4157_v21, 2 }
 0x183   : > { %v1622_v9 = vpop.permute.xlu0 %1621  ;;  %v2019_v8 = vsel %vm2009_vm7, %v1986_v49, %v1304_v56  ;;  %v420_v56 = vld [vmem:[%s3386_s30 + $0x108] sm:$0xff]  ;;  %v1987_v36 = vsel %vm1976_vm6, %v1954_v35, %v1130_v53 }
 0x184   : > { %1149 = vrot.lane.b32.xlu1 %v1081_v17, %s2941_s7  ;;  %v2084_v57 = vsel %vm2075_vm9, %v2051_v37, %v1622_v9  ;;  %v2052_v18 = vsel %vm2042_vm8, %v2019_v8, %v1432_v3  ;;  %v1575_v3 = vrot.slane %v465_v28, 1  ;;  %v1084_v38 = vrot.slane %v420_v56, 1 }
 0x185   : > { %959 = vrot.lane.b32.xlu0 %v418_v34, %s2940_s6  ;;  %v1085_v9 = vrot.slane %v421_v16, 1  ;;  %v1260_v27 = vrot.slane %v420_v56, 2  ;;  %v1955_v8 = vsel %vm1943_vm5, %v3641_v33, %v3870_v47 }
 0x186   : > { %v1798_v11 = vpop.permute.xlu1 %1797  ;;  %v1577_v19 = vsel %vm531_vm0, %v1575_v3, %v1576_v20 }
 0x187   : > { %v2117_v50 = vsel %vm2108_vm10, %v2084_v57, %v1798_v11  ;;  %v1624_v59 = vpop.permute.xlu0 %1623  ;;  %v1751_v11 = vrot.slane %v465_v28, 2 }
 0x188   : > { %1817 = vrot.lane.b32.xlu1 %v1748_v2, %s2945_s29  ;;  %2823 = vmatprep.mubr.msk.f32.mxu0 %vm2146_vm11, %v2117_v50  ;;  %v2085_v4 = vsel %vm2075_vm9, %v2052_v18, %v1624_v59  ;;  %v467_v2 = vld [vmem:[%s3501_s10 + $0x100] sm:$0x3] }
 0x189   : > { %1643 = vrot.lane.b32.xlu0 %v1574_v0, %s2944_s28  ;;  %v1086_v0 = vsel %vm531_vm0, %v1084_v38, %v1085_v9  ;;  %v1578_v53 = vrot.slane %v467_v2, 1  ;;  %v1754_v47 = vrot.slane %v467_v2, 2  ;;  %v423_v38 = vld [vmem:[%s3386_s30 + $0x120] sm:$0xff] }
 0x18a   : > { %v1306_v46 = vpop.permute.xlu1 %1305  ;;  %v1089_v2 = vrot.slane %v423_v38, 1 }
 0x18b   : > { %v1132_v34 = vpop.permute.xlu0 %1131  ;;  %v2020_v39 = vsel %vm2009_vm7, %v1987_v36, %v1306_v46  ;;  %v1753_v46 = vsel %vm708_vm1, %v1751_v11, %v1752_v15  ;;  %v1579_v52 = vsel %vm531_vm0, %v1576_v20, %v1578_v53  ;;  %v1755_v20 = vsel %vm708_vm1, %v1752_v15, %v1754_v47  ;;  %v424_v36 = vld [vmem:[%s3386_s30 + $0x128] sm:$0xff] }
 0x18c   : > { %1325 = vrot.lane.b32.xlu1 %v1257_v14, %s2942_s15  ;;  %v422_v14 = vld [vmem:[%s3386_s30 + $0x118] sm:$0x3]  ;;  %v1988_v18 = vsel %vm1976_vm6, %v1955_v8, %v1132_v34  ;;  %v1956_v11 = vsel %vm1943_vm5, %v3663_v63, %v3881_v13  ;;  %v1266_v8 = vrot.slane %v424_v36, 2 }
 0x18d   : > { %1151 = vrot.lane.b32.xlu0 %v1083_v10, %s2941_s7  ;;  %v1261_v10 = vrot.slane %v421_v16, 2  ;;  %v1087_v49 = vrot.slane %v422_v14, 1 }
 0x18e   : > { %v1308_v29 = vpop.permute.xlu1 %1307 }
 0x18f   : > { %v1800_v58 = vpop.permute.xlu0 %1799  ;;  %v1088_v33 = vsel %vm531_vm0, %v1085_v9, %v1087_v49 }
 0x190   : > { %v2118_v26 = vsel %vm2108_vm10, %v2085_v4, %v1800_v58  ;;  %1327 = vrot.lane.b32.xlu1 %v1259_v51, %s2942_s15 }
 0x191   : > { %1819 = vrot.lane.b32.xlu0 %v1750_v48, %s2945_s29  ;;  %2824 = vmatmul.mubr.msk.f32.gmra.mrb[8].mxu0 %vm2146_vm11, %v2118_v26  ;;  %v2021_v48 = vsel %vm2009_vm7, %v1988_v18, %v1308_v29 }
 0x192   : > { %v1436_v17 = vpop.permute.xlu1 %1435 }
 0x193   : > { %v1434_v1 = vpop.permute.xlu0 %1433  ;;  %v2054_v4 = vsel %vm2042_vm8, %v2021_v48, %v1436_v17  ;;  %v468_v17 = vld [vmem:[%s3501_s10 + $0x108] sm:$0xff] }
 0x194   : > { %961 = vrot.lane.b32.xlu1 %v420_v56, %s2940_s6  ;;  %v2053_v57 = vsel %vm2042_vm8, %v2020_v39, %v1434_v1 }
 0x195   : > { %1453 = vrot.lane.b32.xlu0 %v465_v28, %s2943_s24  ;;  %v1262_v28 = vsel %vm708_vm1, %v1260_v27, %v1261_v10 }
 0x196   : > { %v4173_v43 = vpop.permute.xlu1 %1133 }
 0x197   : > { %v1626_v37 = vpop.permute.xlu0 %1625  ;;  %v1989_v15 = vsel %vm1976_vm6, %v1956_v11, %v4173_v43 }
 0x198   : > { %1645 = vrot.lane.b32.xlu1 %v1577_v19, %s2944_s28  ;;  %v2086_v62 = vsel %vm2075_vm9, %v2053_v57, %v1626_v37  ;;  %v1580_v19 = vrot.slane %v468_v17, 1  ;;  %v1090_v57 = vrot.slane %v424_v36, 1 }
 0x199   : > { %1455 = vrot.lane.b32.xlu0 %v4157_v21, %s2943_s24  ;;  %v1263_v21 = vrot.slane %v422_v14, 2 }
 0x19a   : > { %v1802_v42 = vpop.permute.xlu1 %1801  ;;  %v1091_v63 = vsel %vm531_vm0, %v1089_v2, %v1090_v57 }
 0x19b   : > { %v2119_v50 = vsel %vm2108_vm10, %v2086_v62, %v1802_v42  ;;  %v1628_v59 = vpop.permute.xlu0 %1627  ;;  %v1264_v29 = vsel %vm708_vm1, %v1261_v10, %v1263_v21  ;;  %v470_v42 = vld [vmem:[%s3501_s10 + $0x118] sm:$0x3]  ;;  %v1957_v21 = vsel %vm1943_vm5, %v3659_v60, %v3878_v5 }
 0x19c   : > { %1153 = vrot.lane.b32.xlu1 %v1086_v0, %s2941_s7  ;;  %2826 = vmatprep.mubr.msk.f32.mxu0 %vm2146_vm11, %v2119_v50  ;;  %v2087_v34 = vsel %vm2075_vm9, %v2054_v4, %v1628_v59  ;;  %v1756_v59 = vrot.slane %v468_v17, 2  ;;  %v1583_v27 = vrot.slane %v470_v42, 1  ;;  %v1759_v5 = vrot.slane %v470_v42, 2 }
 0x19d   : > { %963 = vrot.lane.b32.xlu0 %v421_v16, %s2940_s6  ;;  %v4215_v16 = vld [vmem:[%s3501_s10 + $0x110] sm:$0xff] }
 0x19e   : > { %v1310_v40 = vpop.permute.xlu1 %1309  ;;  %v1581_v9 = vrot.slane %v4215_v16, 1  ;;  %v1757_v13 = vrot.slane %v4215_v16, 2 }
 0x19f   : > { %v4195_v51 = vpop.permute.xlu0 %1135  ;;  %v2022_v53 = vsel %vm2009_vm7, %v1989_v15, %v1310_v40  ;;  %v425_v40 = vld [vmem:[%s3386_s30 + $0x130] sm:$0x3] }
 0x1a0   : > { %1821 = vrot.lane.b32.xlu1 %v1753_v46, %s2945_s29  ;;  %v1582_v39 = vsel %vm531_vm0, %v1580_v19, %v1581_v9  ;;  %v1758_v49 = vsel %vm708_vm1, %v1756_v59, %v1757_v13  ;;  %v1584_v48 = vsel %vm531_vm0, %v1581_v9, %v1583_v27  ;;  %v4274_v19 = vld [vmem:[%s3501_s10 + $0x128] sm:$0xff] }
 0x1a1   : > { %1647 = vrot.lane.b32.xlu0 %v1579_v52, %s2944_s28  ;;  %v1265_v52 = vrot.slane %v423_v38, 2 }
 0x1a2   : > { %v1312_v58 = vpop.permute.xlu1 %1311 }
 0x1a3   : > { %v1804_v26 = vpop.permute.xlu0 %1803 }
 0x1a4   : > { %v2120_v56 = vsel %vm2108_vm10, %v2087_v34, %v1804_v26  ;;  %1329 = vrot.lane.b32.xlu1 %v1262_v28, %s2942_s15  ;;  %v1092_v28 = vrot.slane %v425_v40, 1  ;;  %v1267_v34 = vsel %vm708_vm1, %v1265_v52, %v1266_v8  ;;  %v1268_v26 = vrot.slane %v425_v40, 2 }
 0x1a5   : > { %1155 = vrot.lane.b32.xlu0 %v1088_v33, %s2941_s7  ;;  %2827 = vmatmul.mubr.msk.f32.gmra.mrb[10].mxu0 %vm2146_vm11, %v2120_v56  ;;  %v1990_v33 = vsel %vm1976_vm6, %v1957_v21, %v4195_v51 }
 0x1a6   : > { %v4210_v3 = vpop.permute.xlu1 %945  ;;  %v2023_v47 = vsel %vm2009_vm7, %v1990_v33, %v1312_v58  ;;  %v1093_v60 = vsel %vm531_vm0, %v1090_v57, %v1092_v28  ;;  %v1269_v58 = vsel %vm708_vm1, %v1266_v8, %v1268_v26 }
 0x1a7   : > { %v1438_v1 = vpop.permute.xlu0 %1437 }
 0x1a8   : > { %1331 = vrot.lane.b32.xlu1 %v1264_v29, %s2942_s15  ;;  %v2055_v50 = vsel %vm2042_vm8, %v2022_v53, %v1438_v1  ;;  %v1760_v1 = vsel %vm708_vm1, %v1757_v13, %v1759_v5  ;;  %v1958_v53 = vsel %vm1943_vm5, %v3680_v32, %v4210_v3  ;;  %v473_v13 = vld [vmem:[%s3501_s10 + $0x130] sm:$0x3]  ;;  %v1762_v3 = vrot.slane %v4274_v19, 2 }
 0x1a9   : > { %1823 = vrot.lane.b32.xlu0 %v1755_v20, %s2945_s29 }
 0x1aa   : > { %v1630_v35 = vpop.permute.xlu1 %1629 }
 0x1ab   : > { %v1440_v37 = vpop.permute.xlu0 %1439  ;;  %v2088_v14 = vsel %vm2075_vm9, %v2055_v50, %v1630_v35  ;;  %v426_v35 = vld [vmem:[%s3386_s30 + $0x138] sm:$0xff] }
 0x1ac   : > { %965 = vrot.lane.b32.xlu1 %v423_v38, %s2940_s6  ;;  %v2056_v56 = vsel %vm2042_vm8, %v2023_v47, %v1440_v37  ;;  %v471_v38 = vld [vmem:[%s3501_s10 + $0x120] sm:$0xff]  ;;  %v1586_v37 = vrot.slane %v4274_v19, 1  ;;  %v1094_v11 = vrot.slane %v426_v35, 1  ;;  %v1270_v8 = vrot.slane %v426_v35, 2 }
 0x1ad   : > { %1457 = vrot.lane.b32.xlu0 %v468_v17, %s2943_s24  ;;  %v1761_v27 = vrot.slane %v471_v38, 2 }
 0x1ae   : > { %v4228_v0 = vpop.permute.xlu1 %1137 }
 0x1af   : > { %v4232_v62 = vpop.permute.xlu0 %947  ;;  %v1991_v59 = vsel %vm1976_vm6, %v1958_v53, %v4228_v0 }
 0x1b0   : > { %1649 = vrot.lane.b32.xlu1 %v1582_v39, %s2944_s28  ;;  %v427_v39 = vld [vmem:[%s3386_s30 + $0x140] sm:$0xff]  ;;  %v1959_v47 = vsel %vm1943_vm5, %v3676_v30, %v4232_v62  ;;  %v1764_v62 = vrot.slane %v473_v13, 2 }
 0x1b1   : > { %1459 = vrot.lane.b32.xlu0 %v4215_v16, %s2943_s24  ;;  %v1095_v42 = vrot.slane %v427_v39, 1 }
 0x1b2   : > { %v1806_v43 = vpop.permute.xlu1 %1805 }
 0x1b3   : > { %v2121_v46 = vsel %vm2108_vm10, %v2088_v14, %v1806_v43  ;;  %v1632_v10 = vpop.permute.xlu0 %1631  ;;  %v1096_v32 = vsel %vm531_vm0, %v1094_v11, %v1095_v42 }
 0x1b4   : > { %1157 = vrot.lane.b32.xlu1 %v1091_v63, %s2941_s7  ;;  %2829 = vmatprep.mubr.msk.f32.mxu0 %vm2146_vm11, %v2121_v46  ;;  %v2089_v51 = vsel %vm2075_vm9, %v2056_v56, %v1632_v10  ;;  %v1588_v10 = vrot.slane %v473_v13, 1 }
 0x1b5   : > { %967 = vrot.lane.b32.xlu0 %v424_v36, %s2940_s6  ;;  %v1585_v36 = vrot.slane %v471_v38, 1 }
 0x1b6   : > { %v1314_v18 = vpop.permute.xlu1 %1313  ;;  %v1589_v21 = vsel %vm531_vm0, %v1586_v37, %v1588_v10 }
 0x1b7   : > { %v4253_v4 = vpop.permute.xlu0 %1139  ;;  %v1587_v15 = vsel %vm531_vm0, %v1585_v36, %v1586_v37  ;;  %v2024_v14 = vsel %vm2009_vm7, %v1991_v59, %v1314_v18  ;;  %v1763_v18 = vsel %vm708_vm1, %v1761_v27, %v1762_v3  ;;  %v429_v36 = vld [vmem:[%s3386_s30 + $0x150] sm:$0xff]  ;;  %v476_v27 = vld [vmem:[%s3501_s10 + $0x148] sm:$0x3] }
 0x1b8   : > { %1825 = vrot.lane.b32.xlu1 %v1758_v49, %s2945_s29  ;;  %v428_v49 = vld [vmem:[%s3386_s30 + $0x148] sm:$0x3]  ;;  %v1992_v26 = vsel %vm1976_vm6, %v1959_v47, %v4253_v4  ;;  %v1593_v10 = vrot.slane %v476_v27, 1 }
 0x1b9   : > { %1651 = vrot.lane.b32.xlu0 %v1584_v48, %s2944_s28  ;;  %v1271_v48 = vrot.slane %v427_v39, 2  ;;  %v1097_v33 = vrot.slane %v428_v49, 1  ;;  %v1273_v5 = vrot.slane %v428_v49, 2  ;;  %v431_v49 = vld [vmem:[%s3386_s30 + $0x160] sm:$0x3] }
 0x1ba   : > { %v1316_v29 = vpop.permute.xlu1 %1315 }
 0x1bb   : > { %v1808_v20 = vpop.permute.xlu0 %1807  ;;  %v2025_v56 = vsel %vm2009_vm7, %v1992_v26, %v1316_v29  ;;  %v1098_v30 = vsel %vm531_vm0, %v1095_v42, %v1097_v33  ;;  %v1274_v29 = vsel %vm708_vm1, %v1271_v48, %v1273_v5  ;;  %v1102_v33 = vrot.slane %v431_v49, 1 }
 0x1bc   : > { %v2122_v17 = vsel %vm2108_vm10, %v2089_v51, %v1808_v20  ;;  %1333 = vrot.lane.b32.xlu1 %v1267_v34, %s2942_s15 }
 0x1bd   : > { %1159 = vrot.lane.b32.xlu0 %v1093_v60, %s2941_s7  ;;  %2830 = vmatmul.mubr.msk.f32.gmra.mrb[12].mxu0 %vm2146_vm11, %v2122_v17  ;;  %v1272_v60 = vsel %vm708_vm1, %v1270_v8, %v1271_v48  ;;  %v1275_v8 = vrot.slane %v429_v36, 2 }
 0x1be   : > { %v4269_v16 = vpop.permute.xlu1 %949 }
 0x1bf   : > { %v1442_v9 = vpop.permute.xlu0 %1441  ;;  %v1960_v59 = vsel %vm1943_vm5, %v3698_v23, %v4269_v16 }
 0x1c0   : > { %1335 = vrot.lane.b32.xlu1 %v1269_v58, %s2942_s15  ;;  %v2057_v43 = vsel %vm2042_vm8, %v2024_v14, %v1442_v9  ;;  %v4333_v9 = vld [vmem:[%s3501_s10 + $0x140] sm:$0xff] }
 0x1c1   : > { %1827 = vrot.lane.b32.xlu0 %v1760_v1, %s2945_s29  ;;  %v1767_v16 = vrot.slane %v4333_v9, 2 }
 0x1c2   : > { %v1634_v2 = vpop.permute.xlu1 %1633 }
 0x1c3   : > { %v1444_v57 = vpop.permute.xlu0 %1443  ;;  %v2090_v46 = vsel %vm2075_vm9, %v2057_v43, %v1634_v2  ;;  %v1591_v2 = vrot.slane %v4333_v9, 1 }
 0x1c4   : > { %969 = vrot.lane.b32.xlu1 %v426_v35, %s2940_s6  ;;  %v2058_v51 = vsel %vm2042_vm8, %v2025_v56, %v1444_v57  ;;  %v430_v57 = vld [vmem:[%s3386_s30 + $0x158] sm:$0xff] }
 0x1c5   : > { %1461 = vrot.lane.b32.xlu0 %v471_v38, %s2943_s24  ;;  %v1765_v38 = vsel %vm708_vm1, %v1762_v3, %v1764_v62  ;;  %v1100_v53 = vrot.slane %v430_v57, 1  ;;  %v1276_v48 = vrot.slane %v430_v57, 2 }
 0x1c6   : > { %v4287_v50 = vpop.permute.xlu1 %1141 }
 0x1c7   : > { %v4291_v63 = vpop.permute.xlu0 %951  ;;  %v1993_v14 = vsel %vm1976_vm6, %v1960_v59, %v4287_v50  ;;  %v1277_v5 = vsel %vm708_vm1, %v1275_v8, %v1276_v48 }
 0x1c8   : > { %1653 = vrot.lane.b32.xlu1 %v1587_v15, %s2944_s28  ;;  %v1099_v15 = vrot.slane %v429_v36, 1  ;;  %v1961_v47 = vsel %vm1943_vm5, %v3695_v61, %v4291_v63  ;;  %v1103_v61 = vsel %vm531_vm0, %v1100_v53, %v1102_v33  ;;  %v1769_v63 = vrot.slane %v476_v27, 2 }
 0x1c9   : > { %1463 = vrot.lane.b32.xlu0 %v4274_v19, %s2943_s24  ;;  %v474_v19 = vld [vmem:[%s3501_s10 + $0x138] sm:$0xff] }
 0x1ca   : > { %v1810_v0 = vpop.permute.xlu1 %1809  ;;  %v1590_v37 = vrot.slane %v474_v19, 1  ;;  %v1101_v23 = vsel %vm531_vm0, %v1099_v15, %v1100_v53 }
 0x1cb   : > { %v2123_v40 = vsel %vm2108_vm10, %v2090_v46, %v1810_v0  ;;  %v1636_v52 = vpop.permute.xlu0 %1635  ;;  %v1766_v46 = vrot.slane %v474_v19, 2 }
 0x1cc   : > { %1161 = vrot.lane.b32.xlu1 %v1096_v32, %s2941_s7  ;;  %2832 = vmatprep.mubr.msk.f32.mxu0 %vm2146_vm11, %v2123_v40  ;;  %v2091_v4 = vsel %vm2075_vm9, %v2058_v51, %v1636_v52  ;;  %v1592_v42 = vsel %vm531_vm0, %v1590_v37, %v1591_v2  ;;  %v1278_v51 = vrot.slane %v431_v49, 2 }
 0x1cd   : > { %971 = vrot.lane.b32.xlu0 %v427_v39, %s2940_s6 }
 0x1ce   : > { %v1318_v28 = vpop.permute.xlu1 %1317 }
 0x1cf   : > { %v4312_v34 = vpop.permute.xlu0 %1143  ;;  %v2026_v32 = vsel %vm2009_vm7, %v1993_v14, %v1318_v28 }
 0x1d0   : > { %1829 = vrot.lane.b32.xlu1 %v1763_v18, %s2945_s29  ;;  %v1768_v18 = vsel %vm708_vm1, %v1766_v46, %v1767_v16  ;;  %v1994_v56 = vsel %vm1976_vm6, %v1961_v47, %v4312_v34 }
 0x1d1   : > { %1655 = vrot.lane.b32.xlu0 %v1589_v21, %s2944_s28  ;;  %v1594_v21 = vsel %vm531_vm0, %v1591_v2, %v1593_v10 }
 0x1d2   : > { %v1320_v20 = vpop.permute.xlu1 %1319 }
 0x1d3   : > { %v1812_v17 = vpop.permute.xlu0 %1811 }
 0x1d4   : > { %v2124_v58 = vsel %vm2108_vm10, %v2091_v4, %v1812_v17  ;;  %1337 = vrot.lane.b32.xlu1 %v1272_v60, %s2942_s15  ;;  %v2027_v60 = vsel %vm2009_vm7, %v1994_v56, %v1320_v20  ;;  %v1279_v20 = vsel %vm708_vm1, %v1276_v48, %v1278_v51 }
 0x1d5   : > { %1163 = vrot.lane.b32.xlu0 %v1098_v30, %s2941_s7  ;;  %2833 = vmatmul.mubr.msk.f32.gmra.mrb[14].mxu0 %vm2146_vm11, %v2124_v58 }
 0x1d6   : > { %v4328_v1 = vpop.permute.xlu1 %953 }
 0x1d7   : > { %v1446_v35 = vpop.permute.xlu0 %1445  ;;  %v1962_v53 = vsel %vm1943_vm5, %v3714_v24, %v4328_v1 }
 0x1d8   : > { %1339 = vrot.lane.b32.xlu1 %v1274_v29, %s2942_s15  ;;  %v2059_v3 = vsel %vm2042_vm8, %v2026_v32, %v1446_v35  ;;  %v1770_v29 = vsel %vm708_vm1, %v1767_v16, %v1769_v63  ;;  %v432_v35 = vld [vmem:[%s3386_s30 + $0x168] sm:$0xff]  ;;  %v479_v32 = vld [vmem:[%s3501_s10 + $0x160] sm:$0x3] }
 0x1d9   : > { %1831 = vrot.lane.b32.xlu0 %v1765_v38, %s2945_s29  ;;  %v477_v38 = vld [vmem:[%s3501_s10 + $0x150] sm:$0xff] }
 0x1da   : > { %v1638_v39 = vpop.permute.xlu1 %1637 }
 0x1db   : > { %v1448_v11 = vpop.permute.xlu0 %1447  ;;  %v2092_v0 = vsel %vm2075_vm9, %v2059_v3, %v1638_v39  ;;  %v433_v39 = vld [vmem:[%s3386_s30 + $0x170] sm:$0xff] }
 0x1dc   : > { %973 = vrot.lane.b32.xlu1 %v429_v36, %s2940_s6  ;;  %v2060_v30 = vsel %vm2042_vm8, %v2027_v60, %v1448_v11  ;;  %v1595_v36 = vrot.slane %v477_v38, 1  ;;  %v1104_v11 = vrot.slane %v432_v35, 1  ;;  %v1281_v8 = vrot.slane %v433_v39, 2 }
 0x1dd   : > { %1465 = vrot.lane.b32.xlu0 %v474_v19, %s2943_s24  ;;  %v4392_v19 = vld [vmem:[%s3501_s10 + $0x158] sm:$0xff] }
 0x1de   : > { %v4346_v13 = vpop.permute.xlu1 %1145  ;;  %v1596_v37 = vrot.slane %v4392_v19, 1  ;;  %v1772_v1 = vrot.slane %v4392_v19, 2 }
 0x1df   : > { %v4350_v43 = vpop.permute.xlu0 %955  ;;  %v1995_v14 = vsel %vm1976_vm6, %v1962_v53, %v4346_v13 }
 0x1e0   : > { %1657 = vrot.lane.b32.xlu1 %v1592_v42, %s2944_s28  ;;  %v1597_v15 = vsel %vm531_vm0, %v1595_v36, %v1596_v37  ;;  %v1105_v42 = vrot.slane %v433_v39, 1 }
 0x1e1   : > { %1467 = vrot.lane.b32.xlu0 %v4333_v9, %s2943_s24 }
 0x1e2   : > { %v1814_v50 = vpop.permute.xlu1 %1813  ;;  %v1106_v24 = vsel %vm531_vm0, %v1104_v11, %v1105_v42 }
 0x1e3   : > { %v1640_v40 = vpop.permute.xlu0 %1639  ;;  %v2125_v52 = vsel %vm2108_vm10, %v2092_v0, %v1814_v50  ;;  %v1598_v0 = vrot.slane %v479_v32, 1 }
 0x1e4   : > { %1165 = vrot.lane.b32.xlu1 %v1101_v23, %s2941_s7  ;;  %2835 = vmatprep.mubr.msk.f32.mxu1 %vm2146_vm11, %v2125_v52  ;;  %v2093_v34 = vsel %vm2075_vm9, %v2060_v30, %v1640_v40  ;;  %v1771_v23 = vrot.slane %v477_v38, 2  ;;  %v434_v40 = vld [vmem:[%s3386_s30 + $0x178] sm:$0x3]  ;;  %v1280_v52 = vrot.slane %v432_v35, 2  ;;  %v1774_v30 = vrot.slane %v479_v32, 2 }
 0x1e5   : > { %975 = vrot.lane.b32.xlu0 %v430_v57, %s2940_s6  ;;  %v1599_v48 = vsel %vm531_vm0, %v1596_v37, %v1598_v0 }
 0x1e6   : > { %v1322_v28 = vpop.permute.xlu1 %1321  ;;  %v1773_v49 = vsel %vm708_vm1, %v1771_v23, %v1772_v1  ;;  %v1282_v60 = vsel %vm708_vm1, %v1280_v52, %v1281_v8 }
 0x1e7   : > { %v4371_v26 = vpop.permute.xlu0 %1147  ;;  %v2028_v3 = vsel %vm2009_vm7, %v1995_v14, %v1322_v28  ;;  %v1107_v28 = vrot.slane %v434_v40, 1 }
 0x1e8   : > { %1833 = vrot.lane.b32.xlu1 %v1768_v18, %s2945_s29 }
 0x1e9   : > { %1659 = vrot.lane.b32.xlu0 %v1594_v21, %s2944_s28  ;;  %v1963_v21 = vsel %vm1943_vm5, %v3711_v45, %v4350_v43  ;;  %v1108_v43 = vsel %vm531_vm0, %v1105_v42, %v1107_v28 }
 0x1ea   : > { %v1324_v62 = vpop.permute.xlu1 %1323  ;;  %v1996_v47 = vsel %vm1976_vm6, %v1963_v21, %v4371_v26 }
 0x1eb   : > { %v1816_v4 = vpop.permute.xlu0 %1815  ;;  %v2029_v56 = vsel %vm2009_vm7, %v1996_v47, %v1324_v62 }
 0x1ec   : > { %v2126_v17 = vsel %vm2108_vm10, %v2093_v34, %v1816_v4  ;;  %1341 = vrot.lane.b32.xlu1 %v1277_v5, %s2942_s15  ;;  %v1283_v5 = vrot.slane %v434_v40, 2  ;;  %v1775_v4 = vsel %vm708_vm1, %v1772_v1, %v1774_v30 }
 0x1ed   : > { %1167 = vrot.lane.b32.xlu0 %v1103_v61, %s2941_s7  ;;  %2836 = vmatmul.mubr.msk.f32.vlgmr.msra.gmra.mrb[0].mxu1 %vm2146_vm11, %v2126_v17  ;;  %v481_v17 = vld [vmem:[%s3501_s10 + $0x170] sm:$0xff] }
 0x1ee   : > { %v4387_v58 = vpop.permute.xlu1 %957  ;;  %v1284_v62 = vsel %vm708_vm1, %v1281_v8, %v1283_v5 }
 0x1ef   : > { %v1450_v9 = vpop.permute.xlu0 %1449  ;;  %v1964_v11 = vsel %vm1943_vm5, %v3732_v31, %v4387_v58 }
 0x1f0   : > { %1343 = vrot.lane.b32.xlu1 %v1279_v20, %s2942_s15  ;;  %v2061_v46 = vsel %vm2042_vm8, %v2028_v3, %v1450_v9  ;;  %v482_v20 = vld [vmem:[%s3501_s10 + $0x178] sm:$0x3] }
 0x1f1   : > { %1835 = vrot.lane.b32.xlu0 %v1770_v29, %s2945_s29  ;;  %v1603_v9 = vrot.slane %v482_v20, 1 }
 0x1f2   : > { %v1642_v2 = vpop.permute.xlu1 %1641 }
 0x1f3   : > { %v1452_v57 = vpop.permute.xlu0 %1451  ;;  %v2094_v16 = vsel %vm2075_vm9, %v2061_v46, %v1642_v2  ;;  %v1777_v2 = vrot.slane %v481_v17, 2 }
 0x1f4   : > { %977 = vrot.lane.b32.xlu1 %v432_v35, %s2940_s6  ;;  %v2062_v51 = vsel %vm2042_vm8, %v2029_v56, %v1452_v57  ;;  %v1779_v57 = vrot.slane %v482_v20, 2 }
 0x1f5   : > { %1469 = vrot.lane.b32.xlu0 %v477_v38, %s2943_s24  ;;  %v480_v38 = vld [vmem:[%s3501_s10 + $0x168] sm:$0xff] }
 0x1f6   : > { %v4405_v59 = vpop.permute.xlu1 %1149  ;;  %v1600_v36 = vrot.slane %v480_v38, 1  ;;  %v1780_v23 = vsel %vm708_vm1, %v1777_v2, %v1779_v57 }
 0x1f7   : > { %v4409_v27 = vpop.permute.xlu0 %959  ;;  %v1997_v14 = vsel %vm1976_vm6, %v1964_v11, %v4405_v59 }
 0x1f8   : > { %1661 = vrot.lane.b32.xlu1 %v1597_v15, %s2944_s28  ;;  %v1776_v15 = vrot.slane %v480_v38, 2  ;;  %v1965_v52 = vsel %vm1943_vm5, %v3727_v22, %v4409_v27 }
 0x1f9   : > { %1471 = vrot.lane.b32.xlu0 %v4392_v19, %s2943_s24  ;;  %v1601_v19 = vrot.slane %v481_v17, 1 }
 0x1fa   : > { %v1818_v13 = vpop.permute.xlu1 %1817 }
 0x1fb   : > { %v2127_v50 = vsel %vm2108_vm10, %v2094_v16, %v1818_v13  ;;  %v1644_v10 = vpop.permute.xlu0 %1643  ;;  %v1602_v53 = vsel %vm531_vm0, %v1600_v36, %v1601_v19 }
 0x1fc   : > { %1169 = vrot.lane.b32.xlu1 %v1106_v24, %s2941_s7  ;;  %2838 = vmatprep.mubr.msk.f32.mxu1 %vm2146_vm11, %v2127_v50  ;;  %v2095_v26 = vsel %vm2075_vm9, %v2062_v51, %v1644_v10  ;;  %v1778_v24 = vsel %vm708_vm1, %v1776_v15, %v1777_v2 }
 0x1fd   : > { %979 = vrot.lane.b32.xlu0 %v433_v39, %s2940_s6  ;;  %v1604_v39 = vsel %vm531_vm0, %v1601_v19, %v1603_v9  ;;  %s4566_s6 = scalar_lea.vmem %s4593_s4, %s4670_s18 }
 0x1fe   : > { %v1326_v18 = vpop.permute.xlu1 %1325 }
 0x1ff   : > { %v4430_v33 = vpop.permute.xlu0 %1151  ;;  %v2030_v3 = vsel %vm2009_vm7, %v1997_v14, %v1326_v18 }
 0x200   : > { %1837 = vrot.lane.b32.xlu1 %v1773_v49, %s2945_s29  ;;  %v1998_v8 = vsel %vm1976_vm6, %v1965_v52, %v4430_v33 }
 0x201   : > { %1663 = vrot.lane.b32.xlu0 %v1599_v48, %s2944_s28 }
 0x202   : > { %v1328_v45 = vpop.permute.xlu1 %1327 }
 0x203   : > { %v1820_v61 = vpop.permute.xlu0 %1819  ;;  %v2031_v48 = vsel %vm2009_vm7, %v1998_v8, %v1328_v45 }
 0x204   : > { %v2128_v63 = vsel %vm2108_vm10, %v2095_v26, %v1820_v61  ;;  %1345 = vrot.lane.b32.xlu1 %v1282_v60, %s2942_s15 }
 0x205   : > { %1171 = vrot.lane.b32.xlu0 %v1108_v43, %s2941_s7  ;;  %2839 = vmatmul.mubr.msk.f32.gmra.mrb[2].mxu1 %vm2146_vm11, %v2128_v63 }
 0x206   : > { %v962_v34 = vpop.permute.xlu1 %961 }
 0x207   : > { %v1454_v29 = vpop.permute.xlu0 %1453  ;;  %v1966_v33 = vsel %vm1943_vm5, %v3749_v54, %v962_v34 }
 0x208   : > { %1347 = vrot.lane.b32.xlu1 %v1284_v62, %s2942_s15  ;;  %v2063_v46 = vsel %vm2042_vm8, %v2030_v3, %v1454_v29 }
 0x209   : > { %1839 = vrot.lane.b32.xlu0 %v1775_v4, %s2945_s29 }
 0x20a   : > { %v1646_v35 = vpop.permute.xlu1 %1645 }
 0x20b   : > { %v1456_v37 = vpop.permute.xlu0 %1455  ;;  %v2096_v31 = vsel %vm2075_vm9, %v2063_v46, %v1646_v35 }
 0x20c   : > { %1475 = vrot.lane.b32.xlu1 %v481_v17, %s2943_s24  ;;  %v2064_v28 = vsel %vm2042_vm8, %v2031_v48, %v1456_v37 }
 0x20d   : > { %1473 = vrot.lane.b32.xlu0 %v480_v38, %s2943_s24 }
 0x20e   : > { %v1154_v42 = vpop.permute.xlu1 %1153 }
 0x20f   : > { %v964_v32 = vpop.permute.xlu0 %963  ;;  %v1999_v45 = vsel %vm1976_vm6, %v1966_v33, %v1154_v42 }
 0x210   : > { %1667 = vrot.lane.b32.xlu1 %v1604_v39, %s2944_s28  ;;  %v1967_v37 = vsel %vm1943_vm5, %v3745_v7, %v964_v32 }
 0x211   : > { %1665 = vrot.lane.b32.xlu0 %v1602_v53, %s2944_s28 }
 0x212   : > { %v1822_v58 = vpop.permute.xlu1 %1821 }
 0x213   : > { %v2129_v1 = vsel %vm2108_vm10, %v2096_v31, %v1822_v58  ;;  %v1648_v16 = vpop.permute.xlu0 %1647 }
 0x214   : > { %v2813_v59 = vpop.f32.mrb[0].mxu0  ;;  %1843 = vrot.lane.b32.xlu1 %v1780_v23, %s2945_s29  ;;  %2841 = vmatprep.mubr.msk.f32.mxu1 %vm2146_vm11, %v2129_v1  ;;  %v2097_v47 = vsel %vm2075_vm9, %v2064_v28, %v1648_v16 }
 0x215   : > { %v2520_v13 = vmul.f32 %v2813_v59, %v2813_v59  ;;  %v2313_v0 = vpop.f32.mrb[1].mxu0  ;;  %1841 = vrot.lane.b32.xlu0 %v1778_v24, %s2945_s29 }
 0x216   : > { %v2479_v50 = vadd.f32 %v2813_v59, %v2313_v0  ;;  %v2519_v10 = vmul.f32 %v2313_v0, %v2313_v0  ;;  %v1330_v40 = vpop.permute.xlu1 %1329 }
 0x217   : > { %v1156_v49 = vpop.permute.xlu0 %1155  ;;  %v2032_v26 = vsel %vm2009_vm7, %v1999_v45, %v1330_v40 }
 0x218   : > { %v2551_v18 = vadd.f32 %v2520_v13, %v2519_v10  ;;  %v2000_v39 = vsel %vm1976_vm6, %v1967_v37, %v1156_v49 }
 0x21a   : > { %v1332_v21 = vpop.permute.xlu1 %1331 }
 0x21b   : > { %v1824_v56 = vpop.permute.xlu0 %1823  ;;  %v2033_v57 = vsel %vm2009_vm7, %v2000_v39, %v1332_v21 }
 0x21c   : > { %v2130_v60 = vsel %vm2108_vm10, %v2097_v47, %v1824_v56 }
 0x21d   : > { %2842 = vmatmul.mubr.msk.f32.gmra.mrb[4].mxu1 %vm2146_vm11, %v2130_v60 }
 0x21e   : > { %v966_v5 = vpop.permute.xlu1 %965 }
 0x21f   : > { %v1458_v51 = vpop.permute.xlu0 %1457  ;;  %v1968_v58 = vsel %vm1943_vm5, %v3766_v12, %v966_v5 }
 0x220   : > { %v2065_v63 = vsel %vm2042_vm8, %v2032_v26, %v1458_v51 }
 0x222   : > { %v1650_v22 = vpop.permute.xlu1 %1649 }
 0x223   : > { %v1460_v27 = vpop.permute.xlu0 %1459  ;;  %v2098_v4 = vsel %vm2075_vm9, %v2065_v63, %v1650_v22 }
 0x224   : > { %v2066_v11 = vsel %vm2042_vm8, %v2033_v57, %v1460_v27 }
 0x226   : > { %v1158_v43 = vpop.permute.xlu1 %1157 }
 0x227   : > { %v968_v30 = vpop.permute.xlu0 %967  ;;  %v2001_v59 = vsel %vm1976_vm6, %v1968_v58, %v1158_v43 }
 0x228   : > { %v2816_v61 = vpop.f32.mrb[2].mxu0  ;;  %v1969_v21 = vsel %vm1943_vm5, %v3762_v6, %v968_v30 }
 0x229   : > { %v2323_v62 = vpop.f32.mrb[3].mxu0  ;;  %v2522_v9 = vmul.f32 %v2816_v61, %v2816_v61 }
 0x22a   : > { %v2480_v17 = vadd.f32 %v2479_v50, %v2323_v62  ;;  %v2521_v20 = vmul.f32 %v2323_v62, %v2323_v62  ;;  %v1826_v29 = vpop.permute.xlu1 %1825 }
 0x22b   : > { %v2131_v38 = vsel %vm2108_vm10, %v2098_v4, %v1826_v29  ;;  %v1652_v19 = vpop.permute.xlu0 %1651 }
 0x22c   : > { %v2552_v54 = vadd.f32 %v2551_v18, %v2521_v20  ;;  %2844 = vmatprep.mubr.msk.f32.mxu1 %vm2146_vm11, %v2131_v38  ;;  %v2481_v34 = vadd.f32 %v2816_v61, %v2480_v17  ;;  %v2099_v42 = vsel %vm2075_vm9, %v2066_v11, %v1652_v19 }
 0x22e   : > { %v1334_v35 = vpop.permute.xlu1 %1333  ;;  %v2553_v36 = vadd.f32 %v2552_v54, %v2522_v9 }
 0x22f   : > { %v1160_v2 = vpop.permute.xlu0 %1159  ;;  %v2034_v0 = vsel %vm2009_vm7, %v2001_v59, %v1334_v35 }
 0x230   : > { %v2002_v56 = vsel %vm1976_vm6, %v1969_v21, %v1160_v2 }
 0x232   : > { %v1336_v15 = vpop.permute.xlu1 %1335 }
 0x233   : > { %v1828_v53 = vpop.permute.xlu0 %1827  ;;  %v2035_v60 = vsel %vm2009_vm7, %v2002_v56, %v1336_v15 }
 0x234   : > { %v2132_v14 = vsel %vm2108_vm10, %v2099_v42, %v1828_v53 }
 0x235   : > { %2845 = vmatmul.mubr.msk.f32.gmra.mrb[6].mxu1 %vm2146_vm11, %v2132_v14 }
 0x236   : > { %v970_v3 = vpop.permute.xlu1 %969 }
 0x237   : > { %v1462_v46 = vpop.permute.xlu0 %1461  ;;  %v1970_v29 = vsel %vm1943_vm5, %v3784_v44, %v970_v3 }
 0x238   : > { %v2067_v52 = vsel %vm2042_vm8, %v2034_v0, %v1462_v46 }
 0x23a   : > { %v1654_v23 = vpop.permute.xlu1 %1653 }
 0x23b   : > { %v1464_v31 = vpop.permute.xlu0 %1463  ;;  %v2100_v49 = vsel %vm2075_vm9, %v2067_v52, %v1654_v23 }
 0x23c   : > { %v2819_v7 = vpop.f32.mrb[4].mxu0  ;;  %v2068_v5 = vsel %vm2042_vm8, %v2035_v60, %v1464_v31 }
 0x23d   : > { %v2333_v32 = vpop.f32.mrb[5].mxu0  ;;  %v2524_v50 = vmul.f32 %v2819_v7, %v2819_v7 }
 0x23e   : > { %v2482_v24 = vadd.f32 %v2481_v34, %v2333_v32  ;;  %v2523_v1 = vmul.f32 %v2333_v32, %v2333_v32  ;;  %v1162_v16 = vpop.permute.xlu1 %1161 }
 0x23f   : > { %v972_v13 = vpop.permute.xlu0 %971  ;;  %v2003_v9 = vsel %vm1976_vm6, %v1970_v29, %v1162_v16 }
 0x240   : > { %v2554_v10 = vadd.f32 %v2553_v36, %v2523_v1  ;;  %v2483_v40 = vadd.f32 %v2819_v7, %v2482_v24  ;;  %v1971_v44 = vsel %vm1943_vm5, %v3781_v41, %v972_v13 }
 0x242   : > { %v1830_v8 = vpop.permute.xlu1 %1829  ;;  %v2555_v18 = vadd.f32 %v2554_v10, %v2524_v50 }
 0x243   : > { %v2133_v48 = vsel %vm2108_vm10, %v2100_v49, %v1830_v8  ;;  %v1656_v12 = vpop.permute.xlu0 %1655 }
 0x244   : > { %2847 = vmatprep.mubr.msk.f32.mxu1 %vm2146_vm11, %v2133_v48  ;;  %v2101_v22 = vsel %vm2075_vm9, %v2068_v5, %v1656_v12 }
 0x246   : > { %v1338_v28 = vpop.permute.xlu1 %1337 }
 0x247   : > { %v1164_v47 = vpop.permute.xlu0 %1163  ;;  %v2036_v34 = vsel %vm2009_vm7, %v2003_v9, %v1338_v28 }
 0x248   : > { %v2004_v15 = vsel %vm1976_vm6, %v1971_v44, %v1164_v47 }
 0x24a   : > { %v1340_v51 = vpop.permute.xlu1 %1339 }
 0x24b   : > { %v1832_v27 = vpop.permute.xlu0 %1831  ;;  %v2037_v42 = vsel %vm2009_vm7, %v2004_v15, %v1340_v51 }
 0x24c   : > { %v2134_v33 = vsel %vm2108_vm10, %v2101_v22, %v1832_v27 }
 0x24d   : > { %2848 = vmatmul.mubr.msk.f32.gmra.mrb[8].mxu1 %vm2146_vm11, %v2134_v33 }
 0x24e   : > { %v974_v43 = vpop.permute.xlu1 %973 }
 0x24f   : > { %v1466_v45 = vpop.permute.xlu0 %1465  ;;  %v1972_v10 = vsel %vm1943_vm5, %v3800_v55, %v974_v43 }
 0x250   : > { %v2822_v26 = vpop.f32.mrb[6].mxu0  ;;  %v2069_v35 = vsel %vm2042_vm8, %v2036_v34, %v1466_v45 }
 0x251   : > { %v2343_v61 = vpop.f32.mrb[7].mxu0  ;;  %v2526_v4 = vmul.f32 %v2822_v26, %v2822_v26 }
 0x252   : > { %v2484_v6 = vadd.f32 %v2483_v40, %v2343_v61  ;;  %v2525_v30 = vmul.f32 %v2343_v61, %v2343_v61  ;;  %v1658_v63 = vpop.permute.xlu1 %1657 }
 0x253   : > { %v1468_v62 = vpop.permute.xlu0 %1467  ;;  %v2102_v36 = vsel %vm2075_vm9, %v2069_v35, %v1658_v63 }
 0x254   : > { %v2556_v17 = vadd.f32 %v2555_v18, %v2525_v30  ;;  %v2485_v20 = vadd.f32 %v2822_v26, %v2484_v6  ;;  %v2070_v53 = vsel %vm2042_vm8, %v2037_v42, %v1468_v62 }
 0x256   : > { %v1166_v38 = vpop.permute.xlu1 %1165  ;;  %v2557_v19 = vadd.f32 %v2556_v17, %v2526_v4 }
 0x257   : > { %v976_v54 = vpop.permute.xlu0 %975  ;;  %v2005_v52 = vsel %vm1976_vm6, %v1972_v10, %v1166_v38 }
 0x258   : > { %v1973_v55 = vsel %vm1943_vm5, %v3797_v25, %v976_v54 }
 0x25a   : > { %v1834_v37 = vpop.permute.xlu1 %1833 }
 0x25b   : > { %v2135_v2 = vsel %vm2108_vm10, %v2102_v36, %v1834_v37  ;;  %v1660_v39 = vpop.permute.xlu0 %1659 }
 0x25c   : > { %2850 = vmatprep.mubr.msk.f32.mxu1 %vm2146_vm11, %v2135_v2  ;;  %v2103_v3 = vsel %vm2075_vm9, %v2070_v53, %v1660_v39 }
 0x25e   : > { %v1342_v57 = vpop.permute.xlu1 %1341 }
 0x25f   : > { %v1168_v11 = vpop.permute.xlu0 %1167  ;;  %v2038_v8 = vsel %vm2009_vm7, %v2005_v52, %v1342_v57 }
 0x260   : > { %v2006_v60 = vsel %vm1976_vm6, %v1973_v55, %v1168_v11 }
 0x262   : > { %v1344_v14 = vpop.permute.xlu1 %1343 }
 0x263   : > { %v1836_v46 = vpop.permute.xlu0 %1835  ;;  %v2039_v51 = vsel %vm2009_vm7, %v2006_v60, %v1344_v14 }
 0x264   : > { %v2136_v23 = vsel %vm2108_vm10, %v2103_v3, %v1836_v46  ;;  %v2825_v31 = vpop.f32.mrb[8].mxu0 }
 0x265   : > { %v2353_v7 = vpop.f32.mrb[9].mxu0  ;;  %2851 = vmatmul.mubr.msk.f32.gmra.mrb[10].mxu1 %vm2146_vm11, %v2136_v23  ;;  %v2528_v1 = vmul.f32 %v2825_v31, %v2825_v31 }
 0x266   : > { %v2486_v32 = vadd.f32 %v2485_v20, %v2353_v7  ;;  %v2527_v58 = vmul.f32 %v2353_v7, %v2353_v7  ;;  %v978_v41 = vpop.permute.xlu1 %977  ;;  %v4663_v20 = vld [vmem:[#allocation2_spill] sm:$0xff] }
 0x267   : > { %v1470_v24 = vpop.permute.xlu0 %1469 }
 0x268   : > { %v2558_v16 = vadd.f32 %v2557_v19, %v2527_v58  ;;  %v2487_v59 = vadd.f32 %v2825_v31, %v2486_v32  ;;  %v2071_v18 = vsel %vm2042_vm8, %v2038_v8, %v1470_v24  ;;  %v4664_v19 = vld [vmem:[#allocation19_spill] sm:$0xff] }
 0x269   : > { %v1974_v9 = vsel %vm1943_vm5, %v4664_v19, %v978_v41 }
 0x26a   : > { %v1662_v13 = vpop.permute.xlu1 %1661  ;;  %v2559_v0 = vadd.f32 %v2558_v16, %v2528_v1 }
 0x26b   : > { %v1472_v50 = vpop.permute.xlu0 %1471  ;;  %v2104_v48 = vsel %vm2075_vm9, %v2071_v18, %v1662_v13 }
 0x26c   : > { %v2072_v27 = vsel %vm2042_vm8, %v2039_v51, %v1472_v50 }
 0x26e   : > { %v1170_v40 = vpop.permute.xlu1 %1169 }
 0x26f   : > { %v980_v49 = vpop.permute.xlu0 %979  ;;  %v2007_v35 = vsel %vm1976_vm6, %v1974_v9, %v1170_v40 }
 0x270   : > { %v1975_v29 = vsel %vm1943_vm5, %v4663_v20, %v980_v49 }
 0x272   : > { %v1838_v12 = vpop.permute.xlu1 %1837 }
 0x273   : > { %v2137_v28 = vsel %vm2108_vm10, %v2104_v48, %v1838_v12  ;;  %v1664_v21 = vpop.permute.xlu0 %1663 }
 0x274   : > { %2853 = vmatprep.mubr.msk.f32.mxu1 %vm2146_vm11, %v2137_v28  ;;  %v2105_v26 = vsel %vm2075_vm9, %v2072_v27, %v1664_v21 }
 0x276   : > { %v1346_v47 = vpop.permute.xlu1 %1345 }
 0x277   : > { %v1172_v56 = vpop.permute.xlu0 %1171  ;;  %v2040_v37 = vsel %vm2009_vm7, %v2007_v35, %v1346_v47 }
 0x278   : > { %v2828_v5 = vpop.f32.mrb[10].mxu0  ;;  %v2008_v54 = vsel %vm1976_vm6, %v1975_v29, %v1172_v56 }
 0x279   : > { %v2363_v22 = vpop.f32.mrb[11].mxu0  ;;  %v2530_v6 = vmul.f32 %v2828_v5, %v2828_v5 }
 0x27a   : > { %v2488_v33 = vadd.f32 %v2487_v59, %v2363_v22  ;;  %v2529_v43 = vmul.f32 %v2363_v22, %v2363_v22  ;;  %v1348_v45 = vpop.permute.xlu1 %1347  ;;  %v2946_v22 = vmov 0.0  }
 0x27b   : > { %v1840_v61 = vpop.permute.xlu0 %1839  ;;  %v2041_v36 = vsel %vm2009_vm7, %v2008_v54, %v1348_v45  ;;  %2476 = vst [vmem:[%s4566_s6] sm:$0x1] %v2946_v22  ;;  %2477 = vst [vmem:[%s4572_s9] sm:$0x1] %v2946_v22 }
 0x27c   : > { %v2560_v30 = vadd.f32 %v2559_v0, %v2529_v43  ;;  %v2138_v63 = vsel %vm2108_vm10, %v2105_v26, %v1840_v61  ;;  %v2489_v25 = vadd.f32 %v2828_v5, %v2488_v33 }
 0x27d   : > { %2854 = vmatmul.mubr.msk.f32.gmra.mrb[12].mxu1 %vm2146_vm11, %v2138_v63 }
 0x27e   : > { %v1476_v62 = vpop.permute.xlu1 %1475  ;;  %v2561_v4 = vadd.f32 %v2560_v30, %v2530_v6 }
 0x27f   : > { %v1474_v17 = vpop.permute.xlu0 %1473  ;;  %v2074_v2 = vsel %vm2042_vm8, %v2041_v36, %v1476_v62 }
 0x280   : > { %v2073_v39 = vsel %vm2042_vm8, %v2040_v37, %v1474_v17 }
 0x282   : > { %v1668_v38 = vpop.permute.xlu1 %1667 }
 0x283   : > { %v1666_v34 = vpop.permute.xlu0 %1665  ;;  %v2107_v57 = vsel %vm2075_vm9, %v2074_v2, %v1668_v38 }
 0x284   : > { %v2106_v11 = vsel %vm2075_vm9, %v2073_v39, %v1666_v34 }
 0x286   : > { %v1844_v44 = vpop.permute.xlu1 %1843 }
 0x287   : > { %v2140_v15 = vsel %vm2108_vm10, %v2107_v57, %v1844_v44  ;;  %v1842_v42 = vpop.permute.xlu0 %1841 }
 0x288   : > { %v2139_v53 = vsel %vm2108_vm10, %v2106_v11, %v1842_v42 }
 0x289   : > { %2856 = vmatprep.mubr.msk.f32.mxu1 %vm2146_vm11, %v2139_v53 }
 0x28a   : > { %2857 = vmatmul.mubr.msk.f32.gmra.mrb[14].mxu1 %vm2146_vm11, %v2140_v15 }
 0x290   : > { %v2831_v14 = vpop.f32.mrb[12].mxu0 }
 0x291   : > { %v2373_v3 = vpop.f32.mrb[13].mxu0  ;;  %v2532_v31 = vmul.f32 %v2831_v14, %v2831_v14 }
 0x292   : > { %v2490_v46 = vadd.f32 %v2489_v25, %v2373_v3  ;;  %v2531_v23 = vmul.f32 %v2373_v3, %v2373_v3 }
 0x294   : > { %v2562_v7 = vadd.f32 %v2561_v4, %v2531_v23  ;;  %v2491_v32 = vadd.f32 %v2831_v14, %v2490_v46 }
 0x296   : > { %v2563_v58 = vadd.f32 %v2562_v7, %v2532_v31 }
 0x2a8   : > { %v2834_v41 = vpop.f32.mrb[14].mxu0 }
 0x2a9   : > { %v2383_v24 = vpop.f32.mrb[15].mxu0  ;;  %v2534_v59 = vmul.f32 %v2834_v41, %v2834_v41 }
 0x2aa   : > { %v2492_v1 = vadd.f32 %v2491_v32, %v2383_v24  ;;  %v2533_v16 = vmul.f32 %v2383_v24, %v2383_v24 }
 0x2ac   : > { %v2493_v13 = vadd.f32 %v2834_v41, %v2492_v1  ;;  %v2564_v0 = vadd.f32 %v2563_v58, %v2533_v16 }
 0x2ae   : > { %v2565_v50 = vadd.f32 %v2564_v0, %v2534_v59 }
 0x2c0   : > { %v2837_v10 = vpop.f32.mrb[0].mxu1 }
 0x2c1   : > { %v2393_v40 = vpop.f32.mrb[1].mxu1  ;;  %v2536_v8 = vmul.f32 %v2837_v10, %v2837_v10 }
 0x2c2   : > { %v2494_v52 = vadd.f32 %v2493_v13, %v2393_v40  ;;  %v2535_v49 = vmul.f32 %v2393_v40, %v2393_v40 }
 0x2c4   : > { %v2566_v18 = vadd.f32 %v2565_v50, %v2535_v49  ;;  %v2495_v48 = vadd.f32 %v2837_v10, %v2494_v52 }
 0x2c6   : > { %v2567_v12 = vadd.f32 %v2566_v18, %v2536_v8 }
 0x2d8   : > { %v2840_v28 = vpop.f32.mrb[2].mxu1 }
 0x2d9   : > { %v2403_v21 = vpop.f32.mrb[3].mxu1  ;;  %v2538_v56 = vmul.f32 %v2840_v28, %v2840_v28 }
 0x2da   : > { %v2496_v47 = vadd.f32 %v2495_v48, %v2403_v21  ;;  %v2537_v55 = vmul.f32 %v2403_v21, %v2403_v21 }
 0x2dc   : > { %v2568_v60 = vadd.f32 %v2567_v12, %v2537_v55  ;;  %v2497_v5 = vadd.f32 %v2840_v28, %v2496_v47  ;;  %v2478_v47 = vld [vmem:[%s4566_s6] sm:$0x1] }
 0x2de   : > { %v2569_v51 = vadd.f32 %v2568_v60, %v2538_v56  ;;  %v2518_v60 = vld [vmem:[%s4572_s9] sm:$0x1] }
 0x2f0   : > { %v2843_v27 = vpop.f32.mrb[4].mxu1 }
 0x2f1   : > { %v2413_v33 = vpop.f32.mrb[5].mxu1  ;;  %v2540_v26 = vmul.f32 %v2843_v27, %v2843_v27 }
 0x2f2   : > { %v2498_v43 = vadd.f32 %v2497_v5, %v2413_v33  ;;  %v2539_v45 = vmul.f32 %v2413_v33, %v2413_v33 }
 0x2f4   : > { %v2570_v61 = vadd.f32 %v2569_v51, %v2539_v45  ;;  %v2499_v6 = vadd.f32 %v2843_v27, %v2498_v43 }
 0x2f6   : > { %v2571_v30 = vadd.f32 %v2570_v61, %v2540_v26 }
 0x308   : > { %v2846_v63 = vpop.f32.mrb[6].mxu1 }
 0x309   : > { %v2423_v25 = vpop.f32.mrb[7].mxu1  ;;  %v2542_v17 = vmul.f32 %v2846_v63, %v2846_v63 }
 0x30a   : > { %v2500_v62 = vadd.f32 %v2499_v6, %v2423_v25  ;;  %v2541_v4 = vmul.f32 %v2423_v25, %v2423_v25 }
 0x30c   : > { %v2572_v20 = vadd.f32 %v2571_v30, %v2541_v4  ;;  %v2501_v29 = vadd.f32 %v2846_v63, %v2500_v62 }
 0x30e   : > { %v2573_v38 = vadd.f32 %v2572_v20, %v2542_v17 }
 0x320   : > { %v2849_v19 = vpop.f32.mrb[8].mxu1 }
 0x321   : > { %v2433_v9 = vpop.f32.mrb[9].mxu1  ;;  %v2544_v35 = vmul.f32 %v2849_v19, %v2849_v19 }
 0x322   : > { %v2502_v54 = vadd.f32 %v2501_v29, %v2433_v9  ;;  %v2543_v34 = vmul.f32 %v2433_v9, %v2433_v9 }
 0x324   : > { %v2574_v36 = vadd.f32 %v2573_v38, %v2543_v34  ;;  %v2503_v37 = vadd.f32 %v2849_v19, %v2502_v54 }
 0x326   : > { %v2575_v2 = vadd.f32 %v2574_v36, %v2544_v35 }
 0x338   : > { %v2852_v39 = vpop.f32.mrb[10].mxu1 }
 0x339   : > { %v2443_v57 = vpop.f32.mrb[11].mxu1  ;;  %v2546_v15 = vmul.f32 %v2852_v39, %v2852_v39 }
 0x33a   : > { %v2504_v44 = vadd.f32 %v2503_v37, %v2443_v57  ;;  %v2545_v11 = vmul.f32 %v2443_v57, %v2443_v57 }
 0x33c   : > { %v2576_v42 = vadd.f32 %v2575_v2, %v2545_v11  ;;  %v2505_v53 = vadd.f32 %v2852_v39, %v2504_v44 }
 0x33e   : > { %v2577_v14 = vadd.f32 %v2576_v42, %v2546_v15 }
 0x350   : > { %v2855_v3 = vpop.f32.mrb[12].mxu1 }
 0x351   : > { %v2453_v46 = vpop.f32.mrb[13].mxu1  ;;  %v2548_v7 = vmul.f32 %v2855_v3, %v2855_v3 }
 0x352   : > { %v2506_v23 = vadd.f32 %v2505_v53, %v2453_v46  ;;  %v2547_v31 = vmul.f32 %v2453_v46, %v2453_v46 }
 0x354   : > { %v2578_v32 = vadd.f32 %v2577_v14, %v2547_v31  ;;  %v2507_v58 = vadd.f32 %v2855_v3, %v2506_v23 }
 0x356   : > { %v2579_v41 = vadd.f32 %v2578_v32, %v2548_v7 }
 0x35d   : > { %v2858_v24 = vpop.f32.mrb[14].mxu1 }
 0x35e   : > { %v2463_v1 = vpop.f32.mrb[15].mxu1  ;;  %v2550_v13 = vmul.f32 %v2858_v24, %v2858_v24 }
 0x35f   : > { %v2508_v16 = vadd.f32 %v2507_v58, %v2463_v1  ;;  %v2549_v59 = vmul.f32 %v2463_v1, %v2463_v1 }
 0x361   : > { %v2509_v0 = vadd.f32 %v2858_v24, %v2508_v16  ;;  %v2580_v50 = vadd.f32 %v2579_v41, %v2549_v59 }
 0x363   : > { %v2510_v10 = vrot.slane %v2509_v0, 4  ;;  %v2581_v40 = vadd.f32 %v2580_v50, %v2550_v13 }
 0x365   : > { %v2511_v52 = vadd.f32 %v2510_v10, %v2509_v0  ;;  %v2582_v49 = vrot.slane %v2581_v40, 4 }
 0x367   : > { %v2512_v8 = vrot.slane %v2511_v52, 2  ;;  %v2583_v18 = vadd.f32 %v2582_v49, %v2581_v40 }
 0x369   : > { %v2513_v48 = vadd.f32 %v2512_v8, %v2511_v52  ;;  %v2584_v12 = vrot.slane %v2583_v18, 2 }
 0x36b   : > { %v2514_v28 = vrot.slane %v2513_v48, 1  ;;  %v2585_v21 = vadd.f32 %v2584_v12, %v2583_v18 }
 0x36d   : > { %v2515_v55 = vadd.f32 %v2514_v28, %v2513_v48  ;;  %v2586_v56 = vrot.slane %v2585_v21, 1 }
 0x36f   : > { %v2516_v5 = vadd.f32 %v2515_v55, %v2478_v47  ;;  %v2587_v51 = vadd.f32 %v2586_v56, %v2585_v21 }
 0x371   : > { %2517 = vst [vmem:[%s4566_s6] sm:$0x1] %v2516_v5  ;;  %v2588_v22 = vadd.f32 %v2587_v51, %v2518_v60 }
 0x373   : > { %2589 = vst [vmem:[%s4572_s9] sm:$0x1] %v2588_v22 }
 0x374 PF: > { %s16_s20 = sadd.s32 1, %s2936_s20   ;;  %s4665_s18 = smov %s2932_s19 }
 0x375   : > { %p13_p5 = scmp.ge.s32.totalorder %s16_s20, 4   ;;  %s4666_s19 = smov %s4668_s21 }
 0x377   :  { %15 = sbr.rel (!%p13_p5) target bundleno = 2 (0x2), region = 88 }

</bundles_post_ra>
